<compile_context>
chip_gen: v6e
topology: v6e:2x2x1
jax: 0.10.0
libtpu: 0.0.40
codegen_flags: <defaults>
</compile_context>

<pallas_src>
import functools
import math

import jax
import jax.numpy as jnp
from jax.experimental import pallas as pl
from jax.experimental.pallas import tpu as pltpu

LATENT = 48


def _round_up(n, m):
    return -(-n // m) * m


def _pick_row_tile(n):
    """Row tile TN: single exact tile for small N, MXU-filling tiles for large N."""
    if n <= 256:
        return _round_up(max(n, 8), 8)          # one grid step, no wasted rows
    # Prefer 256 (full MXU row utilization on v6e/v7x, half the step overhead);
    # fall back to 128 when 256 would waste a full extra half tile at the tail.
    waste256 = _round_up(n, 256) - n
    waste128 = _round_up(n, 128) - n
    return 128 if (waste256 - waste128) >= 128 else 256


# ------------------------- fused MLP Pallas kernel -------------------------

def _posterior_mlp_kernel(xp_ref, xc_ref,
                          w1a_ref, w1b_ref, b1_ref,
                          w2_ref, b2_ref, w3_ref, b3_ref,
                          w4_ref, b4_ref, w5_ref, b5_ref,
                          o_ref):
    """relu(...relu(relu([x_p,x_c]@W1+b1)@W2+b2)...@W5+b5) computed entirely in VMEM.

    Weights are bf16; matmuls accumulate in f32 on the MXU; bias add / ReLU in f32;
    activations are downcast to bf16 right after each ReLU.
    """
    # Layer 1 with fused concat:  cat(x_p, x_c) @ W1  ==  x_p @ W1a + x_c @ W1b.
    x_a = xp_ref[...].astype(jnp.bfloat16)
    x_b = xc_ref[...].astype(jnp.bfloat16)
    y = (jnp.dot(x_a, w1a_ref[...], preferred_element_type=jnp.float32)
         + jnp.dot(x_b, w1b_ref[...], preferred_element_type=jnp.float32)
         + b1_ref[...])
    h = jnp.maximum(y, 0.0).astype(jnp.bfloat16)

    for w_ref, b_ref in ((w2_ref, b2_ref), (w3_ref, b3_ref), (w4_ref, b4_ref)):
        y = jnp.dot(h, w_ref[...], preferred_element_type=jnp.float32) + b_ref[...]
        h = jnp.maximum(y, 0.0).astype(jnp.bfloat16)

    y = jnp.dot(h, w5_ref[...], preferred_element_type=jnp.float32) + b5_ref[...]
    # TODO(synk): the MLP class is not in the spec; following the khrylib/GLAMR MLP
    # convention (activation after EVERY Linear, incl. the final 2*latent projection).
    # Drop this jnp.maximum if the real MLP leaves the last layer un-activated.
    o_ref[...] = jnp.maximum(y, 0.0)


def posterior_forward(kparams, x_past, x_curr):
    """Posterior.forward: returns (mu, logvar), each [N, 48].

    kparams: dict from prep_kernel_params.
    x_past, x_curr: [N, in_dim + 256] float32.
    """
    N, F = x_past.shape
    assert x_curr.shape == (N, F)
    OUTP = kparams["w5"].shape[1]                        # 128 (lane-padded from 96)

    TN = _pick_row_tile(N)
    Np = _round_up(N, TN)
    if Np != N:                                          # only awkward batch sizes pad
        x_past = jnp.pad(x_past, ((0, Np - N), (0, 0)))
        x_curr = jnp.pad(x_curr, ((0, Np - N), (0, 0)))

    # Weights / biases: whole-array VMEM operands (constant across the grid; single
    # copy resident in VMEM, no per-step pipelining needed).
    wnames = ("w1a", "w1b", "b1", "w2", "b2", "w3", "b3", "w4", "b4", "w5", "b5")
    weight_specs = [pl.BlockSpec(memory_space=pltpu.MemorySpace.VMEM) for _ in wnames]

    out = pl.pallas_call(
        _posterior_mlp_kernel,
        out_shape=jax.ShapeDtypeStruct((Np, OUTP), jnp.float32),
        grid=(Np // TN,),
        in_specs=[pl.BlockSpec((TN, F), lambda i: (i, 0)),     # x_past row tile
                  pl.BlockSpec((TN, F), lambda i: (i, 0))]     # x_curr row tile
                 + weight_specs,
        out_specs=pl.BlockSpec((TN, OUTP), lambda i: (i, 0)),
        compiler_params=pltpu.CompilerParams(
            dimension_semantics=("parallel",),
            vmem_limit_bytes=32 << 20,
        ),
    )(x_past, x_curr, *[kparams[n] for n in wnames])

    out = out[:N, :2 * LATENT]
    mu = out[..., :LATENT]
    logvar = out[..., LATENT:]
    return mu, logvar


# ------------------------- parameters -------------------------

def _init_linear(key, fan_in, fan_out):
    # torch nn.Linear default init: U(-1/sqrt(fan_in), 1/sqrt(fan_in)) for W and b.
    kw, kb = jax.random.split(key)
    lim = 1.0 / math.sqrt(fan_in)
    w = jax.random.uniform(kw, (fan_in, fan_out), jnp.float32, -lim, lim)
    b = jax.random.uniform(kb, (fan_out,), jnp.float32, -lim, lim)
    return w, b


def init_posterior_params(key, in_dim):
    """Raw f32 parameters of Posterior.in_mlp: [716 -> 512,512,512,512,96]."""
    d = (in_dim + 256) * 2
    layers = []
    for h in (512, 512, 512, 512, 2 * LATENT):
        key, sub = jax.random.split(key)
        layers.append(_init_linear(sub, d, h))
        d = h
    return layers


def prep_kernel_params(layers, weight_dtype=jnp.bfloat16):
    """Split W1 for the fused concat, lane-pad the last layer (96->128), cast weights.

    Zero-padding W5's extra columns keeps the math exact.  Biases stay f32 and are
    reshaped to [1, M] for in-kernel broadcast.
    """
    (w1, b1), (w2, b2), (w3, b3), (w4, b4), (w5, b5) = layers

    feat = w1.shape[0] // 2                       # in_dim + 256
    w1a, w1b = w1[:feat], w1[feat:]               # cat(x_p,x_c)@W1 == x_p@W1a + x_c@W1b

    m5 = w5.shape[1]
    mp = _round_up(m5, 128)
    w5p = jnp.pad(w5, ((0, 0), (0, mp - m5)))
    b5p = jnp.pad(b5, (0, mp - m5))

    cw = lambda w: w.astype(weight_dtype)
    cb = lambda b: b.reshape(1, -1).astype(jnp.float32)
    return {
        "w1a": cw(w1a), "w1b": cw(w1b), "b1": cb(b1),
        "w2": cw(w2), "b2": cb(b2),
        "w3": cw(w3), "b3": cb(b3),
        "w4": cw(w4), "b4": cb(b4),
        "w5": cw(w5p), "b5": cb(b5p),
    }


# ------------------------- pure-JAX reference (for verification) -------------------------

def posterior_reference(layers, x_past, x_curr, weight_dtype=jnp.bfloat16):
    h = jnp.concatenate([x_past, x_curr], axis=-1)
    for w, b in layers:
        y = jnp.dot(h.astype(weight_dtype), w.astype(weight_dtype),
                    preferred_element_type=jnp.float32) + b
        h = jnp.maximum(y, 0.0)
    return h[..., :LATENT], h[..., LATENT:]


# ------------------------- demo / self-test -------------------------

if __name__ == "__main__":
    key = jax.random.PRNGKey(0)
    k_param, k_x1, k_x2, k_x3, k_x4 = jax.random.split(key, 5)

    # Shapes as used by FineNetwork: in_dim = 17 joints * 3 * 2 = 102,
    # per-frame feature = in_dim + 256 (context) = 358, fused concat -> 716.
    B = 16
    IN_DIM = 102
    FEAT = IN_DIM + 256

    raw_params = init_posterior_params(k_param, in_dim=IN_DIM)
    kparams = prep_kernel_params(raw_params, weight_dtype=jnp.bfloat16)

    fwd = jax.jit(posterior_forward)

    # --- small batch (single grid step, exact tile) ---
    x_past = jax.random.normal(k_x1, (B, FEAT), jnp.float32)
    x_curr = jax.random.normal(k_x2, (B, FEAT), jnp.float32)
    mu, logvar = jax.block_until_ready(fwd(kparams, x_past, x_curr))
    assert mu.shape == (B, LATENT) and logvar.shape == (B, LATENT)
    assert bool(jnp.all(jnp.isfinite(mu))) and bool(jnp.all(jnp.isfinite(logvar)))
    mu_ref, lv_ref = posterior_reference(raw_params, x_past, x_curr)
    assert bool(jnp.allclose(mu, mu_ref, rtol=1e-3, atol=1e-3))
    assert bool(jnp.allclose(logvar, lv_ref, rtol=1e-3, atol=1e-3))

    # --- larger batch (multi-step "parallel" grid, tail-row padding) ---
    B2 = 272
    x_past2 = jax.random.normal(k_x3, (B2, FEAT), jnp.float32)
    x_curr2 = jax.random.normal(k_x4, (B2, FEAT), jnp.float32)
    mu2, lv2 = jax.block_until_ready(fwd(kparams, x_past2, x_curr2))
    mu2_ref, lv2_ref = posterior_reference(raw_params, x_past2, x_curr2)
    assert mu2.shape == (B2, LATENT) and lv2.shape == (B2, LATENT)
    assert bool(jnp.allclose(mu2, mu2_ref, rtol=1e-3, atol=1e-3))
    assert bool(jnp.allclose(lv2, lv2_ref, rtol=1e-3, atol=1e-3))

    print("KERNEL_OK")
</pallas_src>

<mosaic_0001>
module attributes {stable_mosaic.version = 11 : i64} {
  func.func @_posterior_mlp_kernel(%arg0: i32, %arg1: memref<16x358xf32, #tpu.memory_space<vmem>>, %arg2: memref<16x358xf32, #tpu.memory_space<vmem>>, %arg3: memref<358x512xbf16, #tpu.memory_space<vmem>>, %arg4: memref<358x512xbf16, #tpu.memory_space<vmem>>, %arg5: memref<1x512xf32, #tpu.memory_space<vmem>>, %arg6: memref<512x512xbf16, #tpu.memory_space<vmem>>, %arg7: memref<1x512xf32, #tpu.memory_space<vmem>>, %arg8: memref<512x512xbf16, #tpu.memory_space<vmem>>, %arg9: memref<1x512xf32, #tpu.memory_space<vmem>>, %arg10: memref<512x512xbf16, #tpu.memory_space<vmem>>, %arg11: memref<1x512xf32, #tpu.memory_space<vmem>>, %arg12: memref<512x128xbf16, #tpu.memory_space<vmem>>, %arg13: memref<1x128xf32, #tpu.memory_space<vmem>>, %arg14: memref<16x128xf32, #tpu.memory_space<vmem>>) attributes {dimension_semantics = [#tpu.dimension_semantics<parallel>], iteration_bounds = array<i64: 1>, scalar_prefetch = 0 : i64, scratch_operands = 0 : i64, tpu.core_type = #tpu.core_type<tc>, window_params = [{transform_indices = @transform_0, window_bounds = array<i64: 16, 358>}, {transform_indices = @transform_1, window_bounds = array<i64: 16, 358>}, {pipeline_mode = #tpu.pipeline_mode<synchronous>, transform_indices = @transform_2, window_bounds = array<i64: 358, 512>}, {pipeline_mode = #tpu.pipeline_mode<synchronous>, transform_indices = @transform_3, window_bounds = array<i64: 358, 512>}, {pipeline_mode = #tpu.pipeline_mode<synchronous>, transform_indices = @transform_4, window_bounds = array<i64: 1, 512>}, {pipeline_mode = #tpu.pipeline_mode<synchronous>, transform_indices = @transform_5, window_bounds = array<i64: 512, 512>}, {pipeline_mode = #tpu.pipeline_mode<synchronous>, transform_indices = @transform_6, window_bounds = array<i64: 1, 512>}, {pipeline_mode = #tpu.pipeline_mode<synchronous>, transform_indices = @transform_7, window_bounds = array<i64: 512, 512>}, {pipeline_mode = #tpu.pipeline_mode<synchronous>, transform_indices = @transform_8, window_bounds = array<i64: 1, 512>}, {pipeline_mode = #tpu.pipeline_mode<synchronous>, transform_indices = @transform_9, window_bounds = array<i64: 512, 512>}, {pipeline_mode = #tpu.pipeline_mode<synchronous>, transform_indices = @transform_10, window_bounds = array<i64: 1, 512>}, {pipeline_mode = #tpu.pipeline_mode<synchronous>, transform_indices = @transform_11, window_bounds = array<i64: 512, 128>}, {pipeline_mode = #tpu.pipeline_mode<synchronous>, transform_indices = @transform_12, window_bounds = array<i64: 1, 128>}, {transform_indices = @transform_13, window_bounds = array<i64: 16, 128>}]} {
    %c0 = arith.constant 0 : index
    %c0_0 = arith.constant 0 : index
    %0 = vector.load %arg1[%c0, %c0_0] : memref<16x358xf32, #tpu.memory_space<vmem>>, vector<16x358xf32>
    %1 = arith.truncf %0 : vector<16x358xf32> to vector<16x358xbf16>
    %c0_1 = arith.constant 0 : index
    %c0_2 = arith.constant 0 : index
    %2 = vector.load %arg2[%c0_1, %c0_2] : memref<16x358xf32, #tpu.memory_space<vmem>>, vector<16x358xf32>
    %3 = arith.truncf %2 : vector<16x358xf32> to vector<16x358xbf16>
    %c0_3 = arith.constant 0 : index
    %c0_4 = arith.constant 0 : index
    %4 = vector.load %arg3[%c0_3, %c0_4] : memref<358x512xbf16, #tpu.memory_space<vmem>>, vector<358x512xbf16>
    %cst = arith.constant dense<0.000000e+00> : vector<16x512xf32>
    %5 = tpu.matmul %1, %4, %cst {dimension_numbers = #tpu.dot_dimension_numbers<[1], [0], [0], [1], [0, 0, 1, 1], [], []>} : vector<16x358xbf16>, vector<358x512xbf16>, vector<16x512xf32> -> vector<16x512xf32>
    %c0_5 = arith.constant 0 : index
    %c0_6 = arith.constant 0 : index
    %6 = vector.load %arg4[%c0_5, %c0_6] : memref<358x512xbf16, #tpu.memory_space<vmem>>, vector<358x512xbf16>
    %cst_7 = arith.constant dense<0.000000e+00> : vector<16x512xf32>
    %7 = tpu.matmul %3, %6, %cst_7 {dimension_numbers = #tpu.dot_dimension_numbers<[1], [0], [0], [1], [0, 0, 1, 1], [], []>} : vector<16x358xbf16>, vector<358x512xbf16>, vector<16x512xf32> -> vector<16x512xf32>
    %8 = arith.addf %5, %7 : vector<16x512xf32>
    %c0_8 = arith.constant 0 : index
    %c0_9 = arith.constant 0 : index
    %9 = vector.load %arg5[%c0_8, %c0_9] : memref<1x512xf32, #tpu.memory_space<vmem>>, vector<1x512xf32>
    %10 = vector.broadcast %9 : vector<1x512xf32> to vector<16x512xf32>
    %11 = arith.addf %8, %10 : vector<16x512xf32>
    %cst_10 = arith.constant 0.000000e+00 : f32
    %12 = vector.broadcast %cst_10 : f32 to vector<16x512xf32>
    %13 = arith.maximumf %11, %12 : vector<16x512xf32>
    %14 = arith.truncf %13 : vector<16x512xf32> to vector<16x512xbf16>
    %c0_11 = arith.constant 0 : index
    %c0_12 = arith.constant 0 : index
    %15 = vector.load %arg6[%c0_11, %c0_12] : memref<512x512xbf16, #tpu.memory_space<vmem>>, vector<512x512xbf16>
    %cst_13 = arith.constant dense<0.000000e+00> : vector<16x512xf32>
    %16 = tpu.matmul %14, %15, %cst_13 {dimension_numbers = #tpu.dot_dimension_numbers<[1], [0], [0], [1], [0, 0, 1, 1], [], []>} : vector<16x512xbf16>, vector<512x512xbf16>, vector<16x512xf32> -> vector<16x512xf32>
    %c0_14 = arith.constant 0 : index
    %c0_15 = arith.constant 0 : index
    %17 = vector.load %arg7[%c0_14, %c0_15] : memref<1x512xf32, #tpu.memory_space<vmem>>, vector<1x512xf32>
    %18 = vector.broadcast %17 : vector<1x512xf32> to vector<16x512xf32>
    %19 = arith.addf %16, %18 : vector<16x512xf32>
    %cst_16 = arith.constant 0.000000e+00 : f32
    %20 = vector.broadcast %cst_16 : f32 to vector<16x512xf32>
    %21 = arith.maximumf %19, %20 : vector<16x512xf32>
    %22 = arith.truncf %21 : vector<16x512xf32> to vector<16x512xbf16>
    %c0_17 = arith.constant 0 : index
    %c0_18 = arith.constant 0 : index
    %23 = vector.load %arg8[%c0_17, %c0_18] : memref<512x512xbf16, #tpu.memory_space<vmem>>, vector<512x512xbf16>
    %cst_19 = arith.constant dense<0.000000e+00> : vector<16x512xf32>
    %24 = tpu.matmul %22, %23, %cst_19 {dimension_numbers = #tpu.dot_dimension_numbers<[1], [0], [0], [1], [0, 0, 1, 1], [], []>} : vector<16x512xbf16>, vector<512x512xbf16>, vector<16x512xf32> -> vector<16x512xf32>
    %c0_20 = arith.constant 0 : index
    %c0_21 = arith.constant 0 : index
    %25 = vector.load %arg9[%c0_20, %c0_21] : memref<1x512xf32, #tpu.memory_space<vmem>>, vector<1x512xf32>
    %26 = vector.broadcast %25 : vector<1x512xf32> to vector<16x512xf32>
    %27 = arith.addf %24, %26 : vector<16x512xf32>
    %cst_22 = arith.constant 0.000000e+00 : f32
    %28 = vector.broadcast %cst_22 : f32 to vector<16x512xf32>
    %29 = arith.maximumf %27, %28 : vector<16x512xf32>
    %30 = arith.truncf %29 : vector<16x512xf32> to vector<16x512xbf16>
    %c0_23 = arith.constant 0 : index
    %c0_24 = arith.constant 0 : index
    %31 = vector.load %arg10[%c0_23, %c0_24] : memref<512x512xbf16, #tpu.memory_space<vmem>>, vector<512x512xbf16>
    %cst_25 = arith.constant dense<0.000000e+00> : vector<16x512xf32>
    %32 = tpu.matmul %30, %31, %cst_25 {dimension_numbers = #tpu.dot_dimension_numbers<[1], [0], [0], [1], [0, 0, 1, 1], [], []>} : vector<16x512xbf16>, vector<512x512xbf16>, vector<16x512xf32> -> vector<16x512xf32>
    %c0_26 = arith.constant 0 : index
    %c0_27 = arith.constant 0 : index
    %33 = vector.load %arg11[%c0_26, %c0_27] : memref<1x512xf32, #tpu.memory_space<vmem>>, vector<1x512xf32>
    %34 = vector.broadcast %33 : vector<1x512xf32> to vector<16x512xf32>
    %35 = arith.addf %32, %34 : vector<16x512xf32>
    %cst_28 = arith.constant 0.000000e+00 : f32
    %36 = vector.broadcast %cst_28 : f32 to vector<16x512xf32>
    %37 = arith.maximumf %35, %36 : vector<16x512xf32>
    %38 = arith.truncf %37 : vector<16x512xf32> to vector<16x512xbf16>
    %c0_29 = arith.constant 0 : index
    %c0_30 = arith.constant 0 : index
    %39 = vector.load %arg12[%c0_29, %c0_30] : memref<512x128xbf16, #tpu.memory_space<vmem>>, vector<512x128xbf16>
    %cst_31 = arith.constant dense<0.000000e+00> : vector<16x128xf32>
    %40 = tpu.matmul %38, %39, %cst_31 {dimension_numbers = #tpu.dot_dimension_numbers<[1], [0], [0], [1], [0, 0, 1, 1], [], []>} : vector<16x512xbf16>, vector<512x128xbf16>, vector<16x128xf32> -> vector<16x128xf32>
    %c0_32 = arith.constant 0 : index
    %c0_33 = arith.constant 0 : index
    %41 = vector.load %arg13[%c0_32, %c0_33] : memref<1x128xf32, #tpu.memory_space<vmem>>, vector<1x128xf32>
    %42 = vector.broadcast %41 : vector<1x128xf32> to vector<16x128xf32>
    %43 = arith.addf %40, %42 : vector<16x128xf32>
    %cst_34 = arith.constant 0.000000e+00 : f32
    %44 = vector.broadcast %cst_34 : f32 to vector<16x128xf32>
    %45 = arith.maximumf %43, %44 : vector<16x128xf32>
    %c0_35 = arith.constant 0 : index
    %c0_36 = arith.constant 0 : index
    %46 = vector.load %arg14[%c0_35, %c0_36] : memref<16x128xf32, #tpu.memory_space<vmem>>, vector<16x128xf32>
    tpu.vector_store %arg14[%c0_35, %c0_36], %45 {strides = array<i32>} : memref<16x128xf32, #tpu.memory_space<vmem>>, vector<16x128xf32>,
    return
  }
  func.func @transform_0(%arg0: i32) -> (i32, i32) {
    %c0_i32 = arith.constant 0 : i32
    %c0_i32_0 = arith.constant 0 : i32
    return %arg0, %c0_i32 : i32, i32
  }
  func.func @transform_1(%arg0: i32) -> (i32, i32) {
    %c0_i32 = arith.constant 0 : i32
    %c0_i32_0 = arith.constant 0 : i32
    return %arg0, %c0_i32 : i32, i32
  }
  func.func @transform_2(%arg0: i32) -> (i32, i32) {
    %c0_i32 = arith.constant 0 : i32
    %c0_i32_0 = arith.constant 0 : i32
    %c0_i32_1 = arith.constant 0 : i32
    return %c0_i32, %c0_i32_0 : i32, i32
  }
  func.func @transform_3(%arg0: i32) -> (i32, i32) {
    %c0_i32 = arith.constant 0 : i32
    %c0_i32_0 = arith.constant 0 : i32
    %c0_i32_1 = arith.constant 0 : i32
    return %c0_i32, %c0_i32_0 : i32, i32
  }
  func.func @transform_4(%arg0: i32) -> (i32, i32) {
    %c0_i32 = arith.constant 0 : i32
    %c0_i32_0 = arith.constant 0 : i32
    %c0_i32_1 = arith.constant 0 : i32
    return %c0_i32, %c0_i32_0 : i32, i32
  }
  func.func @transform_5(%arg0: i32) -> (i32, i32) {
    %c0_i32 = arith.constant 0 : i32
    %c0_i32_0 = arith.constant 0 : i32
    %c0_i32_1 = arith.constant 0 : i32
    return %c0_i32, %c0_i32_0 : i32, i32
  }
  func.func @transform_6(%arg0: i32) -> (i32, i32) {
    %c0_i32 = arith.constant 0 : i32
    %c0_i32_0 = arith.constant 0 : i32
    %c0_i32_1 = arith.constant 0 : i32
    return %c0_i32, %c0_i32_0 : i32, i32
  }
  func.func @transform_7(%arg0: i32) -> (i32, i32) {
    %c0_i32 = arith.constant 0 : i32
    %c0_i32_0 = arith.constant 0 : i32
    %c0_i32_1 = arith.constant 0 : i32
    return %c0_i32, %c0_i32_0 : i32, i32
  }
  func.func @transform_8(%arg0: i32) -> (i32, i32) {
    %c0_i32 = arith.constant 0 : i32
    %c0_i32_0 = arith.constant 0 : i32
    %c0_i32_1 = arith.constant 0 : i32
    return %c0_i32, %c0_i32_0 : i32, i32
  }
  func.func @transform_9(%arg0: i32) -> (i32, i32) {
    %c0_i32 = arith.constant 0 : i32
    %c0_i32_0 = arith.constant 0 : i32
    %c0_i32_1 = arith.constant 0 : i32
    return %c0_i32, %c0_i32_0 : i32, i32
  }
  func.func @transform_10(%arg0: i32) -> (i32, i32) {
    %c0_i32 = arith.constant 0 : i32
    %c0_i32_0 = arith.constant 0 : i32
    %c0_i32_1 = arith.constant 0 : i32
    return %c0_i32, %c0_i32_0 : i32, i32
  }
  func.func @transform_11(%arg0: i32) -> (i32, i32) {
    %c0_i32 = arith.constant 0 : i32
    %c0_i32_0 = arith.constant 0 : i32
    %c0_i32_1 = arith.constant 0 : i32
    return %c0_i32, %c0_i32_0 : i32, i32
  }
  func.func @transform_12(%arg0: i32) -> (i32, i32) {
    %c0_i32 = arith.constant 0 : i32
    %c0_i32_0 = arith.constant 0 : i32
    %c0_i32_1 = arith.constant 0 : i32
    return %c0_i32, %c0_i32_0 : i32, i32
  }
  func.func @transform_13(%arg0: i32) -> (i32, i32) {
    %c0_i32 = arith.constant 0 : i32
    %c0_i32_0 = arith.constant 0 : i32
    return %arg0, %c0_i32 : i32, i32
  }
}

</mosaic_0001>

<bundles_post_ra>
// kernel: posterior_forward.1
= control target key start
LH: loop header
LB: loop body
LE: loop exit
PB: predicated region body
PF: predicated region fallthrough
CT: control target
= control target key end

     0   :  { %18 = vsyncpa [#allocation3], 0  ;;  %s7041_s0 = inlined_call_operand.hbm [shape: f32[16,358], index: 0, kind: input, shape index: {}]   ;;  %s7042_s1 = inlined_call_operand.hbm [shape: f32[16,358], index: 1, kind: input, shape index: {}]   ;;  %s7043_s2 = inlined_call_operand.hbm [shape: bf16[358,512], index: 2, kind: input, shape index: {}]   ;;  %s7044_s3 = inlined_call_operand.hbm [shape: bf16[358,512], index: 3, kind: input, shape index: {}]   ;;  %s7045_s4 = inlined_call_operand.hbm [shape: f32[1,512], index: 4, kind: input, shape index: {}]   ;;  %s7046_s5 = inlined_call_operand.hbm [shape: bf16[512,512], index: 5, kind: input, shape index: {}]   ;;  %s7047_s6 = inlined_call_operand.hbm [shape: f32[1,512], index: 6, kind: input, shape index: {}]   ;;  %s7048_s7 = inlined_call_operand.hbm [shape: bf16[512,512], index: 7, kind: input, shape index: {}]   ;;  %s7049_s8 = inlined_call_operand.hbm [shape: f32[1,512], index: 8, kind: input, shape index: {}]   ;;  %s7050_s9 = inlined_call_operand.hbm [shape: bf16[512,512], index: 9, kind: input, shape index: {}]   ;;  %s7051_s10 = inlined_call_operand.vmem [shape: f32[1,512], index: 10, kind: input, shape index: {}]   ;;  %s7052_s11 = inlined_call_operand.hbm [shape: bf16[512,128], index: 11, kind: input, shape index: {}]   ;;  %s7053_s12 = inlined_call_operand.vmem [shape: f32[1,128], index: 12, kind: input, shape index: {}]   ;;  %s7054_s13 = inlined_call_operand.vmem [shape: f32[16,128], index: 13, kind: output, shape index: {}]  }
   0x1   :  { %19 = vsyncpa [#allocation5], 0 }
   0x2   :  { %20 = vsyncpa [#allocation8], 0 }
   0x3   :  { %21 = vsyncpa [#allocation11], 0 }
   0x4   :  { %22 = vsyncpa [#allocation14], 0 }
   0x5   :  { %23 = vsyncpa [#allocation17], 0  ;;  %s6768_s25 = smov [#allocation4]  }
   0x6   :  { %s41_s26 = sshll.u32 %s6768_s25, 4  ;;  %s42_s26 = int_to_ptr.vmem [resolvable:$true] %s41_s26 }
   0x7   :  { %s6544_s27 = scalar_lea.vmem %s42_s26, 768  ;;  %p6549_p1 = scmp.lt.s32.totalorder %s42_s26, %s42_s26 }
   0x8   :  { %p6545_p0 = scmp.ne.s32.totalorder %s42_s26, %s6544_s27  ;;  %p6550_p2 = scmp.lt.s32.totalorder %s6544_s27, %s6544_s27 }
   0xa   :  { %p6551_p3 = por %p6550_p2, %p6549_p1 }
   0xc   :  { %p6552_p4 = pnand %p6551_p3, %p6545_p0 }
   0xe   :  { %6555 = shalt.err (!%p6552_p4)
}
   0xf   :  { %s6769_s28 = smov 384   ;;  %s6770_s29 = smov 24  }
  0x10   :  { %47 = dma.hbm_to_vmem [thread:$0]  %s7042_s1, 768, %s42_s26, [#allocation5], %s6769_s28, %s6769_s28, %s6770_s29  }
  0x11   :  { %s6771_s15 = smov [#allocation7]   ;;  %s6772_s17 = smov [#allocation10]  }
  0x12   :  { %s65_s16 = sshll.u32 %s6771_s15, 4  ;;  %s87_s18 = sshll.u32 %s6772_s17, 4  ;;  %s66_s16 = int_to_ptr.vmem [resolvable:$true] %s65_s16  ;;  %s88_s18 = int_to_ptr.vmem [resolvable:$true] %s87_s18 }
  0x13   :  { %s6564_s19 = scalar_lea.vmem %s66_s16, 11520  ;;  %p6569_p6 = scmp.lt.s32.totalorder %s66_s16, %s66_s16 }
  0x14   :  { %p6565_p5 = scmp.ne.s32.totalorder %s66_s16, %s6564_s19  ;;  %p6570_p7 = scmp.lt.s32.totalorder %s6564_s19, %s6564_s19 }
  0x16   :  { %p6571_p8 = por %p6570_p7, %p6569_p6 }
  0x18   :  { %p6572_p9 = pnand %p6571_p8, %p6565_p5 }
  0x1a   :  { %6575 = shalt.err (!%p6572_p9)
}
  0x1b   :  { %s6773_s20 = smov 256   ;;  %s6774_s21 = smov 16  }
  0x1c   :  { %71 = dma.hbm_to_vmem [thread:$0]  %s7044_s3, 11520, %s66_s16, [#allocation8], %s6773_s20, %s6773_s20, %s6774_s21  }
  0x1d   :  { %s6584_s1 = scalar_lea.vmem %s88_s18, 16384  ;;  %p6589_p11 = scmp.lt.s32.totalorder %s88_s18, %s88_s18 }
  0x1e   :  { %p6585_p10 = scmp.ne.s32.totalorder %s88_s18, %s6584_s1  ;;  %p6590_p12 = scmp.lt.s32.totalorder %s6584_s1, %s6584_s1 }
  0x20   :  { %p6591_p13 = por %p6590_p12, %p6589_p11 }
  0x22   :  { %p6592_p0 = pnand %p6591_p13, %p6585_p10 }
  0x24   :  { %6595 = shalt.err (!%p6592_p0)
}
  0x25   :  { %93 = dma.hbm_to_vmem [thread:$0]  %s7046_s5, 16384, %s88_s18, [#allocation11], %s6773_s20, %s6773_s20, %s6774_s21  }
  0x26   :  { %s6775_s26 = smov [#allocation13]   ;;  %s6776_s30 = smov [#allocation16]  }
  0x27   :  { %s109_s27 = sshll.u32 %s6775_s26, 4  ;;  %s131_s3 = sshll.u32 %s6776_s30, 4  ;;  %s110_s27 = int_to_ptr.vmem [resolvable:$true] %s109_s27  ;;  %s132_s3 = int_to_ptr.vmem [resolvable:$true] %s131_s3 }
  0x28   :  { %s6604_s14 = scalar_lea.vmem %s110_s27, 16384  ;;  %p6609_p2 = scmp.lt.s32.totalorder %s110_s27, %s110_s27 }
  0x29   :  { %p6605_p1 = scmp.ne.s32.totalorder %s110_s27, %s6604_s14  ;;  %p6610_p3 = scmp.lt.s32.totalorder %s6604_s14, %s6604_s14 }
  0x2b   :  { %p6611_p4 = por %p6610_p3, %p6609_p2 }
  0x2d   :  { %p6612_p5 = pnand %p6611_p4, %p6605_p1 }
  0x2f   :  { %6615 = shalt.err (!%p6612_p5)
}
  0x30   :  { %115 = dma.hbm_to_vmem [thread:$0]  %s7048_s7, 16384, %s110_s27, [#allocation14], %s6773_s20, %s6773_s20, %s6774_s21  }
  0x31   :  { %s6624_s5 = scalar_lea.vmem %s132_s3, 16384  ;;  %p6629_p7 = scmp.lt.s32.totalorder %s132_s3, %s132_s3 }
  0x32   :  { %p6625_p6 = scmp.ne.s32.totalorder %s132_s3, %s6624_s5  ;;  %p6630_p8 = scmp.lt.s32.totalorder %s6624_s5, %s6624_s5 }
  0x34   :  { %p6631_p9 = por %p6630_p8, %p6629_p7 }
  0x36   :  { %p6632_p10 = pnand %p6631_p9, %p6625_p6 }
  0x38   :  { %6635 = shalt.err (!%p6632_p10)
}
  0x39   :  { %137 = dma.hbm_to_vmem [thread:$0]  %s7050_s9, 16384, %s132_s3, [#allocation17], %s6773_s20, %s6773_s20, %s6774_s21  }
  0x3a   :  { %s6777_s19 = smov [#allocation2]   ;;  %s6778_s23 = smov [#allocation6]  }
  0x3b   :  { %s29_s22 = sshll.u32 %s6777_s19, 4  ;;  %s53_s7 = sshll.u32 %s6778_s23, 4  ;;  %s30_s22 = int_to_ptr.vmem [resolvable:$true] %s29_s22  ;;  %s54_s7 = int_to_ptr.vmem [resolvable:$true] %s53_s7 }
  0x3c   :  { %s6644_s1 = scalar_lea.vmem %s30_s22, 768  ;;  %p6649_p12 = scmp.lt.s32.totalorder %s30_s22, %s30_s22 }
  0x3d   :  { %p6645_p11 = scmp.ne.s32.totalorder %s30_s22, %s6644_s1  ;;  %p6650_p13 = scmp.lt.s32.totalorder %s6644_s1, %s6644_s1 }
  0x3f   :  { %p6651_p0 = por %p6650_p13, %p6649_p12 }
  0x41   :  { %p6652_p1 = pnand %p6651_p0, %p6645_p11 }
  0x43   :  { %6655 = shalt.err (!%p6652_p1)
}
  0x44   :  { %35 = dma.hbm_to_vmem [thread:$0]  %s7041_s0, 768, %s30_s22, [#allocation3], %s6769_s28, %s6769_s28, %s6770_s29  }
  0x45   :  { %s6664_s9 = scalar_lea.vmem %s54_s7, 11520  ;;  %p6669_p3 = scmp.lt.s32.totalorder %s54_s7, %s54_s7 }
  0x46   :  { %p6665_p2 = scmp.ne.s32.totalorder %s54_s7, %s6664_s9  ;;  %p6670_p4 = scmp.lt.s32.totalorder %s6664_s9, %s6664_s9 }
  0x48   :  { %p6671_p5 = por %p6670_p4, %p6669_p3 }
  0x4a   :  { %p6672_p6 = pnand %p6671_p5, %p6665_p2 }
  0x4c   :  { %6675 = shalt.err (!%p6672_p6)
}
  0x4d   :  { %59 = dma.hbm_to_vmem [thread:$0]  %s7043_s2, 11520, %s54_s7, [#allocation5], %s6773_s20, %s6773_s20, %s6774_s21  }
  0x4e   :  { %s6779_s30 = smov [#allocation9]   ;;  %s6780_s14 = smov [#allocation12]  }
  0x4f   :  { %s78_s3 = sshll.u32 %s6779_s30, 4  ;;  %s100_s0 = sshll.u32 %s6780_s14, 4  ;;  %s79_s3 = int_to_ptr.vmem [resolvable:$true] %s78_s3  ;;  %s101_s0 = int_to_ptr.vmem [resolvable:$true] %s100_s0 }
  0x50   :  { %s6684_s28 = scalar_lea.vmem %s79_s3, 64  ;;  %p6689_p8 = scmp.lt.s32.totalorder %s79_s3, %s79_s3 }
  0x51   :  { %p6685_p7 = scmp.ne.s32.totalorder %s79_s3, %s6684_s28  ;;  %p6690_p9 = scmp.lt.s32.totalorder %s6684_s28, %s6684_s28 }
  0x53   :  { %p6691_p10 = por %p6690_p9, %p6689_p8 }
  0x55   :  { %p6692_p11 = pnand %p6691_p10, %p6685_p7 }
  0x57   :  { %6695 = shalt.err (!%p6692_p11)
}
  0x58   :  { %81 = dma.hbm_to_vmem [thread:$0]  %s7045_s4, 64, %s79_s3, [#allocation8]  }
  0x59   :  { %s6704_s16 = scalar_lea.vmem %s101_s0, 64  ;;  %p6709_p13 = scmp.lt.s32.totalorder %s101_s0, %s101_s0 }
  0x5a   :  { %p6705_p12 = scmp.ne.s32.totalorder %s101_s0, %s6704_s16  ;;  %p6710_p0 = scmp.lt.s32.totalorder %s6704_s16, %s6704_s16 }
  0x5c   :  { %p6711_p1 = por %p6710_p0, %p6709_p13 }
  0x5e   :  { %p6712_p2 = pnand %p6711_p1, %p6705_p12 }
  0x60   :  { %6715 = shalt.err (!%p6712_p2)
}
  0x61   :  { %103 = dma.hbm_to_vmem [thread:$0]  %s7047_s6, 64, %s101_s0, [#allocation11]  }
  0x62   :  { %s6781_s21 = smov [#allocation15]   ;;  %s6782_s17 = smov [#allocation18]  }
  0x63   :  { %s122_s5 = sshll.u32 %s6781_s21, 4  ;;  %s145_s18 = sshll.u32 %s6782_s17, 4  ;;  %s123_s5 = int_to_ptr.vmem [resolvable:$true] %s122_s5  ;;  %s146_s18 = int_to_ptr.vmem [resolvable:$true] %s145_s18 }
  0x64   :  { %s6724_s19 = scalar_lea.vmem %s123_s5, 64  ;;  %p6729_p4 = scmp.lt.s32.totalorder %s123_s5, %s123_s5 }
  0x65   :  { %p6725_p3 = scmp.ne.s32.totalorder %s123_s5, %s6724_s19  ;;  %p6730_p5 = scmp.lt.s32.totalorder %s6724_s19, %s6724_s19 }
  0x67   :  { %p6731_p6 = por %p6730_p5, %p6729_p4 }
  0x69   :  { %p6732_p7 = pnand %p6731_p6, %p6725_p3 }
  0x6b   :  { %6735 = shalt.err (!%p6732_p7)
}
  0x6c   :  { %125 = dma.hbm_to_vmem [thread:$0]  %s7049_s8, 64, %s123_s5, [#allocation14]  }
  0x6d   :  { %s6744_s23 = scalar_lea.vmem %s146_s18, 4096  ;;  %p6749_p9 = scmp.lt.s32.totalorder %s146_s18, %s146_s18 }
  0x6e   :  { %p6745_p8 = scmp.ne.s32.totalorder %s146_s18, %s6744_s23  ;;  %p6750_p10 = scmp.lt.s32.totalorder %s6744_s23, %s6744_s23 }
  0x70   :  { %p6751_p11 = por %p6750_p10, %p6749_p9 }
  0x72   :  { %p6752_p12 = pnand %p6751_p11, %p6745_p8 }
  0x74   :  { %6755 = shalt.err (!%p6752_p12)
}
  0x75   :  { %s6783_s6 = smov 64   ;;  %s6784_s7 = smov 4  }
  0x76   :  { %151 = dma.hbm_to_vmem [thread:$0]  %s7052_s11, 4096, %s146_s18, [#allocation17], %s6783_s6, %s6783_s6, %s6784_s7  }
  0x77   :  { %6756 = dma.done.wait [#allocation3], 768  }
  0x78   :  { %6757 = vsyncadd [#allocation3], 4294966528 }
  0x79   :  { %6758 = dma.done.wait [#allocation5], 12288  }
  0x7a   :  { %6759 = vsyncadd [#allocation5], 4294955008 }
  0x7b   :  { %6760 = dma.done.wait [#allocation8], 11584  }
  0x7c   :  { %6761 = vsyncadd [#allocation8], 4294955712 }
  0x7d   :  { %6762 = dma.done.wait [#allocation11], 16448  }
  0x7e   :  { %6763 = vsyncadd [#allocation11], 4294950848 }
  0x7f   :  { %6764 = dma.done.wait [#allocation14], 16448  }
  0x80   :  { %6765 = vsyncadd [#allocation14], 4294950848 }
  0x81   :  { %6766 = dma.done.wait [#allocation17], 20480  }
  0x82   :  { %6767 = vsyncadd [#allocation17], 4294946816  ;;  %v6785_v0 = vmov 0   ;;  %v5656_v1 = vld [vmem:[#allocation7 + $0xe4] ss:$16 sps:$4 sm:$0xff]   ;;  %vm840_vm0 = vcmask 1042432  }
  0x83   :  { %928 = vmatprep.mubr.bf16.mxu1 %v6785_v0  ;;  %v384_v2 = vld [vmem:[#allocation7 + $0x2c0] sm:$0x77]  ;;  %853 = vmatprep.subr.bf16.mxu0 %v5656_v1  ;;  %v199_v32 = vld [vmem:[#allocation4 + $0x10] sm:$0xff]  ;;  %v202_v33 = vld [vmem:[#allocation4 + $0x28] sm:$0xff]  ;;  %vm836_vm1 = vcmask 834560  }
  0x84   :  { %v5659_v3 = vld [vmem:[#allocation7 + $0xe0] ss:$16 sps:$4 sm:$0xff]   ;;  %v5074_v4 = vcombine.high %v384_v2, %v384_v2  ;;  %v5073_v5 = vcombine.low %v384_v2, %v384_v2  ;;  %v5661_v6 = vld [vmem:[#allocation7 + $0xc4] ss:$16 sps:$4 sm:$0xff]   ;;  %v5701_v34 = vld [vmem:[#allocation7 + $0xec] ss:$16 sps:$4 sm:$0xff]   ;;  %v6913_v36 = vpack.c.bf16 %v202_v33, %v199_v32 }
  0x85   :  { %854 = vmatpush1.bf16.msra.mxu0 %v5659_v3  ;;  %v5663_v7 = vld [vmem:[#allocation7 + $0x2a4] ss:$16 sps:$4 sm:$0xff]   ;;  %v5665_v8 = vld [vmem:[#allocation7 + $0xc0] ss:$16 sps:$4 sm:$0xff]   ;;  %v5699_v38 = vld [vmem:[#allocation7 + $0xe8] ss:$16 sps:$4 sm:$0xff]  }
  0x86   :  { %5077 = vmatprep.subr.msk.bf16.mxu1 %vm840_vm0, %v5074_v4  ;;  %v842_v9 = vsel %vm840_vm0, %v5073_v5, 0  ;;  %855 = vmatprep.subr.bf16.mxu0 %v5661_v6  ;;  %v5666_v10 = vld [vmem:[#allocation7 + $0x2a0] ss:$16 sps:$4 sm:$0xff]   ;;  %v5667_v11 = vld [vmem:[#allocation7 + $0xa4] ss:$16 sps:$4 sm:$0xff]   ;;  %v198_v52 = vld [vmem:[#allocation4 + $0x8] sm:$0xff] }
  0x87   :  { %899 = vmatpush1.bf16.msra.mxu1 %v842_v9  ;;  %v5669_v12 = vld [vmem:[#allocation7 + $0x284] ss:$16 sps:$4 sm:$0xff]   ;;  %v5671_v13 = vld [vmem:[#allocation7 + $0xa0] ss:$16 sps:$4 sm:$0xff]   ;;  %v5707_v39 = vld [vmem:[#allocation7 + $0xcc] ss:$16 sps:$4 sm:$0xff]  }
  0x88   :  { %900 = vmatprep.subr.bf16.mxu1 %v5663_v7  ;;  %v5673_v14 = vld [vmem:[#allocation7 + $0x84] ss:$16 sps:$4 sm:$0xff]   ;;  %v5672_v15 = vld [vmem:[#allocation7 + $0x280] ss:$16 sps:$4 sm:$0xff]   ;;  %v5705_v42 = vld [vmem:[#allocation7 + $0xc8] ss:$16 sps:$4 sm:$0xff]  }
  0x89   :  { %856 = vmatpush1.bf16.msra.mxu0 %v5665_v8  ;;  %v5675_v16 = vld [vmem:[#allocation7 + $0x264] ss:$16 sps:$4 sm:$0xff]   ;;  %v5677_v17 = vld [vmem:[#allocation7 + $0x80] ss:$16 sps:$4 sm:$0xff]   ;;  %v5713_v43 = vld [vmem:[#allocation7 + $0xac] ss:$16 sps:$4 sm:$0xff]  }
  0x8a   :  { %857 = vmatprep.subr.bf16.mxu0 %v5667_v11  ;;  %v5679_v18 = vld [vmem:[#allocation7 + $0x64] ss:$16 sps:$4 sm:$0xff]   ;;  %v5678_v19 = vld [vmem:[#allocation7 + $0x260] ss:$16 sps:$4 sm:$0xff]   ;;  %v5711_v46 = vld [vmem:[#allocation7 + $0xa8] ss:$16 sps:$4 sm:$0xff]  }
  0x8b   :  { %901 = vmatpush1.bf16.msra.mxu1 %v5666_v10  ;;  %v5681_v20 = vld [vmem:[#allocation7 + $0x244] ss:$16 sps:$4 sm:$0xff]   ;;  %v5683_v21 = vld [vmem:[#allocation7 + $0x60] ss:$16 sps:$4 sm:$0xff]   ;;  %v5719_v47 = vld [vmem:[#allocation7 + $0x8c] ss:$16 sps:$4 sm:$0xff]  }
  0x8c   :  { %902 = vmatprep.subr.bf16.mxu1 %v5669_v12  ;;  %v5685_v22 = vld [vmem:[#allocation7 + $0x44] ss:$16 sps:$4 sm:$0xff]   ;;  %v5684_v23 = vld [vmem:[#allocation7 + $0x240] ss:$16 sps:$4 sm:$0xff]   ;;  %v5717_v50 = vld [vmem:[#allocation7 + $0x88] ss:$16 sps:$4 sm:$0xff]  }
  0x8d   :  { %858 = vmatpush1.bf16.msra.mxu0 %v5671_v13  ;;  %v5687_v24 = vld [vmem:[#allocation7 + $0x224] ss:$16 sps:$4 sm:$0xff]   ;;  %v5689_v25 = vld [vmem:[#allocation7 + $0x40] ss:$16 sps:$4 sm:$0xff]   ;;  %v5725_v51 = vld [vmem:[#allocation7 + $0x6c] ss:$16 sps:$4 sm:$0xff]  }
  0x8e   :  { %859 = vmatprep.subr.bf16.mxu0 %v5673_v14  ;;  %v5691_v26 = vld [vmem:[#allocation7 + $0x24] ss:$16 sps:$4 sm:$0xff]   ;;  %v5690_v27 = vld [vmem:[#allocation7 + $0x220] ss:$16 sps:$4 sm:$0xff]   ;;  %v5723_v57 = vld [vmem:[#allocation7 + $0x68] ss:$16 sps:$4 sm:$0xff]  }
  0x8f   :  { %903 = vmatpush1.bf16.msra.mxu1 %v5672_v15  ;;  %v5693_v28 = vld [vmem:[#allocation7 + $0x204] ss:$16 sps:$4 sm:$0xff]   ;;  %v5695_v29 = vld [vmem:[#allocation7 + $0x20] ss:$16 sps:$4 sm:$0xff]   ;;  %v5731_v58 = vld [vmem:[#allocation7 + $0x4c] ss:$16 sps:$4 sm:$0xff]  }
  0x90   :  { %904 = vmatprep.subr.bf16.mxu1 %v5675_v16  ;;  %v5696_v30 = vld [vmem:[#allocation7 + $0x200] ss:$16 sps:$4 sm:$0xff]   ;;  %v5697_v31 = vld [vmem:[#allocation7 + $0x4] ss:$16 sps:$4 sm:$0xff]   ;;  %v5729_v61 = vld [vmem:[#allocation7 + $0x48] ss:$16 sps:$4 sm:$0xff]  }
  0x91   :  { %860 = vmatpush1.bf16.msra.mxu0 %v5677_v17  ;;  %v5702_v35 = vld [vmem:[#allocation7] ss:$16 sps:$4 sm:$0xff]   ;;  %v5703_v37 = vld [vmem:[#allocation7 + $0x1e4] ss:$16 sps:$4 sm:$0xff]   ;;  %v5737_v62 = vld [vmem:[#allocation7 + $0x2c] ss:$16 sps:$4 sm:$0xff]  }
  0x92   :  { %861 = vmatprep.subr.bf16.mxu0 %v5679_v18  ;;  %v5708_v40 = vld [vmem:[#allocation7 + $0x1e0] ss:$16 sps:$4 sm:$0xff]   ;;  %v5709_v41 = vld [vmem:[#allocation7 + $0x1c4] ss:$16 sps:$4 sm:$0xff]   ;;  %v5735_v2 = vld [vmem:[#allocation7 + $0x28] ss:$16 sps:$4 sm:$0xff]  }
  0x93   :  { %905 = vmatpush1.bf16.msra.mxu1 %v5678_v19  ;;  %v5714_v44 = vld [vmem:[#allocation7 + $0x1c0] ss:$16 sps:$4 sm:$0xff]   ;;  %v5715_v45 = vld [vmem:[#allocation7 + $0x1a4] ss:$16 sps:$4 sm:$0xff]   ;;  %v5743_v3 = vld [vmem:[#allocation7 + $0xc] ss:$16 sps:$4 sm:$0xff]  }
  0x94   :  { %906 = vmatprep.subr.bf16.mxu1 %v5681_v20  ;;  %v5720_v48 = vld [vmem:[#allocation7 + $0x1a0] ss:$16 sps:$4 sm:$0xff]   ;;  %v5721_v49 = vld [vmem:[#allocation7 + $0x184] ss:$16 sps:$4 sm:$0xff]   ;;  %v5741_v4 = vld [vmem:[#allocation7 + $0x8] ss:$16 sps:$4 sm:$0xff]  }
  0x95   :  { %862 = vmatpush1.bf16.msra.mxu0 %v5683_v21  ;;  %v201_v53 = vld [vmem:[#allocation4 + $0x20] sm:$0xff]  ;;  %v385_v7 = vld [vmem:[#allocation7 + $0x2c8] sm:$0x77]  ;;  %v200_v11 = vld [vmem:[#allocation4 + $0x18] sm:$0xff] }
  0x96   :  { %863 = vmatprep.subr.bf16.mxu0 %v5685_v22  ;;  %v5726_v54 = vld [vmem:[#allocation7 + $0x180] ss:$16 sps:$4 sm:$0xff]   ;;  %v204_v55 = vpack.c.bf16 %v201_v53, %v198_v52  ;;  %v5727_v56 = vld [vmem:[#allocation7 + $0x164] ss:$16 sps:$4 sm:$0xff]   ;;  %v5749_v8 = vld [vmem:[#allocation7 + $0x1ec] ss:$16 sps:$4 sm:$0xff]   ;;  %v5076_v12 = vcombine.high %v385_v7, %v385_v7  ;;  %v5075_v13 = vcombine.low %v385_v7, %v385_v7 }
  0x97   :  { %907 = vmatpush1.bf16.msra.mxu1 %v5684_v23  ;;  %v5732_v59 = vld [vmem:[#allocation7 + $0x160] ss:$16 sps:$4 sm:$0xff]   ;;  %v5733_v60 = vld [vmem:[#allocation7 + $0x144] ss:$16 sps:$4 sm:$0xff]   ;;  %v5747_v14 = vld [vmem:[#allocation7 + $0x1e8] ss:$16 sps:$4 sm:$0xff]  }
  0x98   :  { %908 = vmatprep.subr.bf16.mxu1 %v5687_v24  ;;  %885 = vmatprep.mubr.bf16.mxu0 %v204_v55  ;;  %v5738_v63 = vld [vmem:[#allocation7 + $0x140] ss:$16 sps:$4 sm:$0xff]   ;;  %v5739_v1 = vld [vmem:[#allocation7 + $0x124] ss:$16 sps:$4 sm:$0xff]   ;;  %v5753_v16 = vld [vmem:[#allocation7 + $0x1cc] ss:$16 sps:$4 sm:$0xff]  }
  0x99   :  { %864 = vmatpush1.bf16.msra.mxu0 %v5689_v25  ;;  %v5744_v5 = vld [vmem:[#allocation7 + $0x120] ss:$16 sps:$4 sm:$0xff]   ;;  %v5745_v6 = vld [vmem:[#allocation7 + $0x104] ss:$16 sps:$4 sm:$0xff]   ;;  %v848_v17 = vsel %vm840_vm0, %v5075_v13, 0 }
  0x9a   :  { %865 = vmatprep.subr.bf16.mxu0 %v5691_v26  ;;  %v5750_v9 = vld [vmem:[#allocation7 + $0x100] ss:$16 sps:$4 sm:$0xff]   ;;  %v5761_v18 = vld [vmem:[#allocation7 + $0x2ac] ss:$16 sps:$4 sm:$0xff]   ;;  %v5751_v19 = vld [vmem:[#allocation7 + $0x1c8] ss:$16 sps:$4 sm:$0xff]  }
  0x9b   :  { %909 = vmatpush1.bf16.msra.mxu1 %v5690_v27  ;;  %v197_v10 = vld [vmem:[#allocation4] sm:$0xff]  ;;  %v5758_v20 = vld [vmem:[#allocation7 + $0x1ac] ss:$16 sps:$4 sm:$0xff]   ;;  %v5759_v21 = vld [vmem:[#allocation7 + $0x2a8] ss:$16 sps:$4 sm:$0xff]  }
  0x9c   :  { %910 = vmatprep.subr.bf16.mxu1 %v5693_v28  ;;  %v6917_v15 = vpack.c.bf16 %v200_v11, %v197_v10  ;;  %v5767_v22 = vld [vmem:[#allocation7 + $0x28c] ss:$16 sps:$4 sm:$0xff]   ;;  %v5756_v23 = vld [vmem:[#allocation7 + $0x1a8] ss:$16 sps:$4 sm:$0xff]   ;;  %v5797_v52 = vld [vmem:[#allocation6 + $0xc0] ss:$16 sps:$4 sm:$0xff]  }
  0x9d   :  { %866 = vmatpush1.bf16.msra.mxu0 %v5695_v29  ;;  %v5764_v24 = vld [vmem:[#allocation7 + $0x18c] ss:$16 sps:$4 sm:$0xff]   ;;  %v5765_v25 = vld [vmem:[#allocation7 + $0x288] ss:$16 sps:$4 sm:$0xff]   ;;  %v5805_v53 = vld [vmem:[#allocation6 + $0xa4] ss:$16 sps:$4 sm:$0xff]  }
  0x9e   :  { %867 = vmatprep.subr.bf16.mxu0 %v5697_v31  ;;  %v5773_v26 = vld [vmem:[#allocation7 + $0x26c] ss:$16 sps:$4 sm:$0xff]   ;;  %v5762_v27 = vld [vmem:[#allocation7 + $0x188] ss:$16 sps:$4 sm:$0xff]   ;;  %v5821_v7 = vld [vmem:[#allocation6 + $0x40] ss:$16 sps:$4 sm:$0xff]  }
  0x9f   :  { %911 = vmatpush1.bf16.msra.mxu1 %v5696_v30  ;;  %v5770_v28 = vld [vmem:[#allocation7 + $0x16c] ss:$16 sps:$4 sm:$0xff]   ;;  %v5771_v29 = vld [vmem:[#allocation7 + $0x268] ss:$16 sps:$4 sm:$0xff]   ;;  %v5827_v10 = vld [vmem:[#allocation6 + $0x20] ss:$16 sps:$4 sm:$0xff]  }
  0xa0   :  { %939 = vmatprep.subr.bf16.mxu1 %v5701_v34  ;;  %v5779_v30 = vld [vmem:[#allocation7 + $0x24c] ss:$16 sps:$4 sm:$0xff]   ;;  %v5768_v31 = vld [vmem:[#allocation7 + $0x168] ss:$16 sps:$4 sm:$0xff]   ;;  %v5832_v11 = vld [vmem:[#allocation6 + $0x204] ss:$16 sps:$4 sm:$0xff]  }
  0xa1   :  { %868 = vmatpush1.bf16.msra.mxu0 %v5702_v35  ;;  %v5776_v32 = vld [vmem:[#allocation7 + $0x14c] ss:$16 sps:$4 sm:$0xff]   ;;  %v5777_v33 = vld [vmem:[#allocation7 + $0x248] ss:$16 sps:$4 sm:$0xff]   ;;  %v5835_v13 = vld [vmem:[#allocation6 + $0x4] ss:$16 sps:$4 sm:$0xff]  }
  0xa2   :  { %5078 = vmatmul.mubr.msk.bf16.vlgmr.msra.gmra.mxu1 %vm836_vm1, %v6913_v36  ;;  %869 = vmatprep.subr.bf16.mxu0 %v5703_v37  ;;  %v5785_v34 = vld [vmem:[#allocation7 + $0x22c] ss:$16 sps:$4 sm:$0xff]   ;;  %v5774_v35 = vld [vmem:[#allocation7 + $0x148] ss:$16 sps:$4 sm:$0xff]  }
  0xa3   :  { %940 = vmatpush1.bf16.msra.mxu1 %v5699_v38  ;;  %971 = vmatprep.mubr.bf16.mxu1 %v204_v55  ;;  %v5782_v37 = vld [vmem:[#allocation7 + $0x12c] ss:$16 sps:$4 sm:$0xff]   ;;  %v5783_v38 = vld [vmem:[#allocation7 + $0x228] ss:$16 sps:$4 sm:$0xff]   ;;  %v5808_v55 = vld [vmem:[#allocation6 + $0x284] ss:$16 sps:$4 sm:$0xff]  }
  0xa4   :  { %941 = vmatprep.subr.bf16.mxu1 %v5707_v39  ;;  %v5791_v39 = vld [vmem:[#allocation7 + $0x20c] ss:$16 sps:$4 sm:$0xff]  }
  0xa5   :  { %870 = vmatpush2.bf16.msra.mxu0 %v5708_v40  ;;  %v5780_v40 = vld [vmem:[#allocation7 + $0x128] ss:$16 sps:$4 sm:$0xff]  }
  0xa6   :  { %871 = vmatprep.subr.bf16.mxu0 %v5709_v41  ;;  %v5788_v41 = vld [vmem:[#allocation7 + $0x10c] ss:$16 sps:$4 sm:$0xff]  }
  0xa7   :  { %942 = vmatpush1.bf16.msra.mxu1 %v5705_v42  ;;  %v5789_v42 = vld [vmem:[#allocation7 + $0x208] ss:$16 sps:$4 sm:$0xff]  }
  0xa8   :  { %943 = vmatprep.subr.bf16.mxu1 %v5713_v43  ;;  %v294_v43 = vld [vmem:[#allocation6 + $0x2c0] sm:$0x77] }
  0xa9   :  { %872 = vmatpush2.bf16.msra.mxu0 %v5714_v44  ;;  %v5794_v44 = vld [vmem:[#allocation6 + $0xe4] ss:$16 sps:$4 sm:$0xff]  }
  0xaa   :  { %873 = vmatprep.subr.bf16.mxu0 %v5715_v45  ;;  %v5786_v45 = vld [vmem:[#allocation7 + $0x108] ss:$16 sps:$4 sm:$0xff]  }
  0xab   :  { %944 = vmatpush1.bf16.msra.mxu1 %v5711_v46  ;;  %v5170_v46 = vcombine.high %v294_v43, %v294_v43 }
  0xac   :  { %945 = vmatprep.subr.bf16.mxu1 %v5719_v47  ;;  %v5169_v47 = vcombine.low %v294_v43, %v294_v43  ;;  %v5869_v43 = vld [vmem:[#allocation6 + $0x140] ss:$16 sps:$4 sm:$0xff]  }
  0xad   :  { %874 = vmatpush2.bf16.msra.mxu0 %v5720_v48  ;;  %v5792_v48 = vld [vmem:[#allocation6 + $0xe0] ss:$16 sps:$4 sm:$0xff]  }
  0xae   :  { %875 = vmatprep.subr.bf16.mxu0 %v5721_v49  ;;  %v5799_v49 = vld [vmem:[#allocation6 + $0xc4] ss:$16 sps:$4 sm:$0xff]  }
  0xaf   :  { %946 = vmatpush1.bf16.msra.mxu1 %v5717_v50  ;;  %v1479_v50 = vsel %vm840_vm0, %v5169_v47, 0  ;;  %v5875_v47 = vld [vmem:[#allocation6 + $0x120] ss:$16 sps:$4 sm:$0xff]  }
  0xb0   :  { %947 = vmatprep.subr.bf16.mxu1 %v5725_v51  ;;  %v5802_v51 = vld [vmem:[#allocation6 + $0x2a4] ss:$16 sps:$4 sm:$0xff]  }
  0xb1   :  { %876 = vmatpush2.bf16.msra.mxu0 %v5726_v54  ;;  %v5800_v54 = vld [vmem:[#allocation6 + $0x2a0] ss:$16 sps:$4 sm:$0xff]  }
  0xb2   :  { %877 = vmatprep.subr.bf16.mxu0 %v5727_v56  ;;  %v5803_v56 = vld [vmem:[#allocation6 + $0xa0] ss:$16 sps:$4 sm:$0xff]  }
  0xb3   :  { %948 = vmatpush1.bf16.msra.mxu1 %v5723_v57  ;;  %v5806_v57 = vld [vmem:[#allocation6 + $0x280] ss:$16 sps:$4 sm:$0xff]  }
  0xb4   :  { %949 = vmatprep.subr.bf16.mxu1 %v5731_v58  ;;  %v5814_v58 = vld [vmem:[#allocation6 + $0x264] ss:$16 sps:$4 sm:$0xff]  }
  0xb5   :  { %878 = vmatpush2.bf16.msra.mxu0 %v5732_v59  ;;  %v5809_v59 = vld [vmem:[#allocation6 + $0x80] ss:$16 sps:$4 sm:$0xff]  }
  0xb6   :  { %879 = vmatprep.subr.bf16.mxu0 %v5733_v60  ;;  %v189_v60 = vld [vmem:[#allocation2 + $0x8] sm:$0xff] }
  0xb7   :  { %950 = vmatpush1.bf16.msra.mxu1 %v5729_v61  ;;  %v5817_v61 = vld [vmem:[#allocation6 + $0x64] ss:$16 sps:$4 sm:$0xff]  }
  0xb8   :  { %951 = vmatprep.subr.bf16.mxu1 %v5737_v62  ;;  %v192_v62 = vld [vmem:[#allocation2 + $0x20] sm:$0xff] }
  0xb9   :  { %880 = vmatpush2.bf16.msra.mxu0 %v5738_v63  ;;  %v5812_v63 = vld [vmem:[#allocation6 + $0x260] ss:$16 sps:$4 sm:$0xff]  }
  0xba   :  { %881 = vmatprep.subr.bf16.mxu0 %v5739_v1  ;;  %v195_v1 = vpack.c.bf16 %v192_v62, %v189_v60  ;;  %v5887_v60 = vld [vmem:[#allocation6 + $0x1c8] ss:$16 sps:$4 sm:$0xff]   ;;  %v5894_v62 = vld [vmem:[#allocation6 + $0x1ac] ss:$16 sps:$4 sm:$0xff]  }
  0xbb   :  { %952 = vmatpush1.bf16.msra.mxu1 %v5735_v2  ;;  %v5820_v2 = vld [vmem:[#allocation6 + $0x244] ss:$16 sps:$4 sm:$0xff]  }
  0xbc   :  { %953 = vmatprep.subr.bf16.mxu1 %v5743_v3  ;;  %v5815_v3 = vld [vmem:[#allocation6 + $0x60] ss:$16 sps:$4 sm:$0xff]  }
  0xbd   :  { %882 = vmatpush2.bf16.msra.mxu0 %v5744_v5  ;;  %v5818_v5 = vld [vmem:[#allocation6 + $0x240] ss:$16 sps:$4 sm:$0xff]  }
  0xbe   :  { %883 = vmatprep.subr.bf16.mxu0 %v5745_v6  ;;  %v5826_v6 = vld [vmem:[#allocation6 + $0x224] ss:$16 sps:$4 sm:$0xff]  }
  0xbf   :  { %954 = vmatpush1.bf16.msra.mxu1 %v5741_v4  ;;  %v5823_v4 = vld [vmem:[#allocation6 + $0x44] ss:$16 sps:$4 sm:$0xff]  }
  0xc0   :  { %955 = vmatprep.subr.bf16.mxu1 %v5749_v8  ;;  %v5829_v8 = vld [vmem:[#allocation6 + $0x24] ss:$16 sps:$4 sm:$0xff]  }
  0xc1   :  { %884 = vmatpush2.bf16.msra.mxu0 %v5750_v9  ;;  %v5824_v9 = vld [vmem:[#allocation6 + $0x220] ss:$16 sps:$4 sm:$0xff]  }
  0xc2   :  { %5079 = vmatprep.subr.msk.bf16.mxu0 %vm840_vm0, %v5076_v12  ;;  %v5830_v12 = vld [vmem:[#allocation6 + $0x200] ss:$16 sps:$4 sm:$0xff]  }
  0xc3   :  { %956 = vmatpush2.bf16.msra.mxu1 %v5747_v14  ;;  %v190_v14 = vld [vmem:[#allocation2 + $0x10] sm:$0xff] }
  0xc4   :  { %886 = vmatmul.mubr.bf16.vlgmr.msra.gmra.mxu0 %v6917_v15  ;;  %957 = vmatprep.subr.bf16.mxu1 %v5753_v16  ;;  %v5838_v16 = vld [vmem:[#allocation6 + $0xec] ss:$16 sps:$4 sm:$0xff]  }
  0xc5   :  { %985 = vmatpush1.bf16.msra.mxu0 %v848_v17  ;;  %1014 = vmatprep.mubr.bf16.mxu0 %v6785_v0  ;;  %v5833_v17 = vld [vmem:[#allocation6] ss:$16 sps:$4 sm:$0xff]  }
  0xc6   :  { %986 = vmatprep.subr.bf16.mxu0 %v5761_v18  ;;  %v5836_v18 = vld [vmem:[#allocation6 + $0xe8] ss:$16 sps:$4 sm:$0xff]  }
  0xc7   :  { %958 = vmatpush2.bf16.msra.mxu1 %v5751_v19 }
  0xc8   :  { %959 = vmatprep.subr.bf16.mxu1 %v5758_v20  ;;  %v5841_v20 = vld [vmem:[#allocation6 + $0x1e4] ss:$16 sps:$4 sm:$0xff]  }
  0xc9   :  { %987 = vmatpush1.bf16.msra.mxu0 %v5759_v21  ;;  %v5839_v21 = vld [vmem:[#allocation6 + $0x1e0] ss:$16 sps:$4 sm:$0xff]  }
  0xca   :  { %988 = vmatprep.subr.bf16.mxu0 %v5767_v22  ;;  %v5844_v22 = vld [vmem:[#allocation6 + $0xcc] ss:$16 sps:$4 sm:$0xff]  }
  0xcb   :  { %960 = vmatpush2.bf16.msra.mxu1 %v5756_v23  ;;  %v5847_v23 = vld [vmem:[#allocation6 + $0x1c4] ss:$16 sps:$4 sm:$0xff]  }
  0xcc   :  { %961 = vmatprep.subr.bf16.mxu1 %v5764_v24  ;;  %v5842_v24 = vld [vmem:[#allocation6 + $0xc8] ss:$16 sps:$4 sm:$0xff]  }
  0xcd   :  { %989 = vmatpush1.bf16.msra.mxu0 %v5765_v25  ;;  %v5850_v25 = vld [vmem:[#allocation6 + $0xac] ss:$16 sps:$4 sm:$0xff]  }
  0xce   :  { %990 = vmatprep.subr.bf16.mxu0 %v5773_v26  ;;  %v5845_v26 = vld [vmem:[#allocation6 + $0x1c0] ss:$16 sps:$4 sm:$0xff]  }
  0xcf   :  { %962 = vmatpush2.bf16.msra.mxu1 %v5762_v27  ;;  %v5853_v27 = vld [vmem:[#allocation6 + $0x1a4] ss:$16 sps:$4 sm:$0xff]  }
  0xd0   :  { %963 = vmatprep.subr.bf16.mxu1 %v5770_v28  ;;  %v5848_v28 = vld [vmem:[#allocation6 + $0xa8] ss:$16 sps:$4 sm:$0xff]  }
  0xd1   :  { %991 = vmatpush1.bf16.msra.mxu0 %v5771_v29  ;;  %v5856_v29 = vld [vmem:[#allocation6 + $0x8c] ss:$16 sps:$4 sm:$0xff]  }
  0xd2   :  { %992 = vmatprep.subr.bf16.mxu0 %v5779_v30  ;;  %v5851_v30 = vld [vmem:[#allocation6 + $0x1a0] ss:$16 sps:$4 sm:$0xff]  }
  0xd3   :  { %964 = vmatpush2.bf16.msra.mxu1 %v5768_v31  ;;  %v5859_v31 = vld [vmem:[#allocation6 + $0x184] ss:$16 sps:$4 sm:$0xff]  }
  0xd4   :  { %965 = vmatprep.subr.bf16.mxu1 %v5776_v32  ;;  %v5854_v32 = vld [vmem:[#allocation6 + $0x88] ss:$16 sps:$4 sm:$0xff]  }
  0xd5   :  { %993 = vmatpush1.bf16.msra.mxu0 %v5777_v33  ;;  %v5862_v33 = vld [vmem:[#allocation6 + $0x6c] ss:$16 sps:$4 sm:$0xff]  }
  0xd6   :  { %994 = vmatprep.subr.bf16.mxu0 %v5785_v34  ;;  %v5857_v34 = vld [vmem:[#allocation6 + $0x180] ss:$16 sps:$4 sm:$0xff]  }
  0xd7   :  { %966 = vmatpush2.bf16.msra.mxu1 %v5774_v35  ;;  %v5865_v35 = vld [vmem:[#allocation6 + $0x164] ss:$16 sps:$4 sm:$0xff]  }
  0xd8   :  { %967 = vmatprep.subr.bf16.mxu1 %v5782_v37  ;;  %v5860_v37 = vld [vmem:[#allocation6 + $0x68] ss:$16 sps:$4 sm:$0xff]  }
  0xd9   :  { %995 = vmatpush1.bf16.msra.mxu0 %v5783_v38  ;;  %v5868_v38 = vld [vmem:[#allocation6 + $0x4c] ss:$16 sps:$4 sm:$0xff]  }
  0xda   :  { %996 = vmatprep.subr.bf16.mxu0 %v5791_v39  ;;  %v5863_v39 = vld [vmem:[#allocation6 + $0x160] ss:$16 sps:$4 sm:$0xff]  }
  0xdb   :  { %968 = vmatpush2.bf16.msra.mxu1 %v5780_v40  ;;  %v5871_v40 = vld [vmem:[#allocation6 + $0x144] ss:$16 sps:$4 sm:$0xff]  }
  0xdc   :  { %969 = vmatprep.subr.bf16.mxu1 %v5788_v41  ;;  %v5866_v41 = vld [vmem:[#allocation6 + $0x48] ss:$16 sps:$4 sm:$0xff]  }
  0xdd   :  { %997 = vmatpush1.bf16.msra.mxu0 %v5789_v42  ;;  %v5874_v42 = vld [vmem:[#allocation6 + $0x2c] ss:$16 sps:$4 sm:$0xff]  }
  0xde   :  { %1490 = vmatprep.subr.bf16.mxu0 %v5794_v44  ;;  %v5877_v44 = vld [vmem:[#allocation6 + $0x124] ss:$16 sps:$4 sm:$0xff]  }
  0xdf   :  { %970 = vmatpush2.bf16.msra.mxu1 %v5786_v45  ;;  %v5872_v45 = vld [vmem:[#allocation6 + $0x28] ss:$16 sps:$4 sm:$0xff]  }
  0xe0   :  { %5080 = vmatmul.mubr.msk.bf16.vlgmr.msra.gmra.mxu0 %vm836_vm1, %v6913_v36  ;;  %5173 = vmatprep.subr.msk.bf16.mxu1 %vm840_vm0, %v5170_v46  ;;  %v5811_v36 = vld [vmem:[#allocation6 + $0x84] ss:$16 sps:$4 sm:$0xff]   ;;  %v5880_v46 = vld [vmem:[#allocation6 + $0xc] ss:$16 sps:$4 sm:$0xff]  }
  0xe1   :  { %1491 = vmatpush1.bf16.msra.mxu0 %v5792_v48  ;;  %1522 = vmatprep.mubr.bf16.mxu0 %v195_v1  ;;  %v5883_v48 = vld [vmem:[#allocation6 + $0x104] ss:$16 sps:$4 sm:$0xff]  }
  0xe2   :  { %972 = vmatmul.mubr.bf16.vlgmr.msra.gmra.mxu1 %v6917_v15  ;;  %1492 = vmatprep.subr.bf16.mxu0 %v5799_v49  ;;  %v193_v15 = vld [vmem:[#allocation2 + $0x28] sm:$0xff] }
  0xe3   :  { %1536 = vmatpush1.bf16.msra.mxu1 %v1479_v50  ;;  %1565 = vmatprep.mubr.bf16.mxu1 %v6785_v0  ;;  %v6929_v19 = vpack.c.bf16 %v193_v15, %v190_v14  ;;  %v5878_v49 = vld [vmem:[#allocation6 + $0x8] ss:$16 sps:$4 sm:$0xff]   ;;  %v5918_v14 = vld [vmem:[#allocation6 + $0x12c] ss:$16 sps:$4 sm:$0xff]  }
  0xe4   :  { %1537 = vmatprep.subr.bf16.mxu1 %v5802_v51  ;;  %v295_v50 = vld [vmem:[#allocation6 + $0x2c8] sm:$0x77] }
  0xe5   :  { %1493 = vmatpush1.bf16.msra.mxu0 %v5797_v52  ;;  %v5886_v51 = vld [vmem:[#allocation6 + $0x1ec] ss:$16 sps:$4 sm:$0xff]   ;;  %v5881_v52 = vld [vmem:[#allocation6 + $0x100] ss:$16 sps:$4 sm:$0xff]   ;;  %v5919_v15 = vld [vmem:[#allocation6 + $0x228] ss:$16 sps:$4 sm:$0xff]  }
  0xe6   :  { %1494 = vmatprep.subr.bf16.mxu0 %v5805_v53  ;;  %v188_v53 = vld [vmem:[#allocation2] sm:$0xff] }
  0xe7   :  { %1538 = vmatpush1.bf16.msra.mxu1 %v5800_v54  ;;  %v191_v54 = vld [vmem:[#allocation2 + $0x18] sm:$0xff] }
  0xe8   :  { %1539 = vmatprep.subr.bf16.mxu1 %v5808_v55  ;;  %v5884_v55 = vld [vmem:[#allocation6 + $0x1e8] ss:$16 sps:$4 sm:$0xff]  }
  0xe9   :  { %1495 = vmatpush1.bf16.msra.mxu0 %v5803_v56  ;;  %v5889_v56 = vld [vmem:[#allocation6 + $0x1cc] ss:$16 sps:$4 sm:$0xff]  }
  0xea   :  { %1496 = vmatprep.subr.bf16.mxu0 %v5811_v36  ;;  %v5172_v36 = vcombine.high %v295_v50, %v295_v50 }
  0xeb   :  { %1540 = vmatpush1.bf16.msra.mxu1 %v5806_v57  ;;  %v5171_v57 = vcombine.low %v295_v50, %v295_v50  ;;  %v5963_v50 = vld [vmem:[#allocation10 + $0x1c4] ss:$16 sps:$4 sm:$0xff]  }
  0xec   :  { %1541 = vmatprep.subr.bf16.mxu1 %v5814_v58  ;;  %v6933_v58 = vpack.c.bf16 %v191_v54, %v188_v53  ;;  %v5967_v53 = vld [vmem:[#allocation10 + $0x1a0] ss:$16 sps:$4 sm:$0xff]   ;;  %v5975_v54 = vld [vmem:[#allocation10 + $0x184] ss:$16 sps:$4 sm:$0xff]  }
  0xed   :  { %1497 = vmatpush1.bf16.msra.mxu0 %v5809_v59  ;;  %v5897_v59 = vld [vmem:[#allocation6 + $0x2ac] ss:$16 sps:$4 sm:$0xff]  }
  0xee   :  { %1498 = vmatprep.subr.bf16.mxu0 %v5817_v61  ;;  %v1485_v61 = vsel %vm840_vm0, %v5171_v57, 0  ;;  %v5981_v57 = vld [vmem:[#allocation10 + $0x164] ss:$16 sps:$4 sm:$0xff]  }
  0xef   :  { %1542 = vmatpush1.bf16.msra.mxu1 %v5812_v63  ;;  %v5895_v63 = vld [vmem:[#allocation6 + $0x2a8] ss:$16 sps:$4 sm:$0xff]  }
  0xf0   :  { %1543 = vmatprep.subr.bf16.mxu1 %v5820_v2  ;;  %v5892_v2 = vld [vmem:[#allocation6 + $0x1a8] ss:$16 sps:$4 sm:$0xff]  }
  0xf1   :  { %1499 = vmatpush1.bf16.msra.mxu0 %v5815_v3  ;;  %v5900_v3 = vld [vmem:[#allocation6 + $0x18c] ss:$16 sps:$4 sm:$0xff]  }
  0xf2   :  { %1500 = vmatprep.subr.bf16.mxu0 %v5823_v4  ;;  %v5901_v4 = vld [vmem:[#allocation6 + $0x288] ss:$16 sps:$4 sm:$0xff]  }
  0xf3   :  { %1544 = vmatpush1.bf16.msra.mxu1 %v5818_v5  ;;  %v5909_v5 = vld [vmem:[#allocation6 + $0x26c] ss:$16 sps:$4 sm:$0xff]  }
  0xf4   :  { %1545 = vmatprep.subr.bf16.mxu1 %v5826_v6  ;;  %v5898_v6 = vld [vmem:[#allocation6 + $0x188] ss:$16 sps:$4 sm:$0xff]  }
  0xf5   :  { %1501 = vmatpush1.bf16.msra.mxu0 %v5821_v7  ;;  %v5906_v7 = vld [vmem:[#allocation6 + $0x16c] ss:$16 sps:$4 sm:$0xff]  }
  0xf6   :  { %1502 = vmatprep.subr.bf16.mxu0 %v5829_v8  ;;  %v5907_v8 = vld [vmem:[#allocation6 + $0x268] ss:$16 sps:$4 sm:$0xff]  }
  0xf7   :  { %1546 = vmatpush1.bf16.msra.mxu1 %v5824_v9  ;;  %v5904_v9 = vld [vmem:[#allocation6 + $0x168] ss:$16 sps:$4 sm:$0xff]  }
  0xf8   :  { %1547 = vmatprep.subr.bf16.mxu1 %v5832_v11  ;;  %v5915_v11 = vld [vmem:[#allocation6 + $0x24c] ss:$16 sps:$4 sm:$0xff]  }
  0xf9   :  { %1503 = vmatpush1.bf16.msra.mxu0 %v5827_v10  ;;  %v5912_v10 = vld [vmem:[#allocation6 + $0x14c] ss:$16 sps:$4 sm:$0xff]  }
  0xfa   :  { %1504 = vmatprep.subr.bf16.mxu0 %v5835_v13  ;;  %v5910_v13 = vld [vmem:[#allocation6 + $0x148] ss:$16 sps:$4 sm:$0xff]  }
  0xfb   :  { %1548 = vmatpush1.bf16.msra.mxu1 %v5830_v12  ;;  %v5921_v12 = vld [vmem:[#allocation6 + $0x22c] ss:$16 sps:$4 sm:$0xff]  }
  0xfc   :  { %1576 = vmatprep.subr.bf16.mxu1 %v5838_v16  ;;  %v5927_v16 = vld [vmem:[#allocation6 + $0x20c] ss:$16 sps:$4 sm:$0xff]  }
  0xfd   :  { %1505 = vmatpush1.bf16.msra.mxu0 %v5833_v17  ;;  %v5916_v17 = vld [vmem:[#allocation6 + $0x128] ss:$16 sps:$4 sm:$0xff]  }
  0xfe   :  { %5174 = vmatmul.mubr.msk.bf16.vlgmr.msra.gmra.mxu1 %vm836_vm1, %v6929_v19  ;;  %1506 = vmatprep.subr.bf16.mxu0 %v5841_v20  ;;  %v5925_v20 = vld [vmem:[#allocation6 + $0x208] ss:$16 sps:$4 sm:$0xff]  }
  0xff   :  { %1577 = vmatpush1.bf16.msra.mxu1 %v5836_v18  ;;  %1608 = vmatprep.mubr.bf16.mxu1 %v195_v1  ;;  %v5903_v1 = vld [vmem:[#allocation6 + $0x28c] ss:$16 sps:$4 sm:$0xff]  }
 0x100   :  { %1578 = vmatprep.subr.bf16.mxu1 %v5844_v22  ;;  %v5924_v18 = vld [vmem:[#allocation6 + $0x10c] ss:$16 sps:$4 sm:$0xff]   ;;  %v5922_v22 = vld [vmem:[#allocation6 + $0x108] ss:$16 sps:$4 sm:$0xff]  }
 0x101   :  { %1507 = vmatpush2.bf16.msra.mxu0 %v5839_v21  ;;  %v5930_v21 = vld [vmem:[#allocation10 + $0xe4] ss:$16 sps:$4 sm:$0xff]  }
 0x102   :  { %1508 = vmatprep.subr.bf16.mxu0 %v5847_v23  ;;  %v5928_v23 = vld [vmem:[#allocation10 + $0xe0] ss:$16 sps:$4 sm:$0xff]  }
 0x103   :  { %1579 = vmatpush1.bf16.msra.mxu1 %v5842_v24  ;;  %v5933_v24 = vld [vmem:[#allocation10 + $0xc4] ss:$16 sps:$4 sm:$0xff]  }
 0x104   :  { %1580 = vmatprep.subr.bf16.mxu1 %v5850_v25  ;;  %v5931_v25 = vld [vmem:[#allocation10 + $0xc0] ss:$16 sps:$4 sm:$0xff]  }
 0x105   :  { %1509 = vmatpush2.bf16.msra.mxu0 %v5845_v26  ;;  %v5936_v26 = vld [vmem:[#allocation10 + $0xa4] ss:$16 sps:$4 sm:$0xff]  }
 0x106   :  { %1510 = vmatprep.subr.bf16.mxu0 %v5853_v27  ;;  %v5934_v27 = vld [vmem:[#allocation10 + $0xa0] ss:$16 sps:$4 sm:$0xff]  }
 0x107   :  { %1581 = vmatpush1.bf16.msra.mxu1 %v5848_v28  ;;  %v5939_v28 = vld [vmem:[#allocation10 + $0x84] ss:$16 sps:$4 sm:$0xff]  }
 0x108   :  { %1582 = vmatprep.subr.bf16.mxu1 %v5856_v29  ;;  %v5937_v29 = vld [vmem:[#allocation10 + $0x80] ss:$16 sps:$4 sm:$0xff]  }
 0x109   :  { %1511 = vmatpush2.bf16.msra.mxu0 %v5851_v30  ;;  %v5942_v30 = vld [vmem:[#allocation10 + $0x64] ss:$16 sps:$4 sm:$0xff]  }
 0x10a   :  { %1512 = vmatprep.subr.bf16.mxu0 %v5859_v31  ;;  %v5952_v31 = vld [vmem:[#allocation10 + $0x2e0] ss:$16 sps:$4 sm:$0xff]  }
 0x10b   :  { %1583 = vmatpush1.bf16.msra.mxu1 %v5854_v32  ;;  %v5954_v32 = vld [vmem:[#allocation10 + $0x2e4] ss:$16 sps:$4 sm:$0xff]  }
 0x10c   :  { %1584 = vmatprep.subr.bf16.mxu1 %v5862_v33  ;;  %v5960_v33 = vld [vmem:[#allocation10 + $0x2c4] ss:$16 sps:$4 sm:$0xff]  }
 0x10d   :  { %1513 = vmatpush2.bf16.msra.mxu0 %v5857_v34  ;;  %v5958_v34 = vld [vmem:[#allocation10 + $0x2c0] ss:$16 sps:$4 sm:$0xff]  }
 0x10e   :  { %1514 = vmatprep.subr.bf16.mxu0 %v5865_v35  ;;  %v5945_v35 = vld [vmem:[#allocation10 + $0x44] ss:$16 sps:$4 sm:$0xff]  }
 0x10f   :  { %1585 = vmatpush1.bf16.msra.mxu1 %v5860_v37  ;;  %v5966_v37 = vld [vmem:[#allocation10 + $0x2a4] ss:$16 sps:$4 sm:$0xff]  }
 0x110   :  { %1586 = vmatprep.subr.bf16.mxu1 %v5868_v38  ;;  %v5943_v38 = vld [vmem:[#allocation10 + $0x40] ss:$16 sps:$4 sm:$0xff]  }
 0x111   :  { %1515 = vmatpush2.bf16.msra.mxu0 %v5863_v39  ;;  %v5964_v39 = vld [vmem:[#allocation10 + $0x2a0] ss:$16 sps:$4 sm:$0xff]  }
 0x112   :  { %1516 = vmatprep.subr.bf16.mxu0 %v5871_v40  ;;  %v5948_v40 = vld [vmem:[#allocation10 + $0x24] ss:$16 sps:$4 sm:$0xff]  }
 0x113   :  { %1587 = vmatpush1.bf16.msra.mxu1 %v5866_v41  ;;  %v5972_v41 = vld [vmem:[#allocation10 + $0x284] ss:$16 sps:$4 sm:$0xff]  }
 0x114   :  { %1588 = vmatprep.subr.bf16.mxu1 %v5874_v42  ;;  %v5946_v42 = vld [vmem:[#allocation10 + $0x20] ss:$16 sps:$4 sm:$0xff]  }
 0x115   :  { %1517 = vmatpush2.bf16.msra.mxu0 %v5869_v43  ;;  %v5970_v43 = vld [vmem:[#allocation10 + $0x280] ss:$16 sps:$4 sm:$0xff]  }
 0x116   :  { %1518 = vmatprep.subr.bf16.mxu0 %v5877_v44  ;;  %v5951_v44 = vld [vmem:[#allocation10 + $0x4] ss:$16 sps:$4 sm:$0xff]  }
 0x117   :  { %1589 = vmatpush1.bf16.msra.mxu1 %v5872_v45  ;;  %v5978_v45 = vld [vmem:[#allocation10 + $0x264] ss:$16 sps:$4 sm:$0xff]  }
 0x118   :  { %1590 = vmatprep.subr.bf16.mxu1 %v5880_v46  ;;  %v5949_v46 = vld [vmem:[#allocation10] ss:$16 sps:$4 sm:$0xff]  }
 0x119   :  { %1519 = vmatpush2.bf16.msra.mxu0 %v5875_v47  ;;  %v5976_v47 = vld [vmem:[#allocation10 + $0x260] ss:$16 sps:$4 sm:$0xff]  }
 0x11a   :  { %1520 = vmatprep.subr.bf16.mxu0 %v5883_v48  ;;  %v5957_v48 = vld [vmem:[#allocation10 + $0x1e4] ss:$16 sps:$4 sm:$0xff]  }
 0x11b   :  { %1591 = vmatpush1.bf16.msra.mxu1 %v5878_v49  ;;  %v5955_v49 = vld [vmem:[#allocation10 + $0x1e0] ss:$16 sps:$4 sm:$0xff]  }
 0x11c   :  { %1592 = vmatprep.subr.bf16.mxu1 %v5886_v51  ;;  %v5961_v51 = vld [vmem:[#allocation10 + $0x1c0] ss:$16 sps:$4 sm:$0xff]  }
 0x11d   :  { %1521 = vmatpush2.bf16.msra.mxu0 %v5881_v52  ;;  %v5969_v52 = vld [vmem:[#allocation10 + $0x1a4] ss:$16 sps:$4 sm:$0xff]  }
 0x11e   :  { %5175 = vmatprep.subr.msk.bf16.mxu0 %vm840_vm0, %v5172_v36  ;;  %v5973_v36 = vld [vmem:[#allocation10 + $0x180] ss:$16 sps:$4 sm:$0xff]  }
 0x11f   :  { %1593 = vmatpush2.bf16.msra.mxu1 %v5884_v55  ;;  %v5984_v55 = vld [vmem:[#allocation10 + $0x244] ss:$16 sps:$4 sm:$0xff]  }
 0x120   :  { %1523 = vmatmul.mubr.bf16.vlgmr.msra.gmra.mxu0 %v6933_v58  ;;  %1594 = vmatprep.subr.bf16.mxu1 %v5889_v56  ;;  %v5982_v56 = vld [vmem:[#allocation10 + $0x240] ss:$16 sps:$4 sm:$0xff]  }
 0x121   :  { %1622 = vmatpush1.bf16.msra.mxu0 %v1485_v61  ;;  %1651 = vmatprep.mubr.bf16.mxu0 %v6785_v0  ;;  %v5913_v0 = vld [vmem:[#allocation6 + $0x248] ss:$16 sps:$4 sm:$0xff]  }
 0x122   :  { %1623 = vmatprep.subr.bf16.mxu0 %v5897_v59  ;;  %v5988_v59 = vld [vmem:[#allocation10 + $0x220] ss:$16 sps:$4 sm:$0xff]   ;;  %v5987_v61 = vld [vmem:[#allocation10 + $0x144] ss:$16 sps:$4 sm:$0xff]  }
 0x123   :  { %1595 = vmatpush2.bf16.msra.mxu1 %v5887_v60  ;;  %v5979_v60 = vld [vmem:[#allocation10 + $0x160] ss:$16 sps:$4 sm:$0xff]  }
 0x124   :  { %1596 = vmatprep.subr.bf16.mxu1 %v5894_v62  ;;  %v5996_v62 = vld [vmem:[#allocation10 + $0x204] ss:$16 sps:$4 sm:$0xff]  }
 0x125   :  { %1624 = vmatpush1.bf16.msra.mxu0 %v5895_v63  ;;  %v5994_v63 = vld [vmem:[#allocation10 + $0x200] ss:$16 sps:$4 sm:$0xff]  }
 0x126   :  { %1625 = vmatprep.subr.bf16.mxu0 %v5903_v1  ;;  %v5985_v1 = vld [vmem:[#allocation10 + $0x140] ss:$16 sps:$4 sm:$0xff]  }
 0x127   :  { %1597 = vmatpush2.bf16.msra.mxu1 %v5892_v2  ;;  %v5993_v2 = vld [vmem:[#allocation10 + $0x124] ss:$16 sps:$4 sm:$0xff]  }
 0x128   :  { %1598 = vmatprep.subr.bf16.mxu1 %v5900_v3  ;;  %v6000_v3 = vld [vmem:[#allocation10 + $0x3e0] ss:$16 sps:$4 sm:$0xff]  }
 0x129   :  { %1626 = vmatpush1.bf16.msra.mxu0 %v5901_v4  ;;  %v6002_v4 = vld [vmem:[#allocation10 + $0x3e4] ss:$16 sps:$4 sm:$0xff]  }
 0x12a   :  { %1627 = vmatprep.subr.bf16.mxu0 %v5909_v5  ;;  %v5991_v5 = vld [vmem:[#allocation10 + $0x120] ss:$16 sps:$4 sm:$0xff]  }
 0x12b   :  { %1599 = vmatpush2.bf16.msra.mxu1 %v5898_v6  ;;  %v5999_v6 = vld [vmem:[#allocation10 + $0x104] ss:$16 sps:$4 sm:$0xff]  }
 0x12c   :  { %1600 = vmatprep.subr.bf16.mxu1 %v5906_v7  ;;  %v6003_v7 = vld [vmem:[#allocation10 + $0x3c0] ss:$16 sps:$4 sm:$0xff]  }
 0x12d   :  { %1628 = vmatpush1.bf16.msra.mxu0 %v5907_v8  ;;  %v6005_v8 = vld [vmem:[#allocation10 + $0x3c4] ss:$16 sps:$4 sm:$0xff]  }
 0x12e   :  { %1629 = vmatprep.subr.bf16.mxu0 %v5915_v11  ;;  %v6008_v11 = vld [vmem:[#allocation10 + $0xec] ss:$16 sps:$4 sm:$0xff]  }
 0x12f   :  { %1601 = vmatpush2.bf16.msra.mxu1 %v5904_v9  ;;  %v5997_v9 = vld [vmem:[#allocation10 + $0x100] ss:$16 sps:$4 sm:$0xff]  }
 0x130   :  { %1602 = vmatprep.subr.bf16.mxu1 %v5912_v10  ;;  %v6011_v10 = vld [vmem:[#allocation10 + $0x3a4] ss:$16 sps:$4 sm:$0xff]  }
 0x131   :  { %1630 = vmatpush1.bf16.msra.mxu0 %v5913_v0  ;;  %v6009_v0 = vld [vmem:[#allocation10 + $0x3a0] ss:$16 sps:$4 sm:$0xff]  }
 0x132   :  { %1631 = vmatprep.subr.bf16.mxu0 %v5921_v12  ;;  %v6017_v12 = vld [vmem:[#allocation10 + $0x384] ss:$16 sps:$4 sm:$0xff]  }
 0x133   :  { %1603 = vmatpush2.bf16.msra.mxu1 %v5910_v13  ;;  %v6015_v13 = vld [vmem:[#allocation10 + $0x380] ss:$16 sps:$4 sm:$0xff]  }
 0x134   :  { %1604 = vmatprep.subr.bf16.mxu1 %v5918_v14  ;;  %v6023_v14 = vld [vmem:[#allocation10 + $0x364] ss:$16 sps:$4 sm:$0xff]  }
 0x135   :  { %1632 = vmatpush1.bf16.msra.mxu0 %v5919_v15  ;;  %v6021_v15 = vld [vmem:[#allocation10 + $0x360] ss:$16 sps:$4 sm:$0xff]  }
 0x136   :  { %1633 = vmatprep.subr.bf16.mxu0 %v5927_v16  ;;  %v6029_v16 = vld [vmem:[#allocation10 + $0x344] ss:$16 sps:$4 sm:$0xff]  }
 0x137   :  { %1605 = vmatpush2.bf16.msra.mxu1 %v5916_v17  ;;  %v6027_v17 = vld [vmem:[#allocation10 + $0x340] ss:$16 sps:$4 sm:$0xff]  }
 0x138   :  { %1606 = vmatprep.subr.bf16.mxu1 %v5924_v18  ;;  %v6035_v18 = vld [vmem:[#allocation10 + $0x324] ss:$16 sps:$4 sm:$0xff]  }
 0x139   :  { %1634 = vmatpush1.bf16.msra.mxu0 %v5925_v20  ;;  %v6033_v20 = vld [vmem:[#allocation10 + $0x320] ss:$16 sps:$4 sm:$0xff]  }
 0x13a   :  { %2494 = vmatprep.subr.bf16.mxu0 %v5930_v21  ;;  %v6041_v21 = vld [vmem:[#allocation10 + $0x304] ss:$16 sps:$4 sm:$0xff]  }
 0x13b   :  { %1607 = vmatpush2.bf16.msra.mxu1 %v5922_v22  ;;  %v6039_v22 = vld [vmem:[#allocation10 + $0x300] ss:$16 sps:$4 sm:$0xff]  }
 0x13c   :  { %5176 = vmatmul.mubr.msk.bf16.vlgmr.msra.gmra.mxu0 %vm836_vm1, %v6929_v19  ;;  %2537 = vmatprep.subr.bf16.mxu1 %v5954_v32  ;;  %v5940_v19 = vld [vmem:[#allocation10 + $0x60] ss:$16 sps:$4 sm:$0xff]  }
 0x13d   :  { %2495 = vmatpush1.bf16.msra.mxu0 %v5928_v23  ;;  %v6050_v23 = vld [vmem:[#allocation10 + $0x2ec] ss:$16 sps:$4 sm:$0xff]  }
 0x13e   :  { %1609 = vmatmul.mubr.bf16.vlgmr.msra.gmra.mxu1 %v6933_v58  ;;  %2496 = vmatprep.subr.bf16.mxu0 %v5933_v24  ;;  %v5990_v58 = vld [vmem:[#allocation10 + $0x224] ss:$16 sps:$4 sm:$0xff]  }
 0x13f   :  { %2538 = vmatpush1.bf16.msra.mxu1 %v5952_v31 }
 0x140   :  { %2539 = vmatprep.subr.bf16.mxu1 %v5960_v33 }
 0x141   :  { %2497 = vmatpush1.bf16.msra.mxu0 %v5931_v25 }
 0x142   :  { %2498 = vmatprep.subr.bf16.mxu0 %v5936_v26 }
 0x143   :  { %2540 = vmatpush1.bf16.msra.mxu1 %v5958_v34 }
 0x144   :  { %2541 = vmatprep.subr.bf16.mxu1 %v5966_v37 }
 0x145   :  { %2499 = vmatpush1.bf16.msra.mxu0 %v5934_v27 }
 0x146   :  { %2500 = vmatprep.subr.bf16.mxu0 %v5939_v28 }
 0x147   :  { %2542 = vmatpush1.bf16.msra.mxu1 %v5964_v39  ;;  %v1664_v39 = vlaneseq }
 0x148   :  { %2543 = vmatprep.subr.bf16.mxu1 %v5972_v41 }
 0x149   :  { %2501 = vmatpush1.bf16.msra.mxu0 %v5937_v29 }
 0x14a   :  { %2502 = vmatprep.subr.bf16.mxu0 %v5942_v30 }
 0x14b   :  { %2544 = vmatpush1.bf16.msra.mxu1 %v5970_v43 }
 0x14c   :  { %2545 = vmatprep.subr.bf16.mxu1 %v5978_v45 }
 0x14d   :  { %2503 = vmatpush1.bf16.msra.mxu0 %v5940_v19 }
 0x14e   :  { %2504 = vmatprep.subr.bf16.mxu0 %v5945_v35 }
 0x14f   :  { %2546 = vmatpush1.bf16.msra.mxu1 %v5976_v47 }
 0x150   :  { %2547 = vmatprep.subr.bf16.mxu1 %v5984_v55 }
 0x151   :  { %2505 = vmatpush1.bf16.msra.mxu0 %v5943_v38 }
 0x152   :  { %2506 = vmatprep.subr.bf16.mxu0 %v5948_v40 }
 0x153   :  { %2548 = vmatpush1.bf16.msra.mxu1 %v5982_v56 }
 0x154   :  { %2549 = vmatprep.subr.bf16.mxu1 %v5990_v58 }
 0x155   :  { %2507 = vmatpush1.bf16.msra.mxu0 %v5946_v42  ;;  %v1665_v42 = vshrl.u32 %v1664_v39, 7 }
 0x156   :  { %2508 = vmatprep.subr.bf16.mxu0 %v5951_v44 }
 0x157   :  { %2550 = vmatpush1.bf16.msra.mxu1 %v5988_v59  ;;  %v6956_v47 = vsub.s32 1, %v1665_v42 }
 0x158   :  { %2551 = vmatprep.subr.bf16.mxu1 %v5996_v62 }
 0x159   :  { %2509 = vmatpush1.bf16.msra.mxu0 %v5949_v46 }
 0x15a   :  { %2510 = vmatprep.subr.bf16.mxu0 %v5957_v48 }
 0x15b   :  { %2552 = vmatpush1.bf16.msra.mxu1 %v5994_v63 }
 0x15c   :  { %2553 = vmatprep.subr.bf16.mxu1 %v6002_v4 }
 0x15d   :  { %2511 = vmatpush2.bf16.msra.mxu0 %v5955_v49  ;;  %v6958_v49 = vsub.s32 0, %v1665_v42 }
 0x15e   :  { %2512 = vmatprep.subr.bf16.mxu0 %v5963_v50 }
 0x15f   :  { %2554 = vmatpush2.bf16.msra.mxu1 %v6000_v3 }
 0x160   :  { %2555 = vmatprep.subr.bf16.mxu1 %v6005_v8 }
 0x161   :  { %2513 = vmatpush2.bf16.msra.mxu0 %v5961_v51 }
 0x162   :  { %2514 = vmatprep.subr.bf16.mxu0 %v5969_v52  ;;  %v930_v24 = vpop.f32.mrf.mxu1  ;;  %v6960_v52 = vld [vmem:[#allocation9] sm:$0xf] }
 0x163   :  { %2556 = vmatpush2.bf16.msra.mxu1 %v6003_v7 }
 0x164   :  { %2557 = vmatprep.subr.bf16.mxu1 %v6011_v10  ;;  %v932_v25 = vpop.f32.mrf.mxu1 }
 0x165   :  { %2515 = vmatpush2.bf16.msra.mxu0 %v5967_v53 }
 0x166   :  { %2516 = vmatprep.subr.bf16.mxu0 %v5975_v54  ;;  %v934_v27 = vpop.f32.mrf.mxu1 }
 0x167   :  { %2558 = vmatpush2.bf16.msra.mxu1 %v6009_v0  ;;  %v6006_v0 = vld [vmem:[#allocation10 + $0xe8] ss:$16 sps:$4 sm:$0xff]  }
 0x168   :  { %2559 = vmatprep.subr.bf16.mxu1 %v6017_v12  ;;  %v936_v29 = vpop.f32.mrf.mxu1 }
 0x169   :  { %2517 = vmatpush2.bf16.msra.mxu0 %v5973_v36 }
 0x16a   :  { %2518 = vmatprep.subr.bf16.mxu0 %v5981_v57  ;;  %v1671_v57 = vrot.slane %v6960_v52, %v6956_v47 }
 0x16b   :  { %2560 = vmatpush2.bf16.msra.mxu1 %v6015_v13  ;;  %v6014_v13 = vld [vmem:[#allocation10 + $0xcc] ss:$16 sps:$4 sm:$0xff]  }
 0x16c   :  { %2561 = vmatprep.subr.bf16.mxu1 %v6023_v14  ;;  %v6012_v14 = vld [vmem:[#allocation10 + $0xc8] ss:$16 sps:$4 sm:$0xff]  }
 0x16d   :  { %2519 = vmatpush2.bf16.msra.mxu0 %v5979_v60  ;;  %v1667_v60 = vrot.slane %v6960_v52, %v6958_v49 }
 0x16e   :  { %2520 = vmatprep.subr.bf16.mxu0 %v5987_v61 }
 0x16f   :  { %2562 = vmatpush2.bf16.msra.mxu1 %v6021_v15  ;;  %v6020_v15 = vld [vmem:[#allocation10 + $0xac] ss:$16 sps:$4 sm:$0xff]  }
 0x170   :  { %2563 = vmatprep.subr.bf16.mxu1 %v6029_v16  ;;  %v6018_v16 = vld [vmem:[#allocation10 + $0xa8] ss:$16 sps:$4 sm:$0xff]  }
 0x171   :  { %2521 = vmatpush2.bf16.msra.mxu0 %v5985_v1 }
 0x172   :  { %2522 = vmatprep.subr.bf16.mxu0 %v5993_v2 }
 0x173   :  { %2564 = vmatpush2.bf16.msra.mxu1 %v6027_v17  ;;  %v6026_v17 = vld [vmem:[#allocation10 + $0x8c] ss:$16 sps:$4 sm:$0xff]  }
 0x174   :  { %2565 = vmatprep.subr.bf16.mxu1 %v6035_v18  ;;  %v6024_v18 = vld [vmem:[#allocation10 + $0x88] ss:$16 sps:$4 sm:$0xff]  }
 0x175   :  { %2523 = vmatpush2.bf16.msra.mxu0 %v5991_v5 }
 0x176   :  { %2524 = vmatprep.subr.bf16.mxu0 %v5999_v6 }
 0x177   :  { %2566 = vmatpush2.bf16.msra.mxu1 %v6033_v20 }
 0x178   :  { %2567 = vmatprep.subr.bf16.mxu1 %v6041_v21  ;;  %v6032_v21 = vld [vmem:[#allocation10 + $0x6c] ss:$16 sps:$4 sm:$0xff]  }
 0x179   :  { %2525 = vmatpush2.bf16.msra.mxu0 %v5997_v9 }
 0x17a   :  { %2580 = vmatprep.subr.bf16.mxu0 %v6008_v11 }
 0x17b   :  { %2568 = vmatpush2.bf16.msra.mxu1 %v6039_v22 }
 0x17c   :  { %2623 = vmatprep.subr.bf16.mxu1 %v6050_v23 }
 0x184   :  { %v887_v26 = vpop.f32.mrf.mxu0 }
 0x185   :  { %v931_v43 = vadd.f32 %v930_v24, %v887_v26  ;;  %v6972_v26 = vsub.s32 3, %v1665_v42 }
 0x186   :  { %v889_v28 = vpop.f32.mrf.mxu0 }
 0x187   :  { %v933_v46 = vadd.f32 %v932_v25, %v889_v28 }
 0x188   :  { %v891_v30 = vpop.f32.mrf.mxu0 }
 0x189   :  { %v935_v51 = vadd.f32 %v934_v27, %v891_v30  ;;  %v6030_v27 = vld [vmem:[#allocation10 + $0x68] ss:$16 sps:$4 sm:$0xff]  }
 0x18a   :  { %v893_v32 = vpop.f32.mrf.mxu0 }
 0x18b   :  { %v937_v56 = vadd.f32 %v936_v29, %v893_v32  ;;  %v6974_v29 = vsub.s32 2, %v1665_v42  ;;  %v6038_v32 = vld [vmem:[#allocation10 + $0x4c] ss:$16 sps:$4 sm:$0xff]   ;;  %v6036_v42 = vld [vmem:[#allocation10 + $0x48] ss:$16 sps:$4 sm:$0xff]  }
 0x1a0   :  { %v1016_v33 = vpop.f32.mrf.mxu0 }
 0x1a2   :  { %v6942_v31 = vpop.f32.mrf.mxu1  ;;  %v6946_v34 = vpop.f32.mrf.mxu0 }
 0x1a3   :  { %v1017_v22 = vadd.f32 %v1016_v33, %v6942_v31 }
 0x1a4   :  { %v6944_v19 = vpop.f32.mrf.mxu1  ;;  %v6950_v37 = vpop.f32.mrf.mxu0 }
 0x1a5   :  { %v1019_v25 = vadd.f32 %v6946_v34, %v6944_v19  ;;  %v1679_v34 = vrot.slane %v6960_v52, %v6972_v26 }
 0x1a6   :  { %v6948_v35 = vpop.f32.mrf.mxu1  ;;  %v6954_v41 = vpop.f32.mrf.mxu0 }
 0x1a7   :  { %v1021_v39 = vadd.f32 %v6950_v37, %v6948_v35  ;;  %v6044_v35 = vld [vmem:[#allocation10 + $0x2c] ss:$16 sps:$4 sm:$0xff]  }
 0x1a8   :  { %v6952_v38 = vpop.f32.mrf.mxu1 }
 0x1be   :  { %v1567_v40 = vpop.f32.mrf.mxu1 }
 0x1c0   :  { %v1569_v44 = vpop.f32.mrf.mxu1 }
 0x1c2   :  { %v1571_v54 = vpop.f32.mrf.mxu1 }
 0x1c4   :  { %v1573_v1 = vpop.f32.mrf.mxu1 }
 0x1e0   :  { %v1524_v45 = vpop.f32.mrf.mxu0 }
 0x1e1   :  { %v1525_v48 = vadd.f32 %v1524_v45, %v931_v43  ;;  %v1023_v43 = vadd.f32 %v6954_v41, %v6952_v38  ;;  %v6042_v41 = vld [vmem:[#allocation10 + $0x28] ss:$16 sps:$4 sm:$0xff]  }
 0x1e2   :  { %v1526_v50 = vpop.f32.mrf.mxu0 }
 0x1e3   :  { %v1527_v53 = vadd.f32 %v1526_v50, %v933_v46  ;;  %v1568_v59 = vadd.f32 %v1567_v40, %v1525_v48  ;;  %v1675_v46 = vrot.slane %v6960_v52, %v6974_v29  ;;  %v6045_v52 = vld [vmem:[#allocation10 + $0x8] ss:$16 sps:$4 sm:$0xff]  }
 0x1e4   :  { %v1528_v55 = vpop.f32.mrf.mxu0 }
 0x1e5   :  { %v1570_v36 = vadd.f32 %v1569_v44, %v1527_v53  ;;  %v1529_v58 = vadd.f32 %v1528_v55, %v935_v51  ;;  %v1684_v5 = vadd.f32 %v1667_v60, %v1568_v59 }
 0x1e6   :  { %v1530_v61 = vpop.f32.mrf.mxu0 }
 0x1e7   :  { %v1572_v62 = vadd.f32 %v1571_v54, %v1529_v58  ;;  %v1531_v63 = vadd.f32 %v1530_v61, %v937_v56  ;;  %v1685_v2 = vadd.f32 %v1671_v57, %v1570_v36  ;;  %v1692_v10 = vmax.f32 %v1684_v5, 0.0  ;;  %v6047_v56 = vld [vmem:[#allocation10 + $0xc] ss:$16 sps:$4 sm:$0xff]   ;;  %v6054_v5 = vld [vmem:[#allocation10 + $0x2c8] ss:$16 sps:$4 sm:$0xff]  }
 0x1e8   :  { %v6053_v61 = vld [vmem:[#allocation10 + $0x1ec] ss:$16 sps:$4 sm:$0xff]  }
 0x1e9   :  { %v1688_v3 = vadd.f32 %v1667_v60, %v1572_v62  ;;  %v1574_v4 = vadd.f32 %v1573_v1, %v1531_v63  ;;  %v1693_v8 = vmax.f32 %v1685_v2, 0.0  ;;  %v6048_v63 = vld [vmem:[#allocation10 + $0x2e8] ss:$16 sps:$4 sm:$0xff]   ;;  %v6056_v2 = vld [vmem:[#allocation10 + $0x2cc] ss:$16 sps:$4 sm:$0xff]  }
 0x1eb   :  { %v1689_v6 = vadd.f32 %v1671_v57, %v1574_v4  ;;  %v1696_v7 = vmax.f32 %v1688_v3, 0.0  ;;  %v6051_v3 = vld [vmem:[#allocation10 + $0x1e8] ss:$16 sps:$4 sm:$0xff]   ;;  %v6059_v4 = vld [vmem:[#allocation10 + $0x1cc] ss:$16 sps:$4 sm:$0xff]  }
 0x1ed   :  { %v1697_v9 = vmax.f32 %v1689_v6, 0.0  ;;  %v6966_v12 = vpack.c.bf16 %v1696_v7, %v1692_v10  ;;  %v6062_v6 = vld [vmem:[#allocation10 + $0x2ac] ss:$16 sps:$4 sm:$0xff]   ;;  %v6057_v7 = vld [vmem:[#allocation10 + $0x1c8] ss:$16 sps:$4 sm:$0xff]  }
 0x1ee   :  { %v6068_v10 = vld [vmem:[#allocation10 + $0x28c] ss:$16 sps:$4 sm:$0xff]  }
 0x1ef   :  { %v1701_v11 = vpack.c.bf16 %v1697_v9, %v1693_v8  ;;  %v6065_v8 = vld [vmem:[#allocation10 + $0x1ac] ss:$16 sps:$4 sm:$0xff]   ;;  %v6060_v9 = vld [vmem:[#allocation10 + $0x2a8] ss:$16 sps:$4 sm:$0xff]  }
 0x1f1   :  { %2526 = vmatprep.mubr.bf16.mxu0 %v1701_v11 }
 0x1f2   :  { %2527 = vmatmul.mubr.bf16.vlgmr.msra.gmra.mxu0 %v6966_v12 }
 0x1f3   :  { %2581 = vmatpush1.bf16.msra.mxu0 %v6006_v0  ;;  %2612 = vmatprep.mubr.bf16.mxu0 %v1701_v11  ;;  %v6063_v11 = vld [vmem:[#allocation10 + $0x1a8] ss:$16 sps:$4 sm:$0xff]   ;;  %v6071_v0 = vld [vmem:[#allocation10 + $0x18c] ss:$16 sps:$4 sm:$0xff]  }
 0x1f4   :  { %2582 = vmatprep.subr.bf16.mxu0 %v6014_v13  ;;  %v6066_v13 = vld [vmem:[#allocation10 + $0x288] ss:$16 sps:$4 sm:$0xff]  }
 0x1f7   :  { %2583 = vmatpush1.bf16.msra.mxu0 %v6012_v14  ;;  %v6074_v14 = vld [vmem:[#allocation10 + $0x26c] ss:$16 sps:$4 sm:$0xff]  }
 0x1f8   :  { %2584 = vmatprep.subr.bf16.mxu0 %v6020_v15  ;;  %v6069_v15 = vld [vmem:[#allocation10 + $0x188] ss:$16 sps:$4 sm:$0xff]  }
 0x1fb   :  { %2585 = vmatpush1.bf16.msra.mxu0 %v6018_v16  ;;  %v6077_v16 = vld [vmem:[#allocation10 + $0x16c] ss:$16 sps:$4 sm:$0xff]  }
 0x1fc   :  { %v1653_v20 = vpop.f32.mrf.mxu0  ;;  %2586 = vmatprep.subr.bf16.mxu0 %v6026_v17  ;;  %v6072_v17 = vld [vmem:[#allocation10 + $0x268] ss:$16 sps:$4 sm:$0xff]  }
 0x1fe   :  { %v1610_v23 = vpop.f32.mrf.mxu1  ;;  %v1655_v24 = vpop.f32.mrf.mxu0 }
 0x1ff   :  { %2587 = vmatpush1.bf16.msra.mxu0 %v6024_v18  ;;  %v1611_v28 = vadd.f32 %v1610_v23, %v1017_v22  ;;  %v6080_v18 = vld [vmem:[#allocation10 + $0x24c] ss:$16 sps:$4 sm:$0xff]   ;;  %v6078_v22 = vld [vmem:[#allocation10 + $0x248] ss:$16 sps:$4 sm:$0xff]  }
 0x200   :  { %v1612_v30 = vpop.f32.mrf.mxu1  ;;  %2588 = vmatprep.subr.bf16.mxu0 %v6032_v21  ;;  %v1657_v33 = vpop.f32.mrf.mxu0  ;;  %v6083_v21 = vld [vmem:[#allocation10 + $0x14c] ss:$16 sps:$4 sm:$0xff]  }
 0x201   :  { %v1613_v40 = vadd.f32 %v1612_v30, %v1019_v25  ;;  %v1654_v45 = vadd.f32 %v1653_v20, %v1611_v28  ;;  %v6075_v20 = vld [vmem:[#allocation10 + $0x168] ss:$16 sps:$4 sm:$0xff]   ;;  %v6086_v23 = vld [vmem:[#allocation10 + $0x22c] ss:$16 sps:$4 sm:$0xff]  }
 0x202   :  { %v1614_v31 = vpop.f32.mrf.mxu1  ;;  %v1659_v51 = vpop.f32.mrf.mxu0  ;;  %v6089_v25 = vld [vmem:[#allocation10 + $0x12c] ss:$16 sps:$4 sm:$0xff]   ;;  %v6087_v30 = vld [vmem:[#allocation10 + $0x128] ss:$16 sps:$4 sm:$0xff]  }
 0x203   :  { %v1656_v19 = vadd.f32 %v1655_v24, %v1613_v40  ;;  %v1615_v44 = vadd.f32 %v1614_v31, %v1021_v39  ;;  %2589 = vmatpush1.bf16.msra.mxu0 %v6030_v27  ;;  %v1686_v55 = vadd.f32 %v1675_v46, %v1654_v45  ;;  %v6081_v24 = vld [vmem:[#allocation10 + $0x148] ss:$16 sps:$4 sm:$0xff]   ;;  %v6092_v28 = vld [vmem:[#allocation10 + $0x20c] ss:$16 sps:$4 sm:$0xff]  }
 0x204   :  { %v1616_v48 = vpop.f32.mrf.mxu1  ;;  %2590 = vmatprep.subr.bf16.mxu0 %v6038_v32  ;;  %v6084_v27 = vld [vmem:[#allocation10 + $0x228] ss:$16 sps:$4 sm:$0xff]   ;;  %v6095_v32 = vld [vmem:[#allocation10 + $0x10c] ss:$16 sps:$4 sm:$0xff]  }
 0x205   :  { %v1658_v37 = vadd.f32 %v1657_v33, %v1615_v44  ;;  %v1617_v50 = vadd.f32 %v1616_v48, %v1023_v43  ;;  %v1687_v53 = vadd.f32 %v1679_v34, %v1656_v19  ;;  %v1694_v60 = vmax.f32 %v1686_v55, 0.0  ;;  %v6090_v39 = vld [vmem:[#allocation10 + $0x208] ss:$16 sps:$4 sm:$0xff]   ;;  %v6098_v40 = vld [vmem:[#allocation10 + $0x3ec] ss:$16 sps:$4 sm:$0xff]  }
 0x206   :  { %v6093_v31 = vld [vmem:[#allocation10 + $0x108] ss:$16 sps:$4 sm:$0xff]   ;;  %v6101_v19 = vld [vmem:[#allocation10 + $0x3cc] ss:$16 sps:$4 sm:$0xff]  }
 0x207   :  { %v1690_v54 = vadd.f32 %v1675_v46, %v1658_v37  ;;  %v1660_v38 = vadd.f32 %v1659_v51, %v1617_v50  ;;  %2591 = vmatpush1.bf16.msra.mxu0 %v6036_v42  ;;  %v1695_v58 = vmax.f32 %v1687_v53, 0.0  ;;  %v6122_v33 = vld [vmem:[#allocation13 + $0xe4] ss:$16 sps:$4 sm:$0xff]   ;;  %v6104_v45 = vld [vmem:[#allocation10 + $0x3ac] ss:$16 sps:$4 sm:$0xff]  }
 0x208   :  { %2592 = vmatprep.subr.bf16.mxu0 %v6044_v35  ;;  %v6096_v43 = vld [vmem:[#allocation10 + $0x3e8] ss:$16 sps:$4 sm:$0xff]   ;;  %v6123_v46 = vld [vmem:[#allocation13 + $0xc0] ss:$16 sps:$4 sm:$0xff]   ;;  %v6107_v37 = vld [vmem:[#allocation10 + $0x38c] ss:$16 sps:$4 sm:$0xff]  }
 0x209   :  { %v1691_v36 = vadd.f32 %v1679_v34, %v1660_v38  ;;  %v1698_v57 = vmax.f32 %v1690_v54, 0.0  ;;  %v6120_v34 = vld [vmem:[#allocation13 + $0xe0] ss:$16 sps:$4 sm:$0xff]   ;;  %v6125_v44 = vld [vmem:[#allocation13 + $0xc4] ss:$16 sps:$4 sm:$0xff]  }
 0x20a   :  { %v6099_v42 = vld [vmem:[#allocation10 + $0x3c8] ss:$16 sps:$4 sm:$0xff]   ;;  %v6126_v50 = vld [vmem:[#allocation13 + $0xa0] ss:$16 sps:$4 sm:$0xff]   ;;  %v6110_v54 = vld [vmem:[#allocation10 + $0x36c] ss:$16 sps:$4 sm:$0xff]  }
 0x20b   :  { %v1699_v59 = vmax.f32 %v1691_v36, 0.0  ;;  %2593 = vmatpush1.bf16.msra.mxu0 %v6042_v41  ;;  %v6984_v1 = vpack.c.bf16 %v1698_v57, %v1694_v60  ;;  %v6128_v48 = vld [vmem:[#allocation13 + $0xa4] ss:$16 sps:$4 sm:$0xff]   ;;  %v6113_v55 = vld [vmem:[#allocation10 + $0x34c] ss:$16 sps:$4 sm:$0xff]  }
 0x20c   :  { %2594 = vmatprep.subr.bf16.mxu0 %v6047_v56  ;;  %v6102_v35 = vld [vmem:[#allocation10 + $0x3a8] ss:$16 sps:$4 sm:$0xff]   ;;  %v6132_v56 = vld [vmem:[#allocation13 + $0x60] ss:$16 sps:$4 sm:$0xff]  }
 0x20d   :  { %v1703_v62 = vpack.c.bf16 %v1699_v59, %v1695_v58  ;;  %v6131_v51 = vld [vmem:[#allocation13 + $0x84] ss:$16 sps:$4 sm:$0xff]   ;;  %v6116_v58 = vld [vmem:[#allocation10 + $0x32c] ss:$16 sps:$4 sm:$0xff]   ;;  %v6135_v59 = vld [vmem:[#allocation13 + $0x40] ss:$16 sps:$4 sm:$0xff]  }
 0x20e   :  { %v6105_v53 = vld [vmem:[#allocation10 + $0x388] ss:$16 sps:$4 sm:$0xff]  }
 0x20f   :  { %2569 = vmatprep.mubr.bf16.mxu1 %v1703_v62  ;;  %2595 = vmatpush1.bf16.msra.mxu0 %v6045_v52  ;;  %v6134_v38 = vld [vmem:[#allocation13 + $0x64] ss:$16 sps:$4 sm:$0xff]  }
 0x210   :  { %2570 = vmatmul.mubr.bf16.vlgmr.msra.gmra.mxu1 %v6984_v1  ;;  %2596 = vmatprep.subr.bf16.mxu0 %v6053_v61  ;;  %v6108_v41 = vld [vmem:[#allocation10 + $0x368] ss:$16 sps:$4 sm:$0xff]   ;;  %v6119_v61 = vld [vmem:[#allocation10 + $0x30c] ss:$16 sps:$4 sm:$0xff]  }
 0x211   :  { %2624 = vmatpush1.bf16.msra.mxu1 %v6048_v63  ;;  %2655 = vmatprep.mubr.bf16.mxu1 %v1703_v62  ;;  %v6137_v36 = vld [vmem:[#allocation13 + $0x44] ss:$16 sps:$4 sm:$0xff]   ;;  %v6138_v62 = vld [vmem:[#allocation13 + $0x20] ss:$16 sps:$4 sm:$0xff]  }
 0x212   :  { %2625 = vmatprep.subr.bf16.mxu1 %v6056_v2  ;;  %v6111_v57 = vld [vmem:[#allocation10 + $0x348] ss:$16 sps:$4 sm:$0xff]  }
 0x213   :  { %2597 = vmatpush2.bf16.msra.mxu0 %v6051_v3  ;;  %v6140_v52 = vld [vmem:[#allocation13 + $0x24] ss:$16 sps:$4 sm:$0xff]   ;;  %v6141_v3 = vld [vmem:[#allocation13] ss:$16 sps:$4 sm:$0xff]  }
 0x214   :  { %2598 = vmatprep.subr.bf16.mxu0 %v6059_v4  ;;  %v6114_v60 = vld [vmem:[#allocation10 + $0x328] ss:$16 sps:$4 sm:$0xff]  }
 0x215   :  { %2626 = vmatpush1.bf16.msra.mxu1 %v6054_v5  ;;  %v6143_v63 = vld [vmem:[#allocation13 + $0x4] ss:$16 sps:$4 sm:$0xff]   ;;  %v6144_v5 = vld [vmem:[#allocation13 + $0x1e0] ss:$16 sps:$4 sm:$0xff]  }
 0x216   :  { %2627 = vmatprep.subr.bf16.mxu1 %v6062_v6  ;;  %v6117_v2 = vld [vmem:[#allocation10 + $0x308] ss:$16 sps:$4 sm:$0xff]  }
 0x217   :  { %2599 = vmatpush2.bf16.msra.mxu0 %v6057_v7  ;;  %v6146_v4 = vld [vmem:[#allocation13 + $0x1e4] ss:$16 sps:$4 sm:$0xff]   ;;  %v6147_v7 = vld [vmem:[#allocation13 + $0x1c0] ss:$16 sps:$4 sm:$0xff]  }
 0x218   :  { %2600 = vmatprep.subr.bf16.mxu0 %v6065_v8  ;;  %v6149_v6 = vld [vmem:[#allocation13 + $0x1c4] ss:$16 sps:$4 sm:$0xff]  }
 0x219   :  { %2628 = vmatpush1.bf16.msra.mxu1 %v6060_v9  ;;  %v6152_v8 = vld [vmem:[#allocation13 + $0x1a4] ss:$16 sps:$4 sm:$0xff]   ;;  %v6150_v9 = vld [vmem:[#allocation13 + $0x1a0] ss:$16 sps:$4 sm:$0xff]  }
 0x21a   :  { %2629 = vmatprep.subr.bf16.mxu1 %v6068_v10  ;;  %v6155_v10 = vld [vmem:[#allocation13 + $0x184] ss:$16 sps:$4 sm:$0xff]  }
 0x21b   :  { %2601 = vmatpush2.bf16.msra.mxu0 %v6063_v11  ;;  %v6153_v11 = vld [vmem:[#allocation13 + $0x180] ss:$16 sps:$4 sm:$0xff]  }
 0x21c   :  { %2602 = vmatprep.subr.bf16.mxu0 %v6071_v0  ;;  %v6168_v0 = vld [vmem:[#allocation13 + $0x2e0] ss:$16 sps:$4 sm:$0xff]  }
 0x21d   :  { %2630 = vmatpush1.bf16.msra.mxu1 %v6066_v13  ;;  %v6170_v13 = vld [vmem:[#allocation13 + $0x2e4] ss:$16 sps:$4 sm:$0xff]  }
 0x21e   :  { %2631 = vmatprep.subr.bf16.mxu1 %v6074_v14  ;;  %v6158_v14 = vld [vmem:[#allocation13 + $0x164] ss:$16 sps:$4 sm:$0xff]  }
 0x21f   :  { %2603 = vmatpush2.bf16.msra.mxu0 %v6069_v15  ;;  %v6174_v15 = vld [vmem:[#allocation13 + $0x2c0] ss:$16 sps:$4 sm:$0xff]  }
 0x220   :  { %2604 = vmatprep.subr.bf16.mxu0 %v6077_v16  ;;  %v6176_v16 = vld [vmem:[#allocation13 + $0x2c4] ss:$16 sps:$4 sm:$0xff]  }
 0x221   :  { %2632 = vmatpush1.bf16.msra.mxu1 %v6072_v17  ;;  %v6161_v17 = vld [vmem:[#allocation13 + $0x144] ss:$16 sps:$4 sm:$0xff]  }
 0x222   :  { %2633 = vmatprep.subr.bf16.mxu1 %v6080_v18  ;;  %v6159_v18 = vld [vmem:[#allocation13 + $0x140] ss:$16 sps:$4 sm:$0xff]  }
 0x223   :  { %2605 = vmatpush2.bf16.msra.mxu0 %v6075_v20  ;;  %v6180_v20 = vld [vmem:[#allocation13 + $0x2a0] ss:$16 sps:$4 sm:$0xff]  }
 0x224   :  { %2606 = vmatprep.subr.bf16.mxu0 %v6083_v21  ;;  %v6182_v21 = vld [vmem:[#allocation13 + $0x2a4] ss:$16 sps:$4 sm:$0xff]  }
 0x225   :  { %2634 = vmatpush1.bf16.msra.mxu1 %v6078_v22  ;;  %v6164_v22 = vld [vmem:[#allocation13 + $0x124] ss:$16 sps:$4 sm:$0xff]  }
 0x226   :  { %2635 = vmatprep.subr.bf16.mxu1 %v6086_v23  ;;  %v6162_v23 = vld [vmem:[#allocation13 + $0x120] ss:$16 sps:$4 sm:$0xff]  }
 0x227   :  { %2607 = vmatpush2.bf16.msra.mxu0 %v6081_v24  ;;  %v6186_v24 = vld [vmem:[#allocation13 + $0x280] ss:$16 sps:$4 sm:$0xff]  }
 0x228   :  { %2608 = vmatprep.subr.bf16.mxu0 %v6089_v25  ;;  %v6188_v25 = vld [vmem:[#allocation13 + $0x284] ss:$16 sps:$4 sm:$0xff]  }
 0x229   :  { %2636 = vmatpush1.bf16.msra.mxu1 %v6084_v27  ;;  %v6167_v27 = vld [vmem:[#allocation13 + $0x104] ss:$16 sps:$4 sm:$0xff]  }
 0x22a   :  { %2637 = vmatprep.subr.bf16.mxu1 %v6092_v28  ;;  %v6165_v28 = vld [vmem:[#allocation13 + $0x100] ss:$16 sps:$4 sm:$0xff]  }
 0x22b   :  { %2609 = vmatpush2.bf16.msra.mxu0 %v6087_v30  ;;  %v6192_v30 = vld [vmem:[#allocation13 + $0x260] ss:$16 sps:$4 sm:$0xff]  }
 0x22c   :  { %2610 = vmatprep.subr.bf16.mxu0 %v6095_v32  ;;  %v6194_v32 = vld [vmem:[#allocation13 + $0x264] ss:$16 sps:$4 sm:$0xff]  }
 0x22d   :  { %2638 = vmatpush1.bf16.msra.mxu1 %v6090_v39  ;;  %v6173_v39 = vld [vmem:[#allocation13 + $0xec] ss:$16 sps:$4 sm:$0xff]  }
 0x22e   :  { %2639 = vmatprep.subr.bf16.mxu1 %v6098_v40  ;;  %v6198_v40 = vld [vmem:[#allocation13 + $0x240] ss:$16 sps:$4 sm:$0xff]  }
 0x22f   :  { %2611 = vmatpush2.bf16.msra.mxu0 %v6093_v31  ;;  %v6200_v31 = vld [vmem:[#allocation13 + $0x244] ss:$16 sps:$4 sm:$0xff]  }
 0x230   :  { %3468 = vmatprep.subr.bf16.mxu0 %v6122_v33  ;;  %v6204_v33 = vld [vmem:[#allocation13 + $0x220] ss:$16 sps:$4 sm:$0xff]  }
 0x231   :  { %2640 = vmatpush2.bf16.msra.mxu1 %v6096_v43  ;;  %v6206_v43 = vld [vmem:[#allocation13 + $0x224] ss:$16 sps:$4 sm:$0xff]  }
 0x232   :  { %2613 = vmatmul.mubr.bf16.vlgmr.msra.gmra.mxu0 %v6966_v12  ;;  %2641 = vmatprep.subr.bf16.mxu1 %v6101_v19  ;;  %v6129_v12 = vld [vmem:[#allocation13 + $0x80] ss:$16 sps:$4 sm:$0xff]  }
 0x233   :  { %3469 = vmatpush1.bf16.msra.mxu0 %v6120_v34  ;;  %v6210_v19 = vld [vmem:[#allocation13 + $0x200] ss:$16 sps:$4 sm:$0xff]   ;;  %v6212_v34 = vld [vmem:[#allocation13 + $0x204] ss:$16 sps:$4 sm:$0xff]  }
 0x234   :  { %3470 = vmatprep.subr.bf16.mxu0 %v6125_v44  ;;  %v6216_v44 = vld [vmem:[#allocation13 + $0x3e0] ss:$16 sps:$4 sm:$0xff]  }
 0x235   :  { %2642 = vmatpush2.bf16.msra.mxu1 %v6099_v42  ;;  %v6218_v42 = vld [vmem:[#allocation13 + $0x3e4] ss:$16 sps:$4 sm:$0xff]  }
 0x236   :  { %2643 = vmatprep.subr.bf16.mxu1 %v6104_v45  ;;  %v6222_v45 = vld [vmem:[#allocation13 + $0x3c0] ss:$16 sps:$4 sm:$0xff]  }
 0x237   :  { %3471 = vmatpush1.bf16.msra.mxu0 %v6123_v46  ;;  %v6224_v46 = vld [vmem:[#allocation13 + $0x3c4] ss:$16 sps:$4 sm:$0xff]  }
 0x238   :  { %3472 = vmatprep.subr.bf16.mxu0 %v6128_v48  ;;  %v6228_v48 = vld [vmem:[#allocation13 + $0x3a0] ss:$16 sps:$4 sm:$0xff]  }
 0x239   :  { %2644 = vmatpush2.bf16.msra.mxu1 %v6102_v35  ;;  %v6230_v35 = vld [vmem:[#allocation13 + $0x3a4] ss:$16 sps:$4 sm:$0xff]  }
 0x23a   :  { %2645 = vmatprep.subr.bf16.mxu1 %v6107_v37  ;;  %v6234_v37 = vld [vmem:[#allocation13 + $0x380] ss:$16 sps:$4 sm:$0xff]  }
 0x23b   :  { %3473 = vmatpush1.bf16.msra.mxu0 %v6126_v50  ;;  %v6236_v50 = vld [vmem:[#allocation13 + $0x384] ss:$16 sps:$4 sm:$0xff]  }
 0x23c   :  { %3474 = vmatprep.subr.bf16.mxu0 %v6131_v51  ;;  %v6240_v51 = vld [vmem:[#allocation13 + $0x360] ss:$16 sps:$4 sm:$0xff]  }
 0x23d   :  { %2646 = vmatpush2.bf16.msra.mxu1 %v6105_v53  ;;  %v6242_v53 = vld [vmem:[#allocation13 + $0x364] ss:$16 sps:$4 sm:$0xff]  }
 0x23e   :  { %2647 = vmatprep.subr.bf16.mxu1 %v6110_v54  ;;  %v6248_v54 = vld [vmem:[#allocation13 + $0x344] ss:$16 sps:$4 sm:$0xff]  }
 0x23f   :  { %3475 = vmatpush1.bf16.msra.mxu0 %v6129_v12  ;;  %v6246_v12 = vld [vmem:[#allocation13 + $0x340] ss:$16 sps:$4 sm:$0xff]  }
 0x240   :  { %3476 = vmatprep.subr.bf16.mxu0 %v6134_v38  ;;  %v6254_v38 = vld [vmem:[#allocation13 + $0x324] ss:$16 sps:$4 sm:$0xff]  }
 0x241   :  { %2648 = vmatpush2.bf16.msra.mxu1 %v6108_v41  ;;  %v6252_v41 = vld [vmem:[#allocation13 + $0x320] ss:$16 sps:$4 sm:$0xff]  }
 0x242   :  { %2649 = vmatprep.subr.bf16.mxu1 %v6113_v55  ;;  %v6260_v55 = vld [vmem:[#allocation13 + $0x304] ss:$16 sps:$4 sm:$0xff]  }
 0x243   :  { %3477 = vmatpush1.bf16.msra.mxu0 %v6132_v56  ;;  %v6258_v56 = vld [vmem:[#allocation13 + $0x300] ss:$16 sps:$4 sm:$0xff]  }
 0x244   :  { %3478 = vmatprep.subr.bf16.mxu0 %v6137_v36  ;;  %v6266_v36 = vld [vmem:[#allocation13 + $0x2ec] ss:$16 sps:$4 sm:$0xff]  }
 0x245   :  { %2650 = vmatpush2.bf16.msra.mxu1 %v6111_v57 }
 0x246   :  { %2651 = vmatprep.subr.bf16.mxu1 %v6116_v58 }
 0x247   :  { %3479 = vmatpush1.bf16.msra.mxu0 %v6135_v59  ;;  %v6989_v59 = vld [vmem:[#allocation12] sm:$0xf] }
 0x248   :  { %3480 = vmatprep.subr.bf16.mxu0 %v6140_v52 }
 0x249   :  { %2652 = vmatpush2.bf16.msra.mxu1 %v6114_v60  ;;  %v1841_v60 = vrot.slane %v6989_v59, %v6956_v47 }
 0x24a   :  { %2653 = vmatprep.subr.bf16.mxu1 %v6119_v61  ;;  %v1837_v61 = vrot.slane %v6989_v59, %v6958_v49 }
 0x24b   :  { %3481 = vmatpush1.bf16.msra.mxu0 %v6138_v62 }
 0x24c   :  { %3482 = vmatprep.subr.bf16.mxu0 %v6143_v63 }
 0x24d   :  { %2654 = vmatpush2.bf16.msra.mxu1 %v6117_v2 }
 0x24e   :  { %3511 = vmatprep.subr.bf16.mxu1 %v6170_v13 }
 0x24f   :  { %3483 = vmatpush1.bf16.msra.mxu0 %v6141_v3 }
 0x250   :  { %2656 = vmatmul.mubr.bf16.vlgmr.msra.gmra.mxu1 %v6984_v1  ;;  %3484 = vmatprep.subr.bf16.mxu0 %v6146_v4  ;;  %v6156_v1 = vld [vmem:[#allocation13 + $0x160] ss:$16 sps:$4 sm:$0xff]  }
 0x251   :  { %3512 = vmatpush1.bf16.msra.mxu1 %v6168_v0 }
 0x252   :  { %3513 = vmatprep.subr.bf16.mxu1 %v6176_v16 }
 0x253   :  { %3485 = vmatpush2.bf16.msra.mxu0 %v6144_v5 }
 0x254   :  { %3486 = vmatprep.subr.bf16.mxu0 %v6149_v6 }
 0x255   :  { %3514 = vmatpush1.bf16.msra.mxu1 %v6174_v15 }
 0x256   :  { %3515 = vmatprep.subr.bf16.mxu1 %v6182_v21  ;;  %v6177_v21 = vld [vmem:[#allocation13 + $0xc8] ss:$16 sps:$4 sm:$0xff]  }
 0x257   :  { %3487 = vmatpush2.bf16.msra.mxu0 %v6147_v7 }
 0x258   :  { %3488 = vmatprep.subr.bf16.mxu0 %v6152_v8 }
 0x259   :  { %3516 = vmatpush1.bf16.msra.mxu1 %v6180_v20  ;;  %v6179_v20 = vld [vmem:[#allocation13 + $0xcc] ss:$16 sps:$4 sm:$0xff]  }
 0x25a   :  { %3517 = vmatprep.subr.bf16.mxu1 %v6188_v25  ;;  %v6189_v25 = vld [vmem:[#allocation13 + $0x88] ss:$16 sps:$4 sm:$0xff]  }
 0x25b   :  { %3489 = vmatpush2.bf16.msra.mxu0 %v6150_v9 }
 0x25c   :  { %3490 = vmatprep.subr.bf16.mxu0 %v6155_v10 }
 0x25d   :  { %3518 = vmatpush1.bf16.msra.mxu1 %v6186_v24  ;;  %v6191_v24 = vld [vmem:[#allocation13 + $0x8c] ss:$16 sps:$4 sm:$0xff]  }
 0x25e   :  { %3519 = vmatprep.subr.bf16.mxu1 %v6194_v32  ;;  %v6201_v32 = vld [vmem:[#allocation13 + $0x48] ss:$16 sps:$4 sm:$0xff]  }
 0x25f   :  { %3491 = vmatpush2.bf16.msra.mxu0 %v6153_v11 }
 0x260   :  { %3492 = vmatprep.subr.bf16.mxu0 %v6158_v14 }
 0x261   :  { %3520 = vmatpush1.bf16.msra.mxu1 %v6192_v30  ;;  %v6203_v30 = vld [vmem:[#allocation13 + $0x4c] ss:$16 sps:$4 sm:$0xff]  }
 0x262   :  { %3521 = vmatprep.subr.bf16.mxu1 %v6200_v31  ;;  %v6215_v31 = vld [vmem:[#allocation13 + $0xc] ss:$16 sps:$4 sm:$0xff]  }
 0x263   :  { %3493 = vmatpush2.bf16.msra.mxu0 %v6156_v1 }
 0x264   :  { %3494 = vmatprep.subr.bf16.mxu0 %v6161_v17  ;;  %v6171_v17 = vld [vmem:[#allocation13 + $0xe8] ss:$16 sps:$4 sm:$0xff]  }
 0x265   :  { %3522 = vmatpush1.bf16.msra.mxu1 %v6198_v40  ;;  %v6207_v40 = vld [vmem:[#allocation13 + $0x28] ss:$16 sps:$4 sm:$0xff]  }
 0x266   :  { %3523 = vmatprep.subr.bf16.mxu1 %v6206_v43  ;;  %v6221_v43 = vld [vmem:[#allocation13 + $0x1ec] ss:$16 sps:$4 sm:$0xff]  }
 0x267   :  { %3495 = vmatpush2.bf16.msra.mxu0 %v6159_v18 }
 0x268   :  { %3496 = vmatprep.subr.bf16.mxu0 %v6164_v22  ;;  %v6185_v22 = vld [vmem:[#allocation13 + $0xac] ss:$16 sps:$4 sm:$0xff]  }
 0x269   :  { %3524 = vmatpush1.bf16.msra.mxu1 %v6204_v33  ;;  %v6213_v33 = vld [vmem:[#allocation13 + $0x8] ss:$16 sps:$4 sm:$0xff]  }
 0x26a   :  { %3525 = vmatprep.subr.bf16.mxu1 %v6212_v34  ;;  %v6227_v34 = vld [vmem:[#allocation13 + $0x1cc] ss:$16 sps:$4 sm:$0xff]  }
 0x26b   :  { %3497 = vmatpush2.bf16.msra.mxu0 %v6162_v23  ;;  %v6183_v23 = vld [vmem:[#allocation13 + $0xa8] ss:$16 sps:$4 sm:$0xff]  }
 0x26c   :  { %3498 = vmatprep.subr.bf16.mxu0 %v6167_v27  ;;  %v6197_v27 = vld [vmem:[#allocation13 + $0x6c] ss:$16 sps:$4 sm:$0xff]  }
 0x26d   :  { %3526 = vmatpush1.bf16.msra.mxu1 %v6210_v19  ;;  %v6219_v19 = vld [vmem:[#allocation13 + $0x1e8] ss:$16 sps:$4 sm:$0xff]  }
 0x26e   :  { %3527 = vmatprep.subr.bf16.mxu1 %v6218_v42  ;;  %v6233_v42 = vld [vmem:[#allocation13 + $0x1ac] ss:$16 sps:$4 sm:$0xff]  }
 0x26f   :  { %3499 = vmatpush2.bf16.msra.mxu0 %v6165_v28  ;;  %v6195_v28 = vld [vmem:[#allocation13 + $0x68] ss:$16 sps:$4 sm:$0xff]  }
 0x270   :  { %3554 = vmatprep.subr.bf16.mxu0 %v6173_v39  ;;  %v6209_v39 = vld [vmem:[#allocation13 + $0x2c] ss:$16 sps:$4 sm:$0xff]  }
 0x271   :  { %3528 = vmatpush2.bf16.msra.mxu1 %v6216_v44  ;;  %v6225_v44 = vld [vmem:[#allocation13 + $0x1c8] ss:$16 sps:$4 sm:$0xff]  }
 0x272   :  { %3529 = vmatprep.subr.bf16.mxu1 %v6224_v46  ;;  %v6239_v46 = vld [vmem:[#allocation13 + $0x18c] ss:$16 sps:$4 sm:$0xff]  }
 0x275   :  { %3530 = vmatpush2.bf16.msra.mxu1 %v6222_v45  ;;  %v6231_v45 = vld [vmem:[#allocation13 + $0x1a8] ss:$16 sps:$4 sm:$0xff]  }
 0x276   :  { %3531 = vmatprep.subr.bf16.mxu1 %v6230_v35  ;;  %v6237_v35 = vld [vmem:[#allocation13 + $0x188] ss:$16 sps:$4 sm:$0xff]  }
 0x279   :  { %3532 = vmatpush2.bf16.msra.mxu1 %v6228_v48 }
 0x27a   :  { %3533 = vmatprep.subr.bf16.mxu1 %v6236_v50 }
 0x27d   :  { %3534 = vmatpush2.bf16.msra.mxu1 %v6234_v37  ;;  %v6245_v37 = vld [vmem:[#allocation13 + $0x16c] ss:$16 sps:$4 sm:$0xff]  }
 0x27e   :  { %3535 = vmatprep.subr.bf16.mxu1 %v6242_v53  ;;  %v6251_v53 = vld [vmem:[#allocation13 + $0x14c] ss:$16 sps:$4 sm:$0xff]  }
 0x281   :  { %3536 = vmatpush2.bf16.msra.mxu1 %v6240_v51  ;;  %v6243_v51 = vld [vmem:[#allocation13 + $0x168] ss:$16 sps:$4 sm:$0xff]  }
 0x282   :  { %3537 = vmatprep.subr.bf16.mxu1 %v6248_v54 }
 0x285   :  { %3538 = vmatpush2.bf16.msra.mxu1 %v6246_v12  ;;  %v1849_v12 = vrot.slane %v6989_v59, %v6972_v26 }
 0x286   :  { %3539 = vmatprep.subr.bf16.mxu1 %v6254_v38  ;;  %v6249_v38 = vld [vmem:[#allocation13 + $0x148] ss:$16 sps:$4 sm:$0xff]  }
 0x289   :  { %3540 = vmatpush2.bf16.msra.mxu1 %v6252_v41  ;;  %v1845_v41 = vrot.slane %v6989_v59, %v6974_v29  ;;  %v6261_v59 = vld [vmem:[#allocation13 + $0x108] ss:$16 sps:$4 sm:$0xff]  }
 0x28a   :  { %3541 = vmatprep.subr.bf16.mxu1 %v6260_v55 }
 0x28d   :  { %3542 = vmatpush2.bf16.msra.mxu1 %v6258_v56  ;;  %v6257_v56 = vld [vmem:[#allocation13 + $0x12c] ss:$16 sps:$4 sm:$0xff]  }
 0x28e   :  { %3597 = vmatprep.subr.bf16.mxu1 %v6266_v36 }
 0x2b2   :  { %v2528_v57 = vpop.f32.mrf.mxu0 }
 0x2b3   :  { %v2529_v5 = vadd.f32 %v2528_v57, %v1837_v61 }
 0x2b4   :  { %v2530_v58 = vpop.f32.mrf.mxu0 }
 0x2b5   :  { %v2531_v3 = vadd.f32 %v2530_v58, %v1841_v60 }
 0x2b6   :  { %v2532_v52 = vpop.f32.mrf.mxu0 }
 0x2b7   :  { %v2533_v4 = vadd.f32 %v2532_v52, %v1837_v61 }
 0x2b8   :  { %v2534_v63 = vpop.f32.mrf.mxu0 }
 0x2b9   :  { %v2535_v7 = vadd.f32 %v2534_v63, %v1841_v60  ;;  %v6255_v60 = vld [vmem:[#allocation13 + $0x128] ss:$16 sps:$4 sm:$0xff]   ;;  %v6263_v63 = vld [vmem:[#allocation13 + $0x10c] ss:$16 sps:$4 sm:$0xff]  }
 0x2d0   :  { %v2571_v62 = vpop.f32.mrf.mxu1 }
 0x2d1   :  { %v2572_v10 = vadd.f32 %v2571_v62, %v2529_v5 }
 0x2d2   :  { %v2573_v2 = vpop.f32.mrf.mxu1 }
 0x2d3   :  { %v2574_v8 = vadd.f32 %v2573_v2, %v2531_v3  ;;  %v2666_v15 = vmax.f32 %v2572_v10, 0.0 }
 0x2d4   :  { %v2575_v6 = vpop.f32.mrf.mxu1 }
 0x2d5   :  { %v2576_v9 = vadd.f32 %v2575_v6, %v2533_v4  ;;  %v2667_v14 = vmax.f32 %v2574_v8, 0.0 }
 0x2d6   :  { %v2577_v11 = vpop.f32.mrf.mxu1 }
 0x2d7   :  { %v2578_v0 = vadd.f32 %v2577_v11, %v2535_v7  ;;  %v2670_v13 = vmax.f32 %v2576_v9, 0.0 }
 0x2d9   :  { %v2671_v1 = vmax.f32 %v2578_v0, 0.0  ;;  %v6995_v18 = vpack.c.bf16 %v2670_v13, %v2666_v15  ;;  %v6264_v13 = vld [vmem:[#allocation13 + $0x2e8] ss:$16 sps:$4 sm:$0xff]  }
 0x2da   :  { %v6267_v15 = vld [vmem:[#allocation13 + $0x2c8] ss:$16 sps:$4 sm:$0xff]  }
 0x2db   :  { %v2675_v16 = vpack.c.bf16 %v2671_v1, %v2667_v14  ;;  %v6269_v1 = vld [vmem:[#allocation13 + $0x2cc] ss:$16 sps:$4 sm:$0xff]  }
 0x2dd   :  { %3500 = vmatprep.mubr.bf16.mxu0 %v2675_v16 }
 0x2de   :  { %3501 = vmatmul.mubr.bf16.vlgmr.msra.gmra.mxu0 %v6995_v18 }
 0x2df   :  { %3555 = vmatpush1.bf16.msra.mxu0 %v6171_v17  ;;  %3586 = vmatprep.mubr.bf16.mxu0 %v2675_v16  ;;  %v6272_v16 = vld [vmem:[#allocation13 + $0x2ac] ss:$16 sps:$4 sm:$0xff]   ;;  %v6270_v17 = vld [vmem:[#allocation13 + $0x2a8] ss:$16 sps:$4 sm:$0xff]  }
 0x2e0   :  { %3556 = vmatprep.subr.bf16.mxu0 %v6179_v20  ;;  %v6275_v20 = vld [vmem:[#allocation13 + $0x28c] ss:$16 sps:$4 sm:$0xff]  }
 0x2e3   :  { %3557 = vmatpush1.bf16.msra.mxu0 %v6177_v21  ;;  %v6312_v21 = vld [vmem:[#allocation16 + $0xe0] ss:$16 sps:$4 sm:$0xff]  }
 0x2e4   :  { %3558 = vmatprep.subr.bf16.mxu0 %v6185_v22  ;;  %v6314_v22 = vld [vmem:[#allocation16 + $0xe4] ss:$16 sps:$4 sm:$0xff]  }
 0x2e7   :  { %3559 = vmatpush1.bf16.msra.mxu0 %v6183_v23  ;;  %v6317_v23 = vld [vmem:[#allocation16 + $0xc4] ss:$16 sps:$4 sm:$0xff]  }
 0x2e8   :  { %3560 = vmatprep.subr.bf16.mxu0 %v6191_v24  ;;  %v6273_v24 = vld [vmem:[#allocation13 + $0x288] ss:$16 sps:$4 sm:$0xff]  }
 0x2eb   :  { %3561 = vmatpush1.bf16.msra.mxu0 %v6189_v25  ;;  %v6278_v25 = vld [vmem:[#allocation13 + $0x26c] ss:$16 sps:$4 sm:$0xff]  }
 0x2ec   :  { %3562 = vmatprep.subr.bf16.mxu0 %v6197_v27  ;;  %v6315_v27 = vld [vmem:[#allocation16 + $0xc0] ss:$16 sps:$4 sm:$0xff]  }
 0x2ef   :  { %3563 = vmatpush1.bf16.msra.mxu0 %v6195_v28  ;;  %v6276_v28 = vld [vmem:[#allocation13 + $0x268] ss:$16 sps:$4 sm:$0xff]  }
 0x2f0   :  { %3564 = vmatprep.subr.bf16.mxu0 %v6203_v30  ;;  %v6281_v30 = vld [vmem:[#allocation13 + $0x24c] ss:$16 sps:$4 sm:$0xff]  }
 0x2f2   :  { %v2614_v48 = vpop.f32.mrf.mxu0 }
 0x2f3   :  { %3565 = vmatpush1.bf16.msra.mxu0 %v6201_v32  ;;  %v2615_v61 = vadd.f32 %v2614_v48, %v1845_v41  ;;  %v6318_v32 = vld [vmem:[#allocation16 + $0xa0] ss:$16 sps:$4 sm:$0xff]  }
 0x2f4   :  { %3566 = vmatprep.subr.bf16.mxu0 %v6209_v39  ;;  %v2616_v50 = vpop.f32.mrf.mxu0  ;;  %v6323_v39 = vld [vmem:[#allocation16 + $0x84] ss:$16 sps:$4 sm:$0xff]   ;;  %v6327_v48 = vld [vmem:[#allocation16 + $0x40] ss:$16 sps:$4 sm:$0xff]  }
 0x2f5   :  { %v2617_v58 = vadd.f32 %v2616_v50, %v1849_v12  ;;  %v6293_v50 = vld [vmem:[#allocation13 + $0x3cc] ss:$16 sps:$4 sm:$0xff]  }
 0x2f6   :  { %v2618_v54 = vpop.f32.mrf.mxu0 }
 0x2f7   :  { %3567 = vmatpush1.bf16.msra.mxu0 %v6207_v40  ;;  %v2619_v52 = vadd.f32 %v2618_v54, %v1845_v41  ;;  %v6279_v40 = vld [vmem:[#allocation13 + $0x248] ss:$16 sps:$4 sm:$0xff]  }
 0x2f8   :  { %3568 = vmatprep.subr.bf16.mxu0 %v6215_v31  ;;  %v2620_v36 = vpop.f32.mrf.mxu0  ;;  %v6284_v31 = vld [vmem:[#allocation13 + $0x22c] ss:$16 sps:$4 sm:$0xff]   ;;  %v6291_v54 = vld [vmem:[#allocation13 + $0x3c8] ss:$16 sps:$4 sm:$0xff]  }
 0x2f9   :  { %v2621_v2 = vadd.f32 %v2620_v36, %v1849_v12  ;;  %v6296_v12 = vld [vmem:[#allocation13 + $0x3ac] ss:$16 sps:$4 sm:$0xff]   ;;  %v6338_v41 = vld [vmem:[#allocation16 + $0x1e4] ss:$16 sps:$4 sm:$0xff]   ;;  %v6336_v36 = vld [vmem:[#allocation16 + $0x1e0] ss:$16 sps:$4 sm:$0xff]  }
 0x2fb   :  { %3569 = vmatpush1.bf16.msra.mxu0 %v6213_v33  ;;  %v6321_v33 = vld [vmem:[#allocation16 + $0x80] ss:$16 sps:$4 sm:$0xff]  }
 0x2fc   :  { %3570 = vmatprep.subr.bf16.mxu0 %v6221_v43  ;;  %v6326_v43 = vld [vmem:[#allocation16 + $0x64] ss:$16 sps:$4 sm:$0xff]  }
 0x2ff   :  { %3571 = vmatpush2.bf16.msra.mxu0 %v6219_v19  ;;  %v6282_v19 = vld [vmem:[#allocation13 + $0x228] ss:$16 sps:$4 sm:$0xff]  }
 0x300   :  { %3572 = vmatprep.subr.bf16.mxu0 %v6227_v34  ;;  %v6287_v34 = vld [vmem:[#allocation13 + $0x20c] ss:$16 sps:$4 sm:$0xff]  }
 0x303   :  { %3573 = vmatpush2.bf16.msra.mxu0 %v6225_v44  ;;  %v6324_v44 = vld [vmem:[#allocation16 + $0x60] ss:$16 sps:$4 sm:$0xff]  }
 0x304   :  { %3574 = vmatprep.subr.bf16.mxu0 %v6233_v42  ;;  %v6329_v42 = vld [vmem:[#allocation16 + $0x44] ss:$16 sps:$4 sm:$0xff]  }
 0x307   :  { %3575 = vmatpush2.bf16.msra.mxu0 %v6231_v45  ;;  %v6285_v45 = vld [vmem:[#allocation13 + $0x208] ss:$16 sps:$4 sm:$0xff]  }
 0x308   :  { %3576 = vmatprep.subr.bf16.mxu0 %v6239_v46  ;;  %v6290_v46 = vld [vmem:[#allocation13 + $0x3ec] ss:$16 sps:$4 sm:$0xff]  }
 0x30b   :  { %3577 = vmatpush2.bf16.msra.mxu0 %v6237_v35  ;;  %v6332_v35 = vld [vmem:[#allocation16 + $0x24] ss:$16 sps:$4 sm:$0xff]  }
 0x30c   :  { %3578 = vmatprep.subr.bf16.mxu0 %v6245_v37  ;;  %v6288_v37 = vld [vmem:[#allocation13 + $0x3e8] ss:$16 sps:$4 sm:$0xff]  }
 0x30f   :  { %3579 = vmatpush2.bf16.msra.mxu0 %v6243_v51  ;;  %v6330_v51 = vld [vmem:[#allocation16 + $0x20] ss:$16 sps:$4 sm:$0xff]  }
 0x310   :  { %v2657_v55 = vpop.f32.mrf.mxu1  ;;  %3580 = vmatprep.subr.bf16.mxu0 %v6251_v53  ;;  %v6335_v53 = vld [vmem:[#allocation16 + $0x4] ss:$16 sps:$4 sm:$0xff]  }
 0x311   :  { %v2658_v5 = vadd.f32 %v2657_v55, %v2615_v61  ;;  %v6294_v55 = vld [vmem:[#allocation13 + $0x3a8] ss:$16 sps:$4 sm:$0xff]  }
 0x312   :  { %v2659_v57 = vpop.f32.mrf.mxu1  ;;  %v6344_v61 = vld [vmem:[#allocation16 + $0x1a4] ss:$16 sps:$4 sm:$0xff]  }
 0x313   :  { %3581 = vmatpush2.bf16.msra.mxu0 %v6249_v38  ;;  %v2660_v3 = vadd.f32 %v2659_v57, %v2617_v58  ;;  %v2668_v11 = vmax.f32 %v2658_v5, 0.0  ;;  %v6333_v38 = vld [vmem:[#allocation16] ss:$16 sps:$4 sm:$0xff]   ;;  %v6341_v57 = vld [vmem:[#allocation16 + $0x1c4] ss:$16 sps:$4 sm:$0xff]  }
 0x314   :  { %v2661_v62 = vpop.f32.mrf.mxu1  ;;  %3582 = vmatprep.subr.bf16.mxu0 %v6257_v56  ;;  %v6299_v56 = vld [vmem:[#allocation13 + $0x38c] ss:$16 sps:$4 sm:$0xff]   ;;  %v6297_v58 = vld [vmem:[#allocation13 + $0x388] ss:$16 sps:$4 sm:$0xff]  }
 0x315   :  { %v2662_v4 = vadd.f32 %v2661_v62, %v2619_v52  ;;  %v2669_v9 = vmax.f32 %v2660_v3, 0.0  ;;  %v6302_v52 = vld [vmem:[#allocation13 + $0x36c] ss:$16 sps:$4 sm:$0xff]   ;;  %v6300_v62 = vld [vmem:[#allocation13 + $0x368] ss:$16 sps:$4 sm:$0xff]  }
 0x316   :  { %v2663_v6 = vpop.f32.mrf.mxu1  ;;  %v6347_v3 = vld [vmem:[#allocation16 + $0x184] ss:$16 sps:$4 sm:$0xff]   ;;  %v6308_v5 = vld [vmem:[#allocation13 + $0x32c] ss:$16 sps:$4 sm:$0xff]  }
 0x317   :  { %v2664_v7 = vadd.f32 %v2663_v6, %v2621_v2  ;;  %3583 = vmatpush2.bf16.msra.mxu0 %v6255_v60  ;;  %v2672_v8 = vmax.f32 %v2662_v4, 0.0  ;;  %v6339_v60 = vld [vmem:[#allocation16 + $0x1c0] ss:$16 sps:$4 sm:$0xff]   ;;  %v6303_v4 = vld [vmem:[#allocation13 + $0x348] ss:$16 sps:$4 sm:$0xff]  }
 0x318   :  { %3584 = vmatprep.subr.bf16.mxu0 %v6263_v63  ;;  %v6305_v63 = vld [vmem:[#allocation13 + $0x34c] ss:$16 sps:$4 sm:$0xff]   ;;  %v6342_v2 = vld [vmem:[#allocation16 + $0x1a0] ss:$16 sps:$4 sm:$0xff]  }
 0x319   :  { %v2673_v10 = vmax.f32 %v2664_v7, 0.0  ;;  %v7002_v14 = vpack.c.bf16 %v2672_v8, %v2668_v11  ;;  %v6345_v6 = vld [vmem:[#allocation16 + $0x180] ss:$16 sps:$4 sm:$0xff]   ;;  %v6350_v7 = vld [vmem:[#allocation16 + $0x164] ss:$16 sps:$4 sm:$0xff]  }
 0x31a   :  { %v6311_v8 = vld [vmem:[#allocation13 + $0x30c] ss:$16 sps:$4 sm:$0xff]   ;;  %v6353_v11 = vld [vmem:[#allocation16 + $0x144] ss:$16 sps:$4 sm:$0xff]  }
 0x31b   :  { %v2677_v0 = vpack.c.bf16 %v2673_v10, %v2669_v9  ;;  %3585 = vmatpush2.bf16.msra.mxu0 %v6261_v59  ;;  %v6306_v59 = vld [vmem:[#allocation13 + $0x328] ss:$16 sps:$4 sm:$0xff]   ;;  %v6348_v9 = vld [vmem:[#allocation16 + $0x160] ss:$16 sps:$4 sm:$0xff]  }
 0x31c   :  { %4442 = vmatprep.subr.bf16.mxu0 %v6314_v22  ;;  %v6309_v10 = vld [vmem:[#allocation13 + $0x308] ss:$16 sps:$4 sm:$0xff]   ;;  %v6366_v22 = vld [vmem:[#allocation16 + $0x2c0] ss:$16 sps:$4 sm:$0xff]  }
 0x31d   :  { %3543 = vmatprep.mubr.bf16.mxu1 %v2677_v0 }
 0x31e   :  { %3544 = vmatmul.mubr.bf16.vlgmr.msra.gmra.mxu1 %v7002_v14  ;;  %3587 = vmatmul.mubr.bf16.vlgmr.msra.gmra.mxu0 %v6995_v18  ;;  %v6320_v18 = vld [vmem:[#allocation16 + $0xa4] ss:$16 sps:$4 sm:$0xff]  }
 0x31f   :  { %3598 = vmatpush1.bf16.msra.mxu1 %v6264_v13  ;;  %3629 = vmatprep.mubr.bf16.mxu1 %v2677_v0  ;;  %v6351_v0 = vld [vmem:[#allocation16 + $0x140] ss:$16 sps:$4 sm:$0xff]   ;;  %v6356_v13 = vld [vmem:[#allocation16 + $0x124] ss:$16 sps:$4 sm:$0xff]  }
 0x320   :  { %3599 = vmatprep.subr.bf16.mxu1 %v6269_v1  ;;  %4443 = vmatpush1.bf16.msra.mxu0 %v6312_v21  ;;  %v6354_v1 = vld [vmem:[#allocation16 + $0x120] ss:$16 sps:$4 sm:$0xff]   ;;  %v6365_v21 = vld [vmem:[#allocation16 + $0xec] ss:$16 sps:$4 sm:$0xff]  }
 0x321   :  { %4444 = vmatprep.subr.bf16.mxu0 %v6317_v23  ;;  %v6372_v23 = vld [vmem:[#allocation16 + $0x2a0] ss:$16 sps:$4 sm:$0xff]  }
 0x323   :  { %3600 = vmatpush1.bf16.msra.mxu1 %v6267_v15  ;;  %v6359_v15 = vld [vmem:[#allocation16 + $0x104] ss:$16 sps:$4 sm:$0xff]  }
 0x324   :  { %3601 = vmatprep.subr.bf16.mxu1 %v6272_v16  ;;  %4445 = vmatpush1.bf16.msra.mxu0 %v6315_v27  ;;  %v6357_v16 = vld [vmem:[#allocation16 + $0x100] ss:$16 sps:$4 sm:$0xff]   ;;  %v6380_v27 = vld [vmem:[#allocation16 + $0x284] ss:$16 sps:$4 sm:$0xff]  }
 0x325   :  { %4446 = vmatprep.subr.bf16.mxu0 %v6320_v18  ;;  %v6384_v18 = vld [vmem:[#allocation16 + $0x260] ss:$16 sps:$4 sm:$0xff]  }
 0x327   :  { %3602 = vmatpush1.bf16.msra.mxu1 %v6270_v17  ;;  %v6360_v17 = vld [vmem:[#allocation16 + $0x2e0] ss:$16 sps:$4 sm:$0xff]  }
 0x328   :  { %3603 = vmatprep.subr.bf16.mxu1 %v6275_v20  ;;  %4447 = vmatpush1.bf16.msra.mxu0 %v6318_v32  ;;  %v6362_v20 = vld [vmem:[#allocation16 + $0x2e4] ss:$16 sps:$4 sm:$0xff]  }
 0x329   :  { %4448 = vmatprep.subr.bf16.mxu0 %v6323_v39  ;;  %v6392_v32 = vld [vmem:[#allocation16 + $0x244] ss:$16 sps:$4 sm:$0xff]   ;;  %v6396_v39 = vld [vmem:[#allocation16 + $0x220] ss:$16 sps:$4 sm:$0xff]  }
 0x32b   :  { %3604 = vmatpush1.bf16.msra.mxu1 %v6273_v24  ;;  %v6374_v24 = vld [vmem:[#allocation16 + $0x2a4] ss:$16 sps:$4 sm:$0xff]  }
 0x32c   :  { %3605 = vmatprep.subr.bf16.mxu1 %v6278_v25  ;;  %4449 = vmatpush1.bf16.msra.mxu0 %v6321_v33  ;;  %v6378_v25 = vld [vmem:[#allocation16 + $0x280] ss:$16 sps:$4 sm:$0xff]   ;;  %v6404_v33 = vld [vmem:[#allocation16 + $0x204] ss:$16 sps:$4 sm:$0xff]  }
 0x32d   :  { %4450 = vmatprep.subr.bf16.mxu0 %v6326_v43  ;;  %v6408_v43 = vld [vmem:[#allocation16 + $0x3e0] ss:$16 sps:$4 sm:$0xff]  }
 0x32f   :  { %3606 = vmatpush1.bf16.msra.mxu1 %v6276_v28  ;;  %v6386_v28 = vld [vmem:[#allocation16 + $0x264] ss:$16 sps:$4 sm:$0xff]  }
 0x330   :  { %3607 = vmatprep.subr.bf16.mxu1 %v6281_v30  ;;  %4451 = vmatpush1.bf16.msra.mxu0 %v6324_v44  ;;  %v6390_v30 = vld [vmem:[#allocation16 + $0x240] ss:$16 sps:$4 sm:$0xff]   ;;  %v6416_v44 = vld [vmem:[#allocation16 + $0x3c4] ss:$16 sps:$4 sm:$0xff]  }
 0x331   :  { %4452 = vmatprep.subr.bf16.mxu0 %v6329_v42  ;;  %v6420_v42 = vld [vmem:[#allocation16 + $0x3a0] ss:$16 sps:$4 sm:$0xff]  }
 0x333   :  { %3608 = vmatpush1.bf16.msra.mxu1 %v6279_v40  ;;  %v6398_v40 = vld [vmem:[#allocation16 + $0x224] ss:$16 sps:$4 sm:$0xff]  }
 0x334   :  { %3609 = vmatprep.subr.bf16.mxu1 %v6284_v31  ;;  %4453 = vmatpush1.bf16.msra.mxu0 %v6327_v48  ;;  %v6402_v31 = vld [vmem:[#allocation16 + $0x200] ss:$16 sps:$4 sm:$0xff]   ;;  %v6428_v48 = vld [vmem:[#allocation16 + $0x384] ss:$16 sps:$4 sm:$0xff]  }
 0x335   :  { %4454 = vmatprep.subr.bf16.mxu0 %v6332_v35  ;;  %v6432_v35 = vld [vmem:[#allocation16 + $0x360] ss:$16 sps:$4 sm:$0xff]  }
 0x337   :  { %3610 = vmatpush1.bf16.msra.mxu1 %v6282_v19  ;;  %v6410_v19 = vld [vmem:[#allocation16 + $0x3e4] ss:$16 sps:$4 sm:$0xff]  }
 0x338   :  { %3611 = vmatprep.subr.bf16.mxu1 %v6287_v34  ;;  %4455 = vmatpush1.bf16.msra.mxu0 %v6330_v51  ;;  %v6414_v34 = vld [vmem:[#allocation16 + $0x3c0] ss:$16 sps:$4 sm:$0xff]  }
 0x339   :  { %4456 = vmatprep.subr.bf16.mxu0 %v6335_v53  ;;  %v6438_v51 = vld [vmem:[#allocation16 + $0x340] ss:$16 sps:$4 sm:$0xff]   ;;  %v6446_v53 = vld [vmem:[#allocation16 + $0x324] ss:$16 sps:$4 sm:$0xff]  }
 0x33b   :  { %3612 = vmatpush1.bf16.msra.mxu1 %v6285_v45  ;;  %v6422_v45 = vld [vmem:[#allocation16 + $0x3a4] ss:$16 sps:$4 sm:$0xff]  }
 0x33c   :  { %3613 = vmatprep.subr.bf16.mxu1 %v6290_v46  ;;  %4457 = vmatpush1.bf16.msra.mxu0 %v6333_v38  ;;  %v6426_v46 = vld [vmem:[#allocation16 + $0x380] ss:$16 sps:$4 sm:$0xff]  }
 0x33d   :  { %4458 = vmatprep.subr.bf16.mxu0 %v6338_v41  ;;  %v6450_v38 = vld [vmem:[#allocation16 + $0x300] ss:$16 sps:$4 sm:$0xff]   ;;  %v6458_v41 = vld [vmem:[#allocation16 + $0x2ec] ss:$16 sps:$4 sm:$0xff]  }
 0x33f   :  { %3614 = vmatpush2.bf16.msra.mxu1 %v6288_v37  ;;  %v6434_v37 = vld [vmem:[#allocation16 + $0x364] ss:$16 sps:$4 sm:$0xff]  }
 0x340   :  { %3615 = vmatprep.subr.bf16.mxu1 %v6293_v50  ;;  %4459 = vmatpush2.bf16.msra.mxu0 %v6336_v36  ;;  %v6440_v50 = vld [vmem:[#allocation16 + $0x344] ss:$16 sps:$4 sm:$0xff]   ;;  %v7007_v36 = vld [vmem:[#allocation15] sm:$0xf] }
 0x341   :  { %4460 = vmatprep.subr.bf16.mxu0 %v6341_v57 }
 0x343   :  { %3616 = vmatpush2.bf16.msra.mxu1 %v6291_v54  ;;  %v6444_v54 = vld [vmem:[#allocation16 + $0x320] ss:$16 sps:$4 sm:$0xff]  }
 0x344   :  { %3617 = vmatprep.subr.bf16.mxu1 %v6296_v12  ;;  %4461 = vmatpush2.bf16.msra.mxu0 %v6339_v60  ;;  %v6452_v12 = vld [vmem:[#allocation16 + $0x304] ss:$16 sps:$4 sm:$0xff]  }
 0x345   :  { %4462 = vmatprep.subr.bf16.mxu0 %v6344_v61 }
 0x347   :  { %3618 = vmatpush2.bf16.msra.mxu1 %v6294_v55 }
 0x348   :  { %3619 = vmatprep.subr.bf16.mxu1 %v6299_v56  ;;  %4463 = vmatpush2.bf16.msra.mxu0 %v6342_v2 }
 0x349   :  { %4464 = vmatprep.subr.bf16.mxu0 %v6347_v3 }
 0x34b   :  { %3620 = vmatpush2.bf16.msra.mxu1 %v6297_v58  ;;  %v2815_v58 = vrot.slane %v7007_v36, %v6956_v47 }
 0x34c   :  { %3621 = vmatprep.subr.bf16.mxu1 %v6302_v52  ;;  %4465 = vmatpush2.bf16.msra.mxu0 %v6345_v6  ;;  %v2811_v52 = vrot.slane %v7007_v36, %v6958_v49 }
 0x34d   :  { %4466 = vmatprep.subr.bf16.mxu0 %v6350_v7 }
 0x34f   :  { %3622 = vmatpush2.bf16.msra.mxu1 %v6300_v62 }
 0x350   :  { %3623 = vmatprep.subr.bf16.mxu1 %v6305_v63  ;;  %4467 = vmatpush2.bf16.msra.mxu0 %v6348_v9 }
 0x351   :  { %4468 = vmatprep.subr.bf16.mxu0 %v6353_v11 }
 0x353   :  { %3624 = vmatpush2.bf16.msra.mxu1 %v6303_v4 }
 0x354   :  { %3625 = vmatprep.subr.bf16.mxu1 %v6308_v5  ;;  %4469 = vmatpush2.bf16.msra.mxu0 %v6351_v0 }
 0x355   :  { %4470 = vmatprep.subr.bf16.mxu0 %v6356_v13 }
 0x357   :  { %3626 = vmatpush2.bf16.msra.mxu1 %v6306_v59 }
 0x358   :  { %3627 = vmatprep.subr.bf16.mxu1 %v6311_v8  ;;  %4471 = vmatpush2.bf16.msra.mxu0 %v6354_v1 }
 0x359   :  { %4472 = vmatprep.subr.bf16.mxu0 %v6359_v15  ;;  %v6363_v15 = vld [vmem:[#allocation16 + $0xe8] ss:$16 sps:$4 sm:$0xff]  }
 0x35b   :  { %3628 = vmatpush2.bf16.msra.mxu1 %v6309_v10 }
 0x35c   :  { %4473 = vmatpush2.bf16.msra.mxu0 %v6357_v16  ;;  %4485 = vmatprep.subr.bf16.mxu1 %v6362_v20  ;;  %v6369_v20 = vld [vmem:[#allocation16 + $0xc8] ss:$16 sps:$4 sm:$0xff]  }
 0x35d   :  { %4528 = vmatprep.subr.bf16.mxu0 %v6365_v21  ;;  %v6377_v21 = vld [vmem:[#allocation16 + $0xac] ss:$16 sps:$4 sm:$0xff]  }
 0x35e   :  { %3630 = vmatmul.mubr.bf16.vlgmr.msra.gmra.mxu1 %v7002_v14  ;;  %v6368_v14 = vld [vmem:[#allocation16 + $0x2c4] ss:$16 sps:$4 sm:$0xff]  }
 0x35f   :  { %4486 = vmatpush1.bf16.msra.mxu1 %v6360_v17  ;;  %v6371_v17 = vld [vmem:[#allocation16 + $0xcc] ss:$16 sps:$4 sm:$0xff]  }
 0x360   :  { %4487 = vmatprep.subr.bf16.mxu1 %v6368_v14  ;;  %v6383_v14 = vld [vmem:[#allocation16 + $0x8c] ss:$16 sps:$4 sm:$0xff]  }
 0x363   :  { %4488 = vmatpush1.bf16.msra.mxu1 %v6366_v22  ;;  %v6375_v22 = vld [vmem:[#allocation16 + $0xa8] ss:$16 sps:$4 sm:$0xff]  }
 0x364   :  { %4489 = vmatprep.subr.bf16.mxu1 %v6374_v24  ;;  %v6389_v24 = vld [vmem:[#allocation16 + $0x6c] ss:$16 sps:$4 sm:$0xff]  }
 0x367   :  { %4490 = vmatpush1.bf16.msra.mxu1 %v6372_v23  ;;  %v6381_v23 = vld [vmem:[#allocation16 + $0x88] ss:$16 sps:$4 sm:$0xff]  }
 0x368   :  { %4491 = vmatprep.subr.bf16.mxu1 %v6380_v27  ;;  %v6395_v27 = vld [vmem:[#allocation16 + $0x4c] ss:$16 sps:$4 sm:$0xff]  }
 0x36b   :  { %4492 = vmatpush1.bf16.msra.mxu1 %v6378_v25  ;;  %v6387_v25 = vld [vmem:[#allocation16 + $0x68] ss:$16 sps:$4 sm:$0xff]  }
 0x36c   :  { %4493 = vmatprep.subr.bf16.mxu1 %v6386_v28  ;;  %v6401_v28 = vld [vmem:[#allocation16 + $0x2c] ss:$16 sps:$4 sm:$0xff]  }
 0x36f   :  { %4494 = vmatpush1.bf16.msra.mxu1 %v6384_v18  ;;  %v6393_v18 = vld [vmem:[#allocation16 + $0x48] ss:$16 sps:$4 sm:$0xff]  }
 0x370   :  { %4495 = vmatprep.subr.bf16.mxu1 %v6392_v32  ;;  %v6407_v32 = vld [vmem:[#allocation16 + $0xc] ss:$16 sps:$4 sm:$0xff]  }
 0x373   :  { %4496 = vmatpush1.bf16.msra.mxu1 %v6390_v30  ;;  %v6399_v30 = vld [vmem:[#allocation16 + $0x28] ss:$16 sps:$4 sm:$0xff]  }
 0x374   :  { %4497 = vmatprep.subr.bf16.mxu1 %v6398_v40  ;;  %v6413_v40 = vld [vmem:[#allocation16 + $0x1ec] ss:$16 sps:$4 sm:$0xff]  }
 0x377   :  { %4498 = vmatpush1.bf16.msra.mxu1 %v6396_v39  ;;  %v6405_v39 = vld [vmem:[#allocation16 + $0x8] ss:$16 sps:$4 sm:$0xff]  }
 0x378   :  { %4499 = vmatprep.subr.bf16.mxu1 %v6404_v33  ;;  %v6419_v33 = vld [vmem:[#allocation16 + $0x1cc] ss:$16 sps:$4 sm:$0xff]  }
 0x37b   :  { %4500 = vmatpush1.bf16.msra.mxu1 %v6402_v31  ;;  %v6411_v31 = vld [vmem:[#allocation16 + $0x1e8] ss:$16 sps:$4 sm:$0xff]  }
 0x37c   :  { %4501 = vmatprep.subr.bf16.mxu1 %v6410_v19  ;;  %v6425_v19 = vld [vmem:[#allocation16 + $0x1ac] ss:$16 sps:$4 sm:$0xff]  }
 0x37f   :  { %4502 = vmatpush2.bf16.msra.mxu1 %v6408_v43  ;;  %v6417_v43 = vld [vmem:[#allocation16 + $0x1c8] ss:$16 sps:$4 sm:$0xff]  }
 0x380   :  { %4503 = vmatprep.subr.bf16.mxu1 %v6416_v44  ;;  %v6431_v44 = vld [vmem:[#allocation16 + $0x18c] ss:$16 sps:$4 sm:$0xff]  }
 0x383   :  { %4504 = vmatpush2.bf16.msra.mxu1 %v6414_v34  ;;  %v6423_v34 = vld [vmem:[#allocation16 + $0x1a8] ss:$16 sps:$4 sm:$0xff]  }
 0x384   :  { %4505 = vmatprep.subr.bf16.mxu1 %v6422_v45  ;;  %v6429_v45 = vld [vmem:[#allocation16 + $0x188] ss:$16 sps:$4 sm:$0xff]  }
 0x387   :  { %4506 = vmatpush2.bf16.msra.mxu1 %v6420_v42 }
 0x388   :  { %4507 = vmatprep.subr.bf16.mxu1 %v6428_v48 }
 0x38b   :  { %4508 = vmatpush2.bf16.msra.mxu1 %v6426_v46  ;;  %v6437_v46 = vld [vmem:[#allocation16 + $0x16c] ss:$16 sps:$4 sm:$0xff]  }
 0x38c   :  { %4509 = vmatprep.subr.bf16.mxu1 %v6434_v37  ;;  %v6443_v37 = vld [vmem:[#allocation16 + $0x14c] ss:$16 sps:$4 sm:$0xff]  }
 0x38f   :  { %4510 = vmatpush2.bf16.msra.mxu1 %v6432_v35  ;;  %v6435_v35 = vld [vmem:[#allocation16 + $0x168] ss:$16 sps:$4 sm:$0xff]  }
 0x390   :  { %4511 = vmatprep.subr.bf16.mxu1 %v6440_v50 }
 0x393   :  { %4512 = vmatpush2.bf16.msra.mxu1 %v6438_v51  ;;  %v2823_v51 = vrot.slane %v7007_v36, %v6972_v26 }
 0x394   :  { %4513 = vmatprep.subr.bf16.mxu1 %v6446_v53  ;;  %v6441_v53 = vld [vmem:[#allocation16 + $0x148] ss:$16 sps:$4 sm:$0xff]  }
 0x397   :  { %4514 = vmatpush2.bf16.msra.mxu1 %v6444_v54  ;;  %v2819_v54 = vrot.slane %v7007_v36, %v6974_v29  ;;  %v6453_v36 = vld [vmem:[#allocation16 + $0x108] ss:$16 sps:$4 sm:$0xff]  }
 0x398   :  { %4515 = vmatprep.subr.bf16.mxu1 %v6452_v12 }
 0x39b   :  { %4516 = vmatpush2.bf16.msra.mxu1 %v6450_v38  ;;  %v6449_v38 = vld [vmem:[#allocation16 + $0x12c] ss:$16 sps:$4 sm:$0xff]  }
 0x39c   :  { %4571 = vmatprep.subr.bf16.mxu1 %v6458_v41 }
 0x39e   :  { %v3502_v55 = vpop.f32.mrf.mxu0 }
 0x39f   :  { %v3503_v3 = vadd.f32 %v3502_v55, %v2811_v52 }
 0x3a0   :  { %v3504_v56 = vpop.f32.mrf.mxu0 }
 0x3a1   :  { %v3505_v63 = vadd.f32 %v3504_v56, %v2815_v58 }
 0x3a2   :  { %v3506_v57 = vpop.f32.mrf.mxu0 }
 0x3a3   :  { %v3507_v2 = vadd.f32 %v3506_v57, %v2811_v52 }
 0x3a4   :  { %v3508_v61 = vpop.f32.mrf.mxu0 }
 0x3a5   :  { %v3509_v5 = vadd.f32 %v3508_v61, %v2815_v58  ;;  %v6447_v58 = vld [vmem:[#allocation16 + $0x128] ss:$16 sps:$4 sm:$0xff]   ;;  %v6455_v61 = vld [vmem:[#allocation16 + $0x10c] ss:$16 sps:$4 sm:$0xff]  }
 0x3de   :  { %v3545_v60 = vpop.f32.mrf.mxu1  ;;  %v3588_v42 = vpop.f32.mrf.mxu0 }
 0x3df   :  { %v3546_v59 = vadd.f32 %v3545_v60, %v3503_v3  ;;  %v3589_v52 = vadd.f32 %v3588_v42, %v2819_v54  ;;  %v6485_v42 = vld [vmem:[#allocation16 + $0x3cc] ss:$16 sps:$4 sm:$0xff]  }
 0x3e0   :  { %v3547_v62 = vpop.f32.mrf.mxu1  ;;  %v3590_v48 = vpop.f32.mrf.mxu0 }
 0x3e1   :  { %v3548_v6 = vadd.f32 %v3547_v62, %v3505_v63  ;;  %v3640_v13 = vmax.f32 %v3546_v59, 0.0  ;;  %v3591_v56 = vadd.f32 %v3590_v48, %v2823_v51  ;;  %v6486_v48 = vld [vmem:[#allocation16 + $0x3a8] ss:$16 sps:$4 sm:$0xff]  }
 0x3e2   :  { %v3549_v4 = vpop.f32.mrf.mxu1  ;;  %v3592_v50 = vpop.f32.mrf.mxu0 }
 0x3e3   :  { %v3550_v7 = vadd.f32 %v3549_v4, %v3507_v2  ;;  %v3641_v11 = vmax.f32 %v3548_v6, 0.0  ;;  %v3593_v57 = vadd.f32 %v3592_v50, %v2819_v54  ;;  %v6494_v50 = vld [vmem:[#allocation16 + $0x36c] ss:$16 sps:$4 sm:$0xff]   ;;  %v6495_v54 = vld [vmem:[#allocation16 + $0x348] ss:$16 sps:$4 sm:$0xff]  }
 0x3e4   :  { %v3551_v8 = vpop.f32.mrf.mxu1  ;;  %v3594_v41 = vpop.f32.mrf.mxu0 }
 0x3e5   :  { %v3552_v9 = vadd.f32 %v3551_v8, %v3509_v5  ;;  %v3644_v10 = vmax.f32 %v3550_v7, 0.0  ;;  %v3595_v62 = vadd.f32 %v3594_v41, %v2823_v51  ;;  %v6492_v51 = vld [vmem:[#allocation16 + $0x368] ss:$16 sps:$4 sm:$0xff]   ;;  %v6503_v41 = vld [vmem:[#allocation16 + $0x30c] ss:$16 sps:$4 sm:$0xff]  }
 0x3e7   :  { %v3645_v0 = vmax.f32 %v3552_v9, 0.0  ;;  %v7013_v16 = vpack.c.bf16 %v3644_v10, %v3640_v13  ;;  %v6456_v10 = vld [vmem:[#allocation16 + $0x2e8] ss:$16 sps:$4 sm:$0xff]  }
 0x3e8   :  { %v6459_v13 = vld [vmem:[#allocation16 + $0x2c8] ss:$16 sps:$4 sm:$0xff]  }
 0x3e9   :  { %v3649_v1 = vpack.c.bf16 %v3645_v0, %v3641_v11  ;;  %v6461_v0 = vld [vmem:[#allocation16 + $0x2cc] ss:$16 sps:$4 sm:$0xff]  }
 0x3eb   :  { %4474 = vmatprep.mubr.bf16.mxu0 %v3649_v1 }
 0x3ec   :  { %4475 = vmatmul.mubr.bf16.vlgmr.msra.gmra.mxu0 %v7013_v16 }
 0x3ed   :  { %4529 = vmatpush1.bf16.msra.mxu0 %v6363_v15  ;;  %4560 = vmatprep.mubr.bf16.mxu0 %v3649_v1  ;;  %v6464_v1 = vld [vmem:[#allocation16 + $0x2ac] ss:$16 sps:$4 sm:$0xff]   ;;  %v6462_v15 = vld [vmem:[#allocation16 + $0x2a8] ss:$16 sps:$4 sm:$0xff]  }
 0x3ee   :  { %4530 = vmatprep.subr.bf16.mxu0 %v6371_v17  ;;  %v6467_v17 = vld [vmem:[#allocation16 + $0x28c] ss:$16 sps:$4 sm:$0xff]  }
 0x3f1   :  { %4531 = vmatpush1.bf16.msra.mxu0 %v6369_v20  ;;  %v6504_v20 = vld [vmem:[#allocation18 + $0x78] sm:$0xff]  }
 0x3f2   :  { %4532 = vmatprep.subr.bf16.mxu0 %v6377_v21  ;;  %v6505_v21 = vld [vmem:[#allocation18 + $0x38] sm:$0xff]  }
 0x3f5   :  { %4533 = vmatpush1.bf16.msra.mxu0 %v6375_v22  ;;  %v6506_v22 = vld [vmem:[#allocation18 + $0x70] sm:$0xff]  }
 0x3f6   :  { %4534 = vmatprep.subr.bf16.mxu0 %v6383_v14  ;;  %v6465_v14 = vld [vmem:[#allocation16 + $0x288] ss:$16 sps:$4 sm:$0xff]  }
 0x3f9   :  { %4535 = vmatpush1.bf16.msra.mxu0 %v6381_v23  ;;  %v6470_v23 = vld [vmem:[#allocation16 + $0x26c] ss:$16 sps:$4 sm:$0xff]  }
 0x3fa   :  { %4536 = vmatprep.subr.bf16.mxu0 %v6389_v24  ;;  %v6507_v24 = vld [vmem:[#allocation18 + $0x30] sm:$0xff]  }
 0x3fd   :  { %4537 = vmatpush1.bf16.msra.mxu0 %v6387_v25  ;;  %v6468_v25 = vld [vmem:[#allocation16 + $0x268] ss:$16 sps:$4 sm:$0xff]  }
 0x3fe   :  { %4538 = vmatprep.subr.bf16.mxu0 %v6395_v27  ;;  %v6473_v27 = vld [vmem:[#allocation16 + $0x24c] ss:$16 sps:$4 sm:$0xff]  }
 0x401   :  { %4539 = vmatpush1.bf16.msra.mxu0 %v6393_v18  ;;  %v6509_v18 = vld [vmem:[#allocation18 + $0x28] sm:$0xff]  }
 0x402   :  { %4540 = vmatprep.subr.bf16.mxu0 %v6401_v28  ;;  %v6510_v28 = vld [vmem:[#allocation18 + $0x60] sm:$0xff]  }
 0x405   :  { %4541 = vmatpush1.bf16.msra.mxu0 %v6399_v30  ;;  %v6471_v30 = vld [vmem:[#allocation16 + $0x248] ss:$16 sps:$4 sm:$0xff]  }
 0x406   :  { %4542 = vmatprep.subr.bf16.mxu0 %v6407_v32  ;;  %v6476_v32 = vld [vmem:[#allocation16 + $0x22c] ss:$16 sps:$4 sm:$0xff]  }
 0x409   :  { %4543 = vmatpush1.bf16.msra.mxu0 %v6405_v39  ;;  %v6511_v39 = vld [vmem:[#allocation18 + $0x20] sm:$0xff]  }
 0x40a   :  { %4544 = vmatprep.subr.bf16.mxu0 %v6413_v40  ;;  %v6512_v40 = vld [vmem:[#allocation18 + $0x58] sm:$0xff]  }
 0x40d   :  { %4545 = vmatpush2.bf16.msra.mxu0 %v6411_v31  ;;  %v6474_v31 = vld [vmem:[#allocation16 + $0x228] ss:$16 sps:$4 sm:$0xff]  }
 0x40e   :  { %4546 = vmatprep.subr.bf16.mxu0 %v6419_v33  ;;  %v6479_v33 = vld [vmem:[#allocation16 + $0x20c] ss:$16 sps:$4 sm:$0xff]  }
 0x411   :  { %4547 = vmatpush2.bf16.msra.mxu0 %v6417_v43  ;;  %v6513_v43 = vld [vmem:[#allocation18 + $0x18] sm:$0xff]  }
 0x412   :  { %4548 = vmatprep.subr.bf16.mxu0 %v6425_v19  ;;  %v6477_v19 = vld [vmem:[#allocation16 + $0x208] ss:$16 sps:$4 sm:$0xff]  }
 0x415   :  { %4549 = vmatpush2.bf16.msra.mxu0 %v6423_v34  ;;  %v6482_v34 = vld [vmem:[#allocation16 + $0x3ec] ss:$16 sps:$4 sm:$0xff]  }
 0x416   :  { %4550 = vmatprep.subr.bf16.mxu0 %v6431_v44  ;;  %v6480_v44 = vld [vmem:[#allocation16 + $0x3e8] ss:$16 sps:$4 sm:$0xff]  }
 0x419   :  { %4551 = vmatpush2.bf16.msra.mxu0 %v6429_v45  ;;  %v6483_v45 = vld [vmem:[#allocation16 + $0x3c8] ss:$16 sps:$4 sm:$0xff]  }
 0x41a   :  { %4552 = vmatprep.subr.bf16.mxu0 %v6437_v46  ;;  %v6488_v46 = vld [vmem:[#allocation16 + $0x3ac] ss:$16 sps:$4 sm:$0xff]  }
 0x41d   :  { %4553 = vmatpush2.bf16.msra.mxu0 %v6435_v35  ;;  %v6491_v35 = vld [vmem:[#allocation16 + $0x38c] ss:$16 sps:$4 sm:$0xff]  }
 0x41e   :  { %v3631_v12 = vpop.f32.mrf.mxu1  ;;  %4554 = vmatprep.subr.bf16.mxu0 %v6443_v37  ;;  %v6489_v37 = vld [vmem:[#allocation16 + $0x388] ss:$16 sps:$4 sm:$0xff]  }
 0x41f   :  { %v3632_v3 = vadd.f32 %v3631_v12, %v3589_v52  ;;  %v6500_v12 = vld [vmem:[#allocation16 + $0x32c] ss:$16 sps:$4 sm:$0xff]  }
 0x420   :  { %v3633_v55 = vpop.f32.mrf.mxu1  ;;  %v6517_v52 = vld [vmem:[#allocation18 + $0x8] sm:$0xff]  }
 0x421   :  { %4555 = vmatpush2.bf16.msra.mxu0 %v6441_v53  ;;  %v3634_v63 = vadd.f32 %v3633_v55, %v3591_v56  ;;  %v3642_v8 = vmax.f32 %v3632_v3, 0.0  ;;  %v6497_v53 = vld [vmem:[#allocation16 + $0x34c] ss:$16 sps:$4 sm:$0xff]   ;;  %v6501_v55 = vld [vmem:[#allocation16 + $0x308] ss:$16 sps:$4 sm:$0xff]   ;;  %v6514_v56 = vld [vmem:[#allocation18 + $0x50] sm:$0xff]  }
 0x422   :  { %v3635_v60 = vpop.f32.mrf.mxu1  ;;  %4556 = vmatprep.subr.bf16.mxu0 %v6449_v38  ;;  %v6498_v38 = vld [vmem:[#allocation16 + $0x328] ss:$16 sps:$4 sm:$0xff]   ;;  %v6523_v3 = vld [vmem:[#allocation18 + $0xb0] sm:$0xff]  }
 0x423   :  { %v3636_v2 = vadd.f32 %v3635_v60, %v3593_v57  ;;  %v3643_v7 = vmax.f32 %v3634_v63, 0.0  ;;  %v6515_v57 = vld [vmem:[#allocation18 + $0x10] sm:$0xff]   ;;  %v6518_v60 = vld [vmem:[#allocation18 + $0x40] sm:$0xff]   ;;  %v6521_v63 = vld [vmem:[#allocation18 + $0xb8] sm:$0xff]  }
 0x424   :  { %v3637_v4 = vpop.f32.mrf.mxu1 }
 0x425   :  { %v3638_v5 = vadd.f32 %v3637_v4, %v3595_v62  ;;  %4557 = vmatpush2.bf16.msra.mxu0 %v6447_v58  ;;  %v3646_v6 = vmax.f32 %v3636_v2, 0.0  ;;  %v6516_v58 = vld [vmem:[#allocation18 + $0x48] sm:$0xff]   ;;  %v6520_v62 = vld [vmem:[#allocation18 + $0xf8] sm:$0xff]   ;;  %v6522_v2 = vld [vmem:[#allocation18 + $0xf0] sm:$0xff]  }
 0x426   :  { %4558 = vmatprep.subr.bf16.mxu0 %v6455_v61  ;;  %v6519_v61 = vld [vmem:[#allocation18] sm:$0xff]   ;;  %v6524_v4 = vld [vmem:[#allocation18 + $0xe8] sm:$0xff]  }
 0x427   :  { %v3647_v59 = vmax.f32 %v3638_v5, 0.0  ;;  %v7020_v11 = vpack.c.bf16 %v3646_v6, %v3642_v8  ;;  %v6525_v5 = vld [vmem:[#allocation18 + $0xa8] sm:$0xff]   ;;  %v6527_v6 = vld [vmem:[#allocation18 + $0xa0] sm:$0xff]   ;;  %v6530_v8 = vld [vmem:[#allocation18 + $0xd0] sm:$0xff]  }
 0x429   :  { %v3651_v9 = vpack.c.bf16 %v3647_v59, %v3643_v7  ;;  %4559 = vmatpush2.bf16.msra.mxu0 %v6453_v36  ;;  %v6526_v36 = vld [vmem:[#allocation18 + $0xe0] sm:$0xff]   ;;  %v6528_v7 = vld [vmem:[#allocation18 + $0xd8] sm:$0xff]  }
 0x42a   :  { %5594 = vmatprep.subr.bf16.mxu0 %v6504_v20  ;;  %v6529_v59 = vld [vmem:[#allocation18 + $0x98] sm:$0xff]  }
 0x42b   :  { %4517 = vmatprep.mubr.bf16.mxu1 %v3651_v9 }
 0x42c   :  { %4518 = vmatmul.mubr.bf16.vlgmr.msra.gmra.mxu1 %v7020_v11  ;;  %4561 = vmatmul.mubr.bf16.vlgmr.msra.gmra.mxu0 %v7013_v16  ;;  %v6508_v16 = vld [vmem:[#allocation18 + $0x68] sm:$0xff]  }
 0x42d   :  { %4572 = vmatpush1.bf16.msra.mxu1 %v6456_v10  ;;  %4603 = vmatprep.mubr.bf16.mxu1 %v3651_v9  ;;  %v6531_v9 = vld [vmem:[#allocation18 + $0x90] sm:$0xff]   ;;  %v6532_v10 = vld [vmem:[#allocation18 + $0xc8] sm:$0xff]  }
 0x42e   :  { %4573 = vmatprep.subr.bf16.mxu1 %v6461_v0  ;;  %5595 = vmatpush3.bf16.msra.mxu0 %v6505_v21  ;;  %v6534_v0 = vld [vmem:[#allocation18 + $0xc0] sm:$0xff]  }
 0x42f   :  { %5596 = vmatprep.subr.bf16.mxu0 %v6506_v22 }
 0x431   :  { %4574 = vmatpush1.bf16.msra.mxu1 %v6459_v13  ;;  %v6535_v13 = vld [vmem:[#allocation18 + $0x80] sm:$0xff]  }
 0x432   :  { %4575 = vmatprep.subr.bf16.mxu1 %v6464_v1  ;;  %5597 = vmatpush3.bf16.msra.mxu0 %v6507_v24 }
 0x433   :  { %5598 = vmatprep.subr.bf16.mxu0 %v6508_v16 }
 0x435   :  { %4576 = vmatpush1.bf16.msra.mxu1 %v6462_v15 }
 0x436   :  { %4577 = vmatprep.subr.bf16.mxu1 %v6467_v17  ;;  %5599 = vmatpush3.bf16.msra.mxu0 %v6509_v18  ;;  %v3780_v17 = vld [vmem:[%s7051_s10] sm:$0xf] }
 0x437   :  { %5600 = vmatprep.subr.bf16.mxu0 %v6510_v28  ;;  %v3789_v21 = vrot.slane %v3780_v17, %v6956_v47  ;;  %v3785_v22 = vrot.slane %v3780_v17, %v6958_v49 }
 0x439   :  { %4578 = vmatpush1.bf16.msra.mxu1 %v6465_v14 }
 0x43a   :  { %4579 = vmatprep.subr.bf16.mxu1 %v6470_v23  ;;  %5601 = vmatpush3.bf16.msra.mxu0 %v6511_v39 }
 0x43b   :  { %5602 = vmatprep.subr.bf16.mxu0 %v6512_v40 }
 0x43d   :  { %4580 = vmatpush1.bf16.msra.mxu1 %v6468_v25 }
 0x43e   :  { %4581 = vmatprep.subr.bf16.mxu1 %v6473_v27  ;;  %5603 = vmatpush3.bf16.msra.mxu0 %v6513_v43 }
 0x43f   :  { %5604 = vmatprep.subr.bf16.mxu0 %v6514_v56 }
 0x441   :  { %4582 = vmatpush1.bf16.msra.mxu1 %v6471_v30 }
 0x442   :  { %4583 = vmatprep.subr.bf16.mxu1 %v6476_v32  ;;  %5605 = vmatpush3.bf16.msra.mxu0 %v6515_v57 }
 0x443   :  { %5606 = vmatprep.subr.bf16.mxu0 %v6516_v58 }
 0x445   :  { %4584 = vmatpush1.bf16.msra.mxu1 %v6474_v31 }
 0x446   :  { %4585 = vmatprep.subr.bf16.mxu1 %v6479_v33  ;;  %5607 = vmatpush3.bf16.msra.mxu0 %v6517_v52 }
 0x447   :  { %5608 = vmatprep.subr.bf16.mxu0 %v6518_v60 }
 0x449   :  { %4586 = vmatpush1.bf16.msra.mxu1 %v6477_v19 }
 0x44a   :  { %4587 = vmatprep.subr.bf16.mxu1 %v6482_v34  ;;  %5609 = vmatpush3.bf16.msra.mxu0 %v6519_v61 }
 0x44d   :  { %4588 = vmatpush2.bf16.msra.mxu1 %v6480_v44 }
 0x44e   :  { %4589 = vmatprep.subr.bf16.mxu1 %v6485_v42 }
 0x451   :  { %4590 = vmatpush2.bf16.msra.mxu1 %v6483_v45 }
 0x452   :  { %4591 = vmatprep.subr.bf16.mxu1 %v6488_v46  ;;  %v3797_v46 = vrot.slane %v3780_v17, %v6972_v26 }
 0x455   :  { %4592 = vmatpush2.bf16.msra.mxu1 %v6486_v48  ;;  %v3793_v48 = vrot.slane %v3780_v17, %v6974_v29 }
 0x456   :  { %4593 = vmatprep.subr.bf16.mxu1 %v6491_v35 }
 0x459   :  { %4594 = vmatpush2.bf16.msra.mxu1 %v6489_v37 }
 0x45a   :  { %4595 = vmatprep.subr.bf16.mxu1 %v6494_v50 }
 0x45d   :  { %4596 = vmatpush2.bf16.msra.mxu1 %v6492_v51 }
 0x45e   :  { %4597 = vmatprep.subr.bf16.mxu1 %v6497_v53 }
 0x461   :  { %4598 = vmatpush2.bf16.msra.mxu1 %v6495_v54 }
 0x462   :  { %4599 = vmatprep.subr.bf16.mxu1 %v6500_v12 }
 0x465   :  { %4600 = vmatpush2.bf16.msra.mxu1 %v6498_v38 }
 0x466   :  { %4601 = vmatprep.subr.bf16.mxu1 %v6503_v41 }
 0x469   :  { %4602 = vmatpush2.bf16.msra.mxu1 %v6501_v55 }
 0x46a   :  { %5616 = vmatprep.subr.bf16.mxu1 %v6520_v62 }
 0x46c   :  { %4604 = vmatmul.mubr.bf16.vlgmr.msra.gmra.mxu1 %v7020_v11  ;;  %v6533_v11 = vld [vmem:[#allocation18 + $0x88] sm:$0xff]  }
 0x46d   :  { %5617 = vmatpush3.bf16.msra.mxu1 %v6521_v63 }
 0x46e   :  { %5618 = vmatprep.subr.bf16.mxu1 %v6522_v2 }
 0x471   :  { %5619 = vmatpush3.bf16.msra.mxu1 %v6523_v3 }
 0x472   :  { %5620 = vmatprep.subr.bf16.mxu1 %v6524_v4 }
 0x475   :  { %5621 = vmatpush3.bf16.msra.mxu1 %v6525_v5  ;;  %v5561_v5 = vld [vmem:[%s7053_s12] ss:$0 sm:$0xff] }
 0x476   :  { %5622 = vmatprep.subr.bf16.mxu1 %v6526_v36 }
 0x479   :  { %5623 = vmatpush3.bf16.msra.mxu1 %v6527_v6 }
 0x47a   :  { %5624 = vmatprep.subr.bf16.mxu1 %v6528_v7 }
 0x47d   :  { %5625 = vmatpush3.bf16.msra.mxu1 %v6529_v59 }
 0x47e   :  { %5626 = vmatprep.subr.bf16.mxu1 %v6530_v8 }
 0x481   :  { %5627 = vmatpush3.bf16.msra.mxu1 %v6531_v9 }
 0x482   :  { %5628 = vmatprep.subr.bf16.mxu1 %v6532_v10 }
 0x485   :  { %5629 = vmatpush3.bf16.msra.mxu1 %v6533_v11 }
 0x486   :  { %5630 = vmatprep.subr.bf16.mxu1 %v6534_v0 }
 0x489   :  { %5631 = vmatpush3.bf16.msra.mxu1 %v6535_v13 }
 0x4ac   :  { %v4476_v1 = vpop.f32.mrf.mxu0 }
 0x4ad   :  { %v4477_v27 = vadd.f32 %v4476_v1, %v3785_v22 }
 0x4ae   :  { %v4478_v15 = vpop.f32.mrf.mxu0 }
 0x4af   :  { %v4479_v16 = vadd.f32 %v4478_v15, %v3789_v21 }
 0x4b0   :  { %v4480_v20 = vpop.f32.mrf.mxu0 }
 0x4b1   :  { %v4481_v25 = vadd.f32 %v4480_v20, %v3785_v22 }
 0x4b2   :  { %v4482_v23 = vpop.f32.mrf.mxu0 }
 0x4b3   :  { %v4483_v28 = vadd.f32 %v4482_v23, %v3789_v21 }
 0x4ec   :  { %v4519_v14 = vpop.f32.mrf.mxu1  ;;  %v4562_v49 = vpop.f32.mrf.mxu0 }
 0x4ed   :  { %v4520_v39 = vadd.f32 %v4519_v14, %v4477_v27  ;;  %v4563_v54 = vadd.f32 %v4562_v49, %v3793_v48 }
 0x4ee   :  { %v4521_v24 = vpop.f32.mrf.mxu1  ;;  %v4564_v42 = vpop.f32.mrf.mxu0 }
 0x4ef   :  { %v4522_v30 = vadd.f32 %v4521_v24, %v4479_v16  ;;  %v4614_v34 = vmax.f32 %v4520_v39, 0.0  ;;  %v4565_v51 = vadd.f32 %v4564_v42, %v3797_v46 }
 0x4f0   :  { %v4523_v18 = vpop.f32.mrf.mxu1  ;;  %v4566_v45 = vpop.f32.mrf.mxu0 }
 0x4f1   :  { %v4524_v32 = vadd.f32 %v4523_v18, %v4481_v25  ;;  %v4615_v43 = vmax.f32 %v4522_v30, 0.0  ;;  %v4567_v53 = vadd.f32 %v4566_v45, %v3793_v48 }
 0x4f2   :  { %v4525_v40 = vpop.f32.mrf.mxu1  ;;  %v4568_v37 = vpop.f32.mrf.mxu0 }
 0x4f3   :  { %v4526_v31 = vadd.f32 %v4525_v40, %v4483_v28  ;;  %v4618_v33 = vmax.f32 %v4524_v32, 0.0  ;;  %v4569_v38 = vadd.f32 %v4568_v37, %v3797_v46 }
 0x4f5   :  { %v4619_v19 = vmax.f32 %v4526_v31, 0.0  ;;  %v4622_v44 = vpack.c.bf16 %v4618_v33, %v4614_v34 }
 0x4f7   :  { %v4623_v47 = vpack.c.bf16 %v4619_v19, %v4615_v43 }
 0x4f9   :  { %4921 = vmatprep.mubr.bf16.mxu0 %v4623_v47 }
 0x4fa   :  { %4922 = vmatmul.mubr.bf16.vlgmr.msra.gmra.mxu0 %v4622_v44 }
 0x52c   :  { %v4605_v35 = vpop.f32.mrf.mxu1 }
 0x52d   :  { %v4606_v56 = vadd.f32 %v4605_v35, %v4563_v54 }
 0x52e   :  { %v4607_v50 = vpop.f32.mrf.mxu1 }
 0x52f   :  { %v4608_v41 = vadd.f32 %v4607_v50, %v4565_v51  ;;  %v4616_v62 = vmax.f32 %v4606_v56, 0.0 }
 0x530   :  { %v4609_v12 = vpop.f32.mrf.mxu1 }
 0x531   :  { %v4610_v55 = vadd.f32 %v4609_v12, %v4567_v53  ;;  %v4617_v60 = vmax.f32 %v4608_v41, 0.0 }
 0x532   :  { %v4611_v57 = vpop.f32.mrf.mxu1 }
 0x533   :  { %v4612_v58 = vadd.f32 %v4611_v57, %v4569_v38  ;;  %v4620_v52 = vmax.f32 %v4610_v55, 0.0 }
 0x535   :  { %v4621_v61 = vmax.f32 %v4612_v58, 0.0  ;;  %v4624_v63 = vpack.c.bf16 %v4620_v52, %v4616_v62 }
 0x537   :  { %v4625_v26 = vpack.c.bf16 %v4621_v61, %v4617_v60 }
 0x539   :  { %4962 = vmatprep.mubr.bf16.mxu1 %v4625_v26 }
 0x53a   :  { %4963 = vmatmul.mubr.bf16.vlgmr.msra.gmra.mxu1 %v4624_v63 }
 0x5ba   :  { %v5610_v29 = vpop.f32.mrf.mxu0 }
 0x5bc   :  { %v5611_v2 = vpop.f32.mrf.mxu0 }
 0x5bd   :  { %v5612_v4 = vadd.f32 %v5611_v2, %v5610_v29 }
 0x5be   :  { %v5613_v3 = vpop.f32.mrf.mxu0 }
 0x5bf   :  { %v4924_v59 = vadd.f32 %v5612_v4, %v5561_v5 }
 0x5c0   :  { %v5614_v36 = vpop.f32.mrf.mxu0 }
 0x5c1   :  { %v5615_v8 = vadd.f32 %v5614_v36, %v5613_v3 }
 0x5c3   :  { %v4927_v13 = vadd.f32 %v5615_v8, %v5561_v5 }
 0x5fa   :  { %v5632_v6 = vpop.f32.mrf.mxu1 }
 0x5fc   :  { %v5633_v7 = vpop.f32.mrf.mxu1 }
 0x5fd   :  { %v5634_v9 = vadd.f32 %v5633_v7, %v5632_v6 }
 0x5fe   :  { %v5635_v10 = vpop.f32.mrf.mxu1 }
 0x5ff   :  { %v4965_v11 = vadd.f32 %v5634_v9, %v4924_v59 }
 0x600   :  { %v5636_v0 = vpop.f32.mrf.mxu1 }
 0x601   :  { %v4971_v1 = vmax.f32 %v4965_v11, 0.0  ;;  %v5637_v15 = vadd.f32 %v5636_v0, %v5635_v10 }
 0x603   :  { %4973 = vst [vmem:[%s7054_s13] sm:$0xff] %v4971_v1  ;;  %v4968_v17 = vadd.f32 %v5637_v15, %v4927_v13 }
 0x605   :  { %v4972_v20 = vmax.f32 %v4968_v17, 0.0 }
 0x607   :  { %4974 = vst [vmem:[%s7054_s13 + $0x8] sm:$0xff] %v4972_v20 }
 0x608   :  { %4979 = vsyncpa [#allocation3], 1 }
 0x609   :  { %4980 = vsyncpa [#allocation5], 1 }
 0x60a   :  { %4981 = vsyncpa [#allocation8], 1 }
 0x60b   :  { %4982 = vsyncpa [#allocation11], 1 }
 0x60c   :  { %4983 = vsyncpa [#allocation14], 1 }
 0x60d   :  { %4984 = vsyncpa [#allocation17], 1 }

</bundles_post_ra>
